<compile_context>
chip_gen: v6e
topology: v6e:2x2x1
jax: 0.10.0
libtpu: 0.0.40
codegen_flags: <defaults>
</compile_context>

<pallas_src>
import functools

import jax
import jax.numpy as jnp
import numpy as np
from jax import lax
from jax.experimental import pallas as pl
from jax.experimental.pallas import tpu as pltpu


def _word_global_attention_kernel(
    q_proj_ref,   # VMEM (bb, D) f32              : source @ W_in^T
    h_src_ref,    # VMEM (bb, D) f32              : source @ W_out[:, D:]^T
    mem_ref,      # VMEM (bb, ts, s_len, D)       : word memory-bank tile (bf16 or f32)
    lens_ref,     # VMEM (bb, ts, 1) int32        : effective words / sentence (0 if invalid)
    align_ref,    # VMEM (bb, ts, 1) f32          : sentence attention (0 if invalid)
    w_out_c_ref,  # VMEM (D, D)                   : W_out[:, :D]^T (context half)
    vec_ref,      # VMEM (bb, D) f32 out          : attn_h (written on the last sentence step)
    attn_ref,     # VMEM (bb, ts, s_len) f32 out  : word attention tile
    ctx_ref,      # VMEM (bb, D) f32 scratch      : context accumulator across sentence steps
):
    s_idx = pl.program_id(1)
    n_s = pl.num_programs(1)
    bb, ts, s_len, _ = mem_ref.shape

    @pl.when(s_idx == 0)
    def _init():
        ctx_ref[...] = jnp.zeros_like(ctx_ref)

    # Hoisted once per grid step (JAX does not CSE iota / broadcast_in_dim).
    q3 = q_proj_ref[...][:, None, :]                            # (bb, 1, D) f32
    word_iota = lax.broadcasted_iota(jnp.int32, (bb, s_len), 1)  # (bb, s_len)
    neg_big = jnp.finfo(jnp.float32).min

    # Statically unrolled loop over the ts sentences of this tile
    # (== lax.fori_loop(..., unroll=True): straight-line code for the scheduler, and
    # only one (bb, s_len, D) memory-bank slice is referenced per step -- no full
    # (bb, ts, s_len, D) f32 temporaries are ever materialized).
    for i in range(ts):
        mem_i = mem_ref[:, i].astype(jnp.float32)               # (bb, s_len, D) f32
        # Scores over D: VPU broadcast-multiply + cross-lane reduce (per-row matvec; an
        # MXU matvec would waste its columns).  Hidden under the memory-bank DMA on
        # v5e/v6e; if a v7x bundle dump shows XLU saturation this is the line to move
        # onto the MXU as (s_len, D)x(D, 1) matvecs.
        scores = jnp.sum(mem_i * q3, axis=-1)                   # (bb, s_len) f32

        # Per-sentence masked softmax over s_len.  lens == 0 (invalid / padded sentence)
        # -> every word masked -> exact zeros, matching valid_src_compress -> softmax ->
        # recover_src zero-fill in the PyTorch module.
        valid = word_iota < lens_ref[:, i]                      # (bb, s_len) bool
        masked = jnp.where(valid, scores, neg_big)
        m = jnp.max(masked, axis=-1, keepdims=True)             # (bb, 1)
        p = jnp.where(valid, jnp.exp(masked - m), 0.0)
        denom = jnp.sum(p, axis=-1, keepdims=True)
        denom = jnp.where(denom > 0.0, denom, 1.0)              # empty sentence -> zeros, no NaN
        inv = pl.reciprocal(denom, approx=True)                 # EUP slot (otherwise idle)
        inv = inv * (2.0 - denom * inv)                         # one Newton step -> ~f32 accurate
        a_i = p * (inv * align_ref[:, i])                       # rescale by sentence attention

        attn_ref[:, i, :] = a_i
        # Context contribution; accumulate straight into the VMEM scratch so nothing
        # large is carried across unrolled iterations (the RMW is (bb, D) only).
        ctx_ref[...] += jnp.sum(a_i[:, :, None] * mem_i, axis=1)

    @pl.when(s_idx == n_s - 1)
    def _finish():
        # Context half of linear_out on the MXU (bf16-native by default), f32 accumulate;
        # the query half (h_src) was precomputed in the wrapper.
        ctx = ctx_ref[...].astype(w_out_c_ref.dtype)
        attn_h = jnp.dot(ctx, w_out_c_ref[...], preferred_element_type=jnp.float32)
        vec_ref[...] = jnp.tanh(attn_h + h_src_ref[...])


def _round_up(x, m):
    return ((x + m - 1) // m) * m


def _pick_tiles(B, s_num, s_len, D, mem_bytes, w_bytes, budget_bytes):
    """Heuristic, VMEM-budget-driven tile sizes.

    bb (batch rows per grid step): multiple of 8, chosen so the "parallel" batch axis
    has >= 2 grid steps whenever B > 8 (v7x has two TensorCores).
    ts (sentences per grid step): the whole s_num when small, otherwise a multiple of 8
    (block-shape rule on the attention output's second-minor dim) chosen to minimise
    sentence padding while the double-buffered streamed tile + f32 working set fits the
    budget.  The sentence loop is statically unrolled, so ts is capped at 16.
    """

    def footprint(bb, ts):
        mem_tile = bb * ts * s_len * D * mem_bytes          # streamed memory-bank tile
        attn_tile = bb * ts * s_len * 4                     # attention output tile
        work = 3 * bb * s_len * D * 4                       # per-sentence f32 working set
        small = 6 * bb * D * 4 + 2 * D * D * w_bytes + 16 * bb * ts
        return 2 * mem_tile + 2 * attn_tile + work + small  # x2: double-buffered streams

    if B <= 8:
        bb = B                                              # single tile == full dim (legal)
    else:
        bb = min(32, max(8, ((_round_up(B, 8) // 2) // 8) * 8))

    max_unroll = 16
    if s_num <= max_unroll and footprint(bb, s_num) <= budget_bytes:
        ts = s_num
    else:
        while bb > 8 and footprint(bb, 8) > budget_bytes:
            bb -= 8                                         # shrink batch tile before ts
        cands = [t for t in (16, 8) if footprint(bb, t) <= budget_bytes] or [8]
        ts = min(cands, key=lambda t: (_round_up(s_num, t), -t))   # least sentence padding
        ts = min(ts, _round_up(s_num, 8))

    if ts >= s_num:
        ts, s_num_pad = s_num, s_num
    else:
        s_num_pad = _round_up(s_num, ts)
    return bb, ts, _round_up(B, bb), s_num_pad


def word_global_attention(source, memory_bank, memory_lengths, sent_align_vectors,
                          sent_nums, w_in, w_out, *,
                          mem_dtype=jnp.bfloat16, weight_dtype=jnp.bfloat16,
                          vmem_budget_bytes=16 * 1024 * 1024, vmem_limit_bytes=None):
    """source: [B, D] f32; memory_bank: [B, s_num, s_len, D]; memory_lengths: [B, s_num] int;
    sent_align_vectors: [B, s_num] f32; sent_nums: [B] int; w_in: [D, D] (linear_in.weight);
    w_out: [D, 2D] (linear_out.weight).

    mem_dtype / weight_dtype default to bf16 (halves HBM traffic on the big operand and
    the resident weight's VMEM footprint; math stays f32 except the final bf16 MXU
    projection).  Pass jnp.float32 for a bit-closer match to the f32 PyTorch module.
    Raise vmem_budget_bytes / vmem_limit_bytes together for bigger tiles when the
    scoped-VMEM default (32 MiB) allows it."""
    B, s_num, s_len, D = memory_bank.shape
    hi = jax.lax.Precision.HIGHEST

    # ---- hoisted projections (single XLA matmuls): W_in never enters the kernel and only
    #      the (D, D) context half of W_out is kernel-resident. ----
    q_proj = jnp.dot(source, w_in.T, precision=hi).astype(jnp.float32)         # linear_in
    h_src = jnp.dot(source, w_out[:, D:].T, precision=hi).astype(jnp.float32)  # query half
    w_out_c_t = jnp.transpose(w_out[:, :D]).astype(weight_dtype)               # context half

    # ---- fold sentence validity (i < sent_nums) into effective lens/align: invalid and
    #      padded sentences get lens=0, align=0 and hence exactly-zero attention
    #      (mirrors valid_src_compress -> recover_src).  Removes sent_nums from the kernel. ----
    sent_valid = jnp.arange(s_num)[None, :] < sent_nums[:, None]
    lens_eff = jnp.where(sent_valid, memory_lengths.astype(jnp.int32), 0)
    align_eff = jnp.where(sent_valid, sent_align_vectors.astype(jnp.float32), 0.0)

    # ---- stream the one big operand in reduced precision (default bf16). ----
    mem = memory_bank.astype(mem_dtype)

    bb, ts, b_pad, s_num_pad = _pick_tiles(
        B, s_num, s_len, D,
        jnp.dtype(mem_dtype).itemsize, jnp.dtype(weight_dtype).itemsize,
        vmem_budget_bytes)

    if b_pad != B or s_num_pad != s_num:
        db, dsn = b_pad - B, s_num_pad - s_num
        mem = jnp.pad(mem, ((0, db), (0, dsn), (0, 0), (0, 0)))
        lens_eff = jnp.pad(lens_eff, ((0, db), (0, dsn)))
        align_eff = jnp.pad(align_eff, ((0, db), (0, dsn)))
        q_proj = jnp.pad(q_proj, ((0, db), (0, 0)))
        h_src = jnp.pad(h_src, ((0, db), (0, 0)))

    # (bb, ts, 1) blocks keep the second-minor dim = ts (multiple of 8 or full) and avoid
    # any dynamic small-array slicing inside the kernel.
    lens3 = lens_eff.reshape(b_pad, s_num_pad, 1)
    align3 = align_eff.reshape(b_pad, s_num_pad, 1)

    grid = (b_pad // bb, s_num_pad // ts)   # (parallel batch tiles, sentence reduction tiles)

    grid_spec = pltpu.PrefetchScalarGridSpec(
        num_scalar_prefetch=0,
        grid=grid,
        in_specs=[
            pl.BlockSpec((bb, D), lambda b, s: (b, 0)),                    # q_proj (resident over s)
            pl.BlockSpec((bb, D), lambda b, s: (b, 0)),                    # h_src  (resident over s)
            pl.BlockSpec((bb, ts, s_len, D), lambda b, s: (b, s, 0, 0)),   # streamed memory bank
            pl.BlockSpec((bb, ts, 1), lambda b, s: (b, s, 0)),             # effective sent_lens
            pl.BlockSpec((bb, ts, 1), lambda b, s: (b, s, 0)),             # effective sent_align
            pl.BlockSpec((D, D), lambda b, s: (0, 0)),                     # W_out context half
        ],
        out_specs=[
            pl.BlockSpec((bb, D), lambda b, s: (b, 0)),                    # attn_h (written at last s)
            pl.BlockSpec((bb, ts, s_len), lambda b, s: (b, s, 0)),         # word attention tile
        ],
        scratch_shapes=[pltpu.VMEM((bb, D), jnp.float32)],                 # ctx accumulator
    )

    cp_kwargs = dict(dimension_semantics=("parallel", "arbitrary"))
    if vmem_limit_bytes is not None:
        cp_kwargs["vmem_limit_bytes"] = int(vmem_limit_bytes)

    vec, attn = pl.pallas_call(
        _word_global_attention_kernel,
        out_shape=(
            jax.ShapeDtypeStruct((b_pad, D), jnp.float32),
            jax.ShapeDtypeStruct((b_pad, s_num_pad, s_len), jnp.float32),
        ),
        grid_spec=grid_spec,
        compiler_params=pltpu.CompilerParams(**cp_kwargs),
    )(q_proj, h_src, mem, lens3, align3, w_out_c_t)

    return vec[:B], attn[:B, :s_num]


def word_global_attention_ref(source, memory_bank, memory_lengths, sent_align_vectors,
                              sent_nums, w_in, w_out):
    """Pure-JAX reference mirroring the PyTorch forward (general / softmax / output_attn_h).
    Score/context contractions are explicit broadcast-multiply + sum (f32) so rounding
    matches the kernel's VPU path; linear layers use precision=HIGHEST."""
    B, s_num, s_len, D = memory_bank.shape
    hi = jax.lax.Precision.HIGHEST
    mem = memory_bank.astype(jnp.float32)
    q_proj = jnp.dot(source, w_in.T, precision=hi)                     # linear_in (no bias)
    word_align = jnp.sum(mem * q_proj[:, None, None, :], axis=-1)      # (B, s_num, s_len)
    word_mask = jnp.arange(s_len)[None, None, :] < memory_lengths[:, :, None]
    sent_mask = jnp.arange(s_num)[None, :, None] < sent_nums[:, None, None]
    valid = word_mask & sent_mask
    masked = jnp.where(valid, word_align, -jnp.inf)
    m = jnp.max(masked, axis=-1, keepdims=True)
    p = jnp.where(valid, jnp.exp(masked - m), 0.0)
    denom = jnp.sum(p, axis=-1, keepdims=True)
    a = p / jnp.where(denom > 0.0, denom, 1.0)        # fully-masked sentence -> zeros
    a = a * sent_align_vectors[:, :, None]
    c = jnp.sum(jnp.sum(a[:, :, :, None] * mem, axis=2), axis=1)       # (B, D)
    concat = jnp.concatenate([c, source], axis=-1)
    attn_h = jnp.tanh(jnp.dot(concat, w_out.T, precision=hi))          # linear_out (no bias)
    return attn_h, a


def _make_inputs(key, B, s_num, s_len, D, mask_invalid=True):
    k1, k2, k3, k4, k5, k6, k7 = jax.random.split(key, 7)
    source = jax.random.normal(k1, (B, D), dtype=jnp.float32)
    memory_bank = jax.random.normal(k2, (B, s_num, s_len, D), dtype=jnp.float32)
    sent_nums = jax.random.randint(k3, (B,), 1, s_num + 1)             # 1..s_num valid sentences
    sent_valid = jnp.arange(s_num)[None, :] < sent_nums[:, None]
    raw_lens = jax.random.randint(k4, (B, s_num), 1, s_len + 1)        # 1..s_len words / sentence
    if mask_invalid:
        memory_lengths = jnp.where(sent_valid, raw_lens, 0).astype(jnp.int32)
        sent_logits = jnp.where(sent_valid, jax.random.normal(k5, (B, s_num)), -jnp.inf)
    else:
        # garbage lens / align on invalid sentences: the module must still zero them.
        memory_lengths = raw_lens.astype(jnp.int32)
        sent_logits = jax.random.normal(k5, (B, s_num))
    sent_align = jax.nn.softmax(sent_logits, axis=-1).astype(jnp.float32)
    w_in = jax.random.normal(k6, (D, D), dtype=jnp.float32) / jnp.sqrt(D)
    w_out = jax.random.normal(k7, (D, 2 * D), dtype=jnp.float32) / jnp.sqrt(2.0 * D)
    return source, memory_bank, memory_lengths, sent_align, sent_nums, w_in, w_out


if __name__ == "__main__":
    # Small shapes, but large enough to exercise batch tiling (bb=8, 2 batch tiles),
    # the sentence reduction axis (ts=8 -> 3 sentence steps) and sentence padding (20 -> 24).
    B, s_num, s_len, D = 16, 20, 8, 64
    key = jax.random.PRNGKey(0)
    args = _make_inputs(key, B, s_num, s_len, D, mask_invalid=True)
    source, memory_bank, memory_lengths, sent_align, sent_nums, w_in, w_out = args

    # ---- Config A: all-f32 path (strict check of the kernel math). ----
    fwd_f32 = jax.jit(functools.partial(
        word_global_attention, mem_dtype=jnp.float32, weight_dtype=jnp.float32))
    vec_a, attn_a = fwd_f32(*args)
    jax.block_until_ready((vec_a, attn_a))
    vec_r, attn_r = word_global_attention_ref(*args)
    np.testing.assert_allclose(np.asarray(vec_a), np.asarray(vec_r), rtol=1e-4, atol=1e-5)
    np.testing.assert_allclose(np.asarray(attn_a), np.asarray(attn_r), rtol=1e-4, atol=1e-5)

    # ---- Config B: default production config (bf16 streaming + bf16 MXU weight). ----
    fwd = jax.jit(word_global_attention)
    vec_b, attn_b = fwd(*args)
    jax.block_until_ready((vec_b, attn_b))
    # Reference run on the bf16-rounded memory bank (the values the kernel streams); the
    # remaining vec difference is the documented bf16 projection-weight/ctx rounding.
    mem_rounded = memory_bank.astype(jnp.bfloat16).astype(jnp.float32)
    vec_rb, attn_rb = word_global_attention_ref(
        source, mem_rounded, memory_lengths, sent_align, sent_nums, w_in, w_out)
    np.testing.assert_allclose(np.asarray(attn_b), np.asarray(attn_rb), rtol=1e-4, atol=1e-5)
    np.testing.assert_allclose(np.asarray(vec_b), np.asarray(vec_rb), rtol=5e-3, atol=5e-3)

    # ---- Config C: tiny shapes (B < 8, ts == s_num, grid (1,1)) with un-zeroed lens/align
    #      on invalid sentences, exercising the sent_nums masking path. ----
    Bc, snc, slc, Dc = 4, 3, 8, 64
    args_c = _make_inputs(jax.random.PRNGKey(0), Bc, snc, slc, Dc, mask_invalid=False)
    fwd_c = jax.jit(functools.partial(
        word_global_attention, mem_dtype=jnp.float32, weight_dtype=jnp.float32))
    vec_c, attn_c = fwd_c(*args_c)
    jax.block_until_ready((vec_c, attn_c))
    vec_cr, attn_cr = word_global_attention_ref(*args_c)
    np.testing.assert_allclose(np.asarray(vec_c), np.asarray(vec_cr), rtol=1e-4, atol=1e-5)
    np.testing.assert_allclose(np.asarray(attn_c), np.asarray(attn_cr), rtol=1e-4, atol=1e-5)

    # TODO(synk): attn_type in {dot, mlp}, attn_func='sparsemax', the coverage term, and
    # the output_attn_h=False (raw context) path are not implemented in the kernel.
    print("KERNEL_OK")
</pallas_src>

<mosaic_0001>
module attributes {stable_mosaic.version = 11 : i64} {
  func.func @_word_global_attention_kernel(%arg0: i32, %arg1: i32, %arg2: memref<8x64xf32, #tpu.memory_space<vmem>>, %arg3: memref<8x64xf32, #tpu.memory_space<vmem>>, %arg4: memref<8x8x8x64xf32, #tpu.memory_space<vmem>>, %arg5: memref<8x8x1xi32, #tpu.memory_space<vmem>>, %arg6: memref<8x8x1xf32, #tpu.memory_space<vmem>>, %arg7: memref<64x64xf32, #tpu.memory_space<vmem>>, %arg8: memref<8x64xf32, #tpu.memory_space<vmem>>, %arg9: memref<8x8x8xf32, #tpu.memory_space<vmem>>, %arg10: memref<8x64xf32, #tpu.memory_space<vmem>>) attributes {dimension_semantics = [#tpu.dimension_semantics<parallel>, #tpu.dimension_semantics<arbitrary>], iteration_bounds = array<i64: 2, 3>, scalar_prefetch = 0 : i64, scratch_operands = 1 : i64, tpu.core_type = #tpu.core_type<tc>, window_params = [{transform_indices = @transform_0, window_bounds = array<i64: 8, 64>}, {transform_indices = @transform_1, window_bounds = array<i64: 8, 64>}, {transform_indices = @transform_2, window_bounds = array<i64: 8, 8, 8, 64>}, {transform_indices = @transform_3, window_bounds = array<i64: 8, 8, 1>}, {transform_indices = @transform_4, window_bounds = array<i64: 8, 8, 1>}, {pipeline_mode = #tpu.pipeline_mode<synchronous>, transform_indices = @transform_5, window_bounds = array<i64: 64, 64>}, {transform_indices = @transform_6, window_bounds = array<i64: 8, 64>}, {transform_indices = @transform_7, window_bounds = array<i64: 8, 8, 8>}]} {
    %c0_i32 = arith.constant 0 : i32
    %0 = arith.cmpi eq, %arg1, %c0_i32 : i32
    %1 = arith.extui %0 : i1 to i32
    %c0_i32_0 = arith.constant 0 : i32
    %2 = arith.cmpi ne, %1, %c0_i32_0 : i32
    scf.if %2 {
      %cst_203 = arith.constant 0.000000e+00 : f32
      %361 = vector.broadcast %cst_203 : f32 to vector<8x64xf32>
      %c0_204 = arith.constant 0 : index
      %c0_205 = arith.constant 0 : index
      %362 = vector.load %arg10[%c0_204, %c0_205] : memref<8x64xf32, #tpu.memory_space<vmem>>, vector<8x64xf32>
      tpu.vector_store %arg10[%c0_204, %c0_205], %361 {strides = array<i32>} : memref<8x64xf32, #tpu.memory_space<vmem>>, vector<8x64xf32>,
    } else {
    }
    %c0 = arith.constant 0 : index
    %c0_1 = arith.constant 0 : index
    %3 = vector.load %arg2[%c0, %c0_1] : memref<8x64xf32, #tpu.memory_space<vmem>>, vector<8x64xf32>
    %4 = vector.shape_cast %3 : vector<8x64xf32> to vector<8x1x64xf32>
    %5 = tpu.iota {dimensions = array<i32: 1>} : vector<8x8xi32>
    %c0_2 = arith.constant 0 : index
    %c0_3 = arith.constant 0 : index
    %c0_4 = arith.constant 0 : index
    %c0_5 = arith.constant 0 : index
    %6 = vector.load %arg4[%c0_2, %c0_3, %c0_4, %c0_5] : memref<8x8x8x64xf32, #tpu.memory_space<vmem>>, vector<8x1x8x64xf32>
    %7 = vector.shape_cast %6 : vector<8x1x8x64xf32> to vector<8x8x64xf32>
    %8 = vector.broadcast %4 : vector<8x1x64xf32> to vector<8x8x64xf32>
    %9 = arith.mulf %7, %8 : vector<8x8x64xf32>
    %cst = arith.constant dense<0.000000e+00> : vector<8x8xf32>
    %10 = vector.multi_reduction <add>, %9, %cst [2] : vector<8x8x64xf32> to vector<8x8xf32>
    %c0_6 = arith.constant 0 : index
    %c0_7 = arith.constant 0 : index
    %c0_8 = arith.constant 0 : index
    %11 = vector.load %arg5[%c0_6, %c0_7, %c0_8] : memref<8x8x1xi32, #tpu.memory_space<vmem>>, vector<8x1x1xi32>
    %12 = vector.shape_cast %11 : vector<8x1x1xi32> to vector<8x1xi32>
    %13 = vector.broadcast %12 : vector<8x1xi32> to vector<8x8xi32>
    %14 = arith.cmpi slt, %5, %13 : vector<8x8xi32>
    %cst_9 = arith.constant -3.40282347E+38 : f32
    %15 = vector.broadcast %cst_9 : f32 to vector<8x8xf32>
    %16 = arith.select %14, %10, %15 : vector<8x8xi1>, vector<8x8xf32>
    %cst_10 = arith.constant dense<0xFF800000> : vector<8xf32>
    %17 = vector.multi_reduction <maximumf>, %16, %cst_10 [1] : vector<8x8xf32> to vector<8xf32>
    %18 = vector.shape_cast %17 : vector<8xf32> to vector<8x1xf32>
    %19 = vector.broadcast %18 : vector<8x1xf32> to vector<8x8xf32>
    %20 = arith.subf %16, %19 : vector<8x8xf32>
    %21 = math.exp %20 : vector<8x8xf32>
    %cst_11 = arith.constant 0.000000e+00 : f32
    %22 = vector.broadcast %cst_11 : f32 to vector<8x8xf32>
    %23 = arith.select %14, %21, %22 : vector<8x8xi1>, vector<8x8xf32>
    %cst_12 = arith.constant dense<0.000000e+00> : vector<8xf32>
    %24 = vector.multi_reduction <add>, %23, %cst_12 [1] : vector<8x8xf32> to vector<8xf32>
    %25 = vector.shape_cast %24 : vector<8xf32> to vector<8x1xf32>
    %cst_13 = arith.constant 0.000000e+00 : f32
    %26 = vector.broadcast %cst_13 : f32 to vector<8x1xf32>
    %27 = arith.cmpf ogt, %25, %26 : vector<8x1xf32>
    %cst_14 = arith.constant 1.000000e+00 : f32
    %28 = vector.broadcast %cst_14 : f32 to vector<8x1xf32>
    %29 = arith.select %27, %25, %28 : vector<8x1xi1>, vector<8x1xf32>
    %30 = tpu.reciprocal %29 {approx = true} : vector<8x1xf32> -> vector<8x1xf32>
    %31 = arith.mulf %29, %30 : vector<8x1xf32>
    %cst_15 = arith.constant 2.000000e+00 : f32
    %32 = vector.broadcast %cst_15 : f32 to vector<8x1xf32>
    %33 = arith.subf %32, %31 : vector<8x1xf32>
    %34 = arith.mulf %30, %33 : vector<8x1xf32>
    %c0_16 = arith.constant 0 : index
    %c0_17 = arith.constant 0 : index
    %c0_18 = arith.constant 0 : index
    %35 = vector.load %arg6[%c0_16, %c0_17, %c0_18] : memref<8x8x1xf32, #tpu.memory_space<vmem>>, vector<8x1x1xf32>
    %36 = vector.shape_cast %35 : vector<8x1x1xf32> to vector<8x1xf32>
    %37 = arith.mulf %34, %36 : vector<8x1xf32>
    %38 = vector.broadcast %37 : vector<8x1xf32> to vector<8x8xf32>
    %39 = arith.mulf %23, %38 : vector<8x8xf32>
    %c0_19 = arith.constant 0 : index
    %c0_20 = arith.constant 0 : index
    %c0_21 = arith.constant 0 : index
    %40 = vector.load %arg9[%c0_19, %c0_20, %c0_21] : memref<8x8x8xf32, #tpu.memory_space<vmem>>, vector<8x1x8xf32>
    %41 = vector.shape_cast %40 : vector<8x1x8xf32> to vector<8x8xf32>
    %42 = vector.shape_cast %39 : vector<8x8xf32> to vector<8x1x8xf32>
    tpu.vector_store %arg9[%c0_19, %c0_20, %c0_21], %42 {strides = array<i32>} : memref<8x8x8xf32, #tpu.memory_space<vmem>>, vector<8x1x8xf32>,
    %c0_22 = arith.constant 0 : index
    %c0_23 = arith.constant 0 : index
    %43 = vector.load %arg10[%c0_22, %c0_23] : memref<8x64xf32, #tpu.memory_space<vmem>>, vector<8x64xf32>
    %44 = vector.shape_cast %39 : vector<8x8xf32> to vector<8x8x1xf32>
    %45 = vector.broadcast %44 : vector<8x8x1xf32> to vector<8x8x64xf32>
    %46 = arith.mulf %45, %7 : vector<8x8x64xf32>
    %cst_24 = arith.constant dense<0.000000e+00> : vector<8x64xf32>
    %47 = vector.multi_reduction <add>, %46, %cst_24 [1] : vector<8x8x64xf32> to vector<8x64xf32>
    %48 = arith.addf %43, %47 : vector<8x64xf32>
    %c0_25 = arith.constant 0 : index
    %c0_26 = arith.constant 0 : index
    %49 = vector.load %arg10[%c0_25, %c0_26] : memref<8x64xf32, #tpu.memory_space<vmem>>, vector<8x64xf32>
    tpu.vector_store %arg10[%c0_25, %c0_26], %48 {strides = array<i32>} : memref<8x64xf32, #tpu.memory_space<vmem>>, vector<8x64xf32>,
    %c0_27 = arith.constant 0 : index
    %c1 = arith.constant 1 : index
    %c0_28 = arith.constant 0 : index
    %c0_29 = arith.constant 0 : index
    %50 = vector.load %arg4[%c0_27, %c1, %c0_28, %c0_29] : memref<8x8x8x64xf32, #tpu.memory_space<vmem>>, vector<8x1x8x64xf32>
    %51 = vector.shape_cast %50 : vector<8x1x8x64xf32> to vector<8x8x64xf32>
    %52 = vector.broadcast %4 : vector<8x1x64xf32> to vector<8x8x64xf32>
    %53 = arith.mulf %51, %52 : vector<8x8x64xf32>
    %cst_30 = arith.constant dense<0.000000e+00> : vector<8x8xf32>
    %54 = vector.multi_reduction <add>, %53, %cst_30 [2] : vector<8x8x64xf32> to vector<8x8xf32>
    %c0_31 = arith.constant 0 : index
    %c1_32 = arith.constant 1 : index
    %c0_33 = arith.constant 0 : index
    %55 = vector.load %arg5[%c0_31, %c1_32, %c0_33] : memref<8x8x1xi32, #tpu.memory_space<vmem>>, vector<8x1x1xi32>
    %56 = vector.shape_cast %55 : vector<8x1x1xi32> to vector<8x1xi32>
    %57 = vector.broadcast %56 : vector<8x1xi32> to vector<8x8xi32>
    %58 = arith.cmpi slt, %5, %57 : vector<8x8xi32>
    %cst_34 = arith.constant -3.40282347E+38 : f32
    %59 = vector.broadcast %cst_34 : f32 to vector<8x8xf32>
    %60 = arith.select %58, %54, %59 : vector<8x8xi1>, vector<8x8xf32>
    %cst_35 = arith.constant dense<0xFF800000> : vector<8xf32>
    %61 = vector.multi_reduction <maximumf>, %60, %cst_35 [1] : vector<8x8xf32> to vector<8xf32>
    %62 = vector.shape_cast %61 : vector<8xf32> to vector<8x1xf32>
    %63 = vector.broadcast %62 : vector<8x1xf32> to vector<8x8xf32>
    %64 = arith.subf %60, %63 : vector<8x8xf32>
    %65 = math.exp %64 : vector<8x8xf32>
    %cst_36 = arith.constant 0.000000e+00 : f32
    %66 = vector.broadcast %cst_36 : f32 to vector<8x8xf32>
    %67 = arith.select %58, %65, %66 : vector<8x8xi1>, vector<8x8xf32>
    %cst_37 = arith.constant dense<0.000000e+00> : vector<8xf32>
    %68 = vector.multi_reduction <add>, %67, %cst_37 [1] : vector<8x8xf32> to vector<8xf32>
    %69 = vector.shape_cast %68 : vector<8xf32> to vector<8x1xf32>
    %cst_38 = arith.constant 0.000000e+00 : f32
    %70 = vector.broadcast %cst_38 : f32 to vector<8x1xf32>
    %71 = arith.cmpf ogt, %69, %70 : vector<8x1xf32>
    %cst_39 = arith.constant 1.000000e+00 : f32
    %72 = vector.broadcast %cst_39 : f32 to vector<8x1xf32>
    %73 = arith.select %71, %69, %72 : vector<8x1xi1>, vector<8x1xf32>
    %74 = tpu.reciprocal %73 {approx = true} : vector<8x1xf32> -> vector<8x1xf32>
    %75 = arith.mulf %73, %74 : vector<8x1xf32>
    %cst_40 = arith.constant 2.000000e+00 : f32
    %76 = vector.broadcast %cst_40 : f32 to vector<8x1xf32>
    %77 = arith.subf %76, %75 : vector<8x1xf32>
    %78 = arith.mulf %74, %77 : vector<8x1xf32>
    %c0_41 = arith.constant 0 : index
    %c1_42 = arith.constant 1 : index
    %c0_43 = arith.constant 0 : index
    %79 = vector.load %arg6[%c0_41, %c1_42, %c0_43] : memref<8x8x1xf32, #tpu.memory_space<vmem>>, vector<8x1x1xf32>
    %80 = vector.shape_cast %79 : vector<8x1x1xf32> to vector<8x1xf32>
    %81 = arith.mulf %78, %80 : vector<8x1xf32>
    %82 = vector.broadcast %81 : vector<8x1xf32> to vector<8x8xf32>
    %83 = arith.mulf %67, %82 : vector<8x8xf32>
    %c0_44 = arith.constant 0 : index
    %c1_45 = arith.constant 1 : index
    %c0_46 = arith.constant 0 : index
    %84 = vector.load %arg9[%c0_44, %c1_45, %c0_46] : memref<8x8x8xf32, #tpu.memory_space<vmem>>, vector<8x1x8xf32>
    %85 = vector.shape_cast %84 : vector<8x1x8xf32> to vector<8x8xf32>
    %86 = vector.shape_cast %83 : vector<8x8xf32> to vector<8x1x8xf32>
    tpu.vector_store %arg9[%c0_44, %c1_45, %c0_46], %86 {strides = array<i32>} : memref<8x8x8xf32, #tpu.memory_space<vmem>>, vector<8x1x8xf32>,
    %c0_47 = arith.constant 0 : index
    %c0_48 = arith.constant 0 : index
    %87 = vector.load %arg10[%c0_47, %c0_48] : memref<8x64xf32, #tpu.memory_space<vmem>>, vector<8x64xf32>
    %88 = vector.shape_cast %83 : vector<8x8xf32> to vector<8x8x1xf32>
    %89 = vector.broadcast %88 : vector<8x8x1xf32> to vector<8x8x64xf32>
    %90 = arith.mulf %89, %51 : vector<8x8x64xf32>
    %cst_49 = arith.constant dense<0.000000e+00> : vector<8x64xf32>
    %91 = vector.multi_reduction <add>, %90, %cst_49 [1] : vector<8x8x64xf32> to vector<8x64xf32>
    %92 = arith.addf %87, %91 : vector<8x64xf32>
    %c0_50 = arith.constant 0 : index
    %c0_51 = arith.constant 0 : index
    %93 = vector.load %arg10[%c0_50, %c0_51] : memref<8x64xf32, #tpu.memory_space<vmem>>, vector<8x64xf32>
    tpu.vector_store %arg10[%c0_50, %c0_51], %92 {strides = array<i32>} : memref<8x64xf32, #tpu.memory_space<vmem>>, vector<8x64xf32>,
    %c0_52 = arith.constant 0 : index
    %c2 = arith.constant 2 : index
    %c0_53 = arith.constant 0 : index
    %c0_54 = arith.constant 0 : index
    %94 = vector.load %arg4[%c0_52, %c2, %c0_53, %c0_54] : memref<8x8x8x64xf32, #tpu.memory_space<vmem>>, vector<8x1x8x64xf32>
    %95 = vector.shape_cast %94 : vector<8x1x8x64xf32> to vector<8x8x64xf32>
    %96 = vector.broadcast %4 : vector<8x1x64xf32> to vector<8x8x64xf32>
    %97 = arith.mulf %95, %96 : vector<8x8x64xf32>
    %cst_55 = arith.constant dense<0.000000e+00> : vector<8x8xf32>
    %98 = vector.multi_reduction <add>, %97, %cst_55 [2] : vector<8x8x64xf32> to vector<8x8xf32>
    %c0_56 = arith.constant 0 : index
    %c2_57 = arith.constant 2 : index
    %c0_58 = arith.constant 0 : index
    %99 = vector.load %arg5[%c0_56, %c2_57, %c0_58] : memref<8x8x1xi32, #tpu.memory_space<vmem>>, vector<8x1x1xi32>
    %100 = vector.shape_cast %99 : vector<8x1x1xi32> to vector<8x1xi32>
    %101 = vector.broadcast %100 : vector<8x1xi32> to vector<8x8xi32>
    %102 = arith.cmpi slt, %5, %101 : vector<8x8xi32>
    %cst_59 = arith.constant -3.40282347E+38 : f32
    %103 = vector.broadcast %cst_59 : f32 to vector<8x8xf32>
    %104 = arith.select %102, %98, %103 : vector<8x8xi1>, vector<8x8xf32>
    %cst_60 = arith.constant dense<0xFF800000> : vector<8xf32>
    %105 = vector.multi_reduction <maximumf>, %104, %cst_60 [1] : vector<8x8xf32> to vector<8xf32>
    %106 = vector.shape_cast %105 : vector<8xf32> to vector<8x1xf32>
    %107 = vector.broadcast %106 : vector<8x1xf32> to vector<8x8xf32>
    %108 = arith.subf %104, %107 : vector<8x8xf32>
    %109 = math.exp %108 : vector<8x8xf32>
    %cst_61 = arith.constant 0.000000e+00 : f32
    %110 = vector.broadcast %cst_61 : f32 to vector<8x8xf32>
    %111 = arith.select %102, %109, %110 : vector<8x8xi1>, vector<8x8xf32>
    %cst_62 = arith.constant dense<0.000000e+00> : vector<8xf32>
    %112 = vector.multi_reduction <add>, %111, %cst_62 [1] : vector<8x8xf32> to vector<8xf32>
    %113 = vector.shape_cast %112 : vector<8xf32> to vector<8x1xf32>
    %cst_63 = arith.constant 0.000000e+00 : f32
    %114 = vector.broadcast %cst_63 : f32 to vector<8x1xf32>
    %115 = arith.cmpf ogt, %113, %114 : vector<8x1xf32>
    %cst_64 = arith.constant 1.000000e+00 : f32
    %116 = vector.broadcast %cst_64 : f32 to vector<8x1xf32>
    %117 = arith.select %115, %113, %116 : vector<8x1xi1>, vector<8x1xf32>
    %118 = tpu.reciprocal %117 {approx = true} : vector<8x1xf32> -> vector<8x1xf32>
    %119 = arith.mulf %117, %118 : vector<8x1xf32>
    %cst_65 = arith.constant 2.000000e+00 : f32
    %120 = vector.broadcast %cst_65 : f32 to vector<8x1xf32>
    %121 = arith.subf %120, %119 : vector<8x1xf32>
    %122 = arith.mulf %118, %121 : vector<8x1xf32>
    %c0_66 = arith.constant 0 : index
    %c2_67 = arith.constant 2 : index
    %c0_68 = arith.constant 0 : index
    %123 = vector.load %arg6[%c0_66, %c2_67, %c0_68] : memref<8x8x1xf32, #tpu.memory_space<vmem>>, vector<8x1x1xf32>
    %124 = vector.shape_cast %123 : vector<8x1x1xf32> to vector<8x1xf32>
    %125 = arith.mulf %122, %124 : vector<8x1xf32>
    %126 = vector.broadcast %125 : vector<8x1xf32> to vector<8x8xf32>
    %127 = arith.mulf %111, %126 : vector<8x8xf32>
    %c0_69 = arith.constant 0 : index
    %c2_70 = arith.constant 2 : index
    %c0_71 = arith.constant 0 : index
    %128 = vector.load %arg9[%c0_69, %c2_70, %c0_71] : memref<8x8x8xf32, #tpu.memory_space<vmem>>, vector<8x1x8xf32>
    %129 = vector.shape_cast %128 : vector<8x1x8xf32> to vector<8x8xf32>
    %130 = vector.shape_cast %127 : vector<8x8xf32> to vector<8x1x8xf32>
    tpu.vector_store %arg9[%c0_69, %c2_70, %c0_71], %130 {strides = array<i32>} : memref<8x8x8xf32, #tpu.memory_space<vmem>>, vector<8x1x8xf32>,
    %c0_72 = arith.constant 0 : index
    %c0_73 = arith.constant 0 : index
    %131 = vector.load %arg10[%c0_72, %c0_73] : memref<8x64xf32, #tpu.memory_space<vmem>>, vector<8x64xf32>
    %132 = vector.shape_cast %127 : vector<8x8xf32> to vector<8x8x1xf32>
    %133 = vector.broadcast %132 : vector<8x8x1xf32> to vector<8x8x64xf32>
    %134 = arith.mulf %133, %95 : vector<8x8x64xf32>
    %cst_74 = arith.constant dense<0.000000e+00> : vector<8x64xf32>
    %135 = vector.multi_reduction <add>, %134, %cst_74 [1] : vector<8x8x64xf32> to vector<8x64xf32>
    %136 = arith.addf %131, %135 : vector<8x64xf32>
    %c0_75 = arith.constant 0 : index
    %c0_76 = arith.constant 0 : index
    %137 = vector.load %arg10[%c0_75, %c0_76] : memref<8x64xf32, #tpu.memory_space<vmem>>, vector<8x64xf32>
    tpu.vector_store %arg10[%c0_75, %c0_76], %136 {strides = array<i32>} : memref<8x64xf32, #tpu.memory_space<vmem>>, vector<8x64xf32>,
    %c0_77 = arith.constant 0 : index
    %c3 = arith.constant 3 : index
    %c0_78 = arith.constant 0 : index
    %c0_79 = arith.constant 0 : index
    %138 = vector.load %arg4[%c0_77, %c3, %c0_78, %c0_79] : memref<8x8x8x64xf32, #tpu.memory_space<vmem>>, vector<8x1x8x64xf32>
    %139 = vector.shape_cast %138 : vector<8x1x8x64xf32> to vector<8x8x64xf32>
    %140 = vector.broadcast %4 : vector<8x1x64xf32> to vector<8x8x64xf32>
    %141 = arith.mulf %139, %140 : vector<8x8x64xf32>
    %cst_80 = arith.constant dense<0.000000e+00> : vector<8x8xf32>
    %142 = vector.multi_reduction <add>, %141, %cst_80 [2] : vector<8x8x64xf32> to vector<8x8xf32>
    %c0_81 = arith.constant 0 : index
    %c3_82 = arith.constant 3 : index
    %c0_83 = arith.constant 0 : index
    %143 = vector.load %arg5[%c0_81, %c3_82, %c0_83] : memref<8x8x1xi32, #tpu.memory_space<vmem>>, vector<8x1x1xi32>
    %144 = vector.shape_cast %143 : vector<8x1x1xi32> to vector<8x1xi32>
    %145 = vector.broadcast %144 : vector<8x1xi32> to vector<8x8xi32>
    %146 = arith.cmpi slt, %5, %145 : vector<8x8xi32>
    %cst_84 = arith.constant -3.40282347E+38 : f32
    %147 = vector.broadcast %cst_84 : f32 to vector<8x8xf32>
    %148 = arith.select %146, %142, %147 : vector<8x8xi1>, vector<8x8xf32>
    %cst_85 = arith.constant dense<0xFF800000> : vector<8xf32>
    %149 = vector.multi_reduction <maximumf>, %148, %cst_85 [1] : vector<8x8xf32> to vector<8xf32>
    %150 = vector.shape_cast %149 : vector<8xf32> to vector<8x1xf32>
    %151 = vector.broadcast %150 : vector<8x1xf32> to vector<8x8xf32>
    %152 = arith.subf %148, %151 : vector<8x8xf32>
    %153 = math.exp %152 : vector<8x8xf32>
    %cst_86 = arith.constant 0.000000e+00 : f32
    %154 = vector.broadcast %cst_86 : f32 to vector<8x8xf32>
    %155 = arith.select %146, %153, %154 : vector<8x8xi1>, vector<8x8xf32>
    %cst_87 = arith.constant dense<0.000000e+00> : vector<8xf32>
    %156 = vector.multi_reduction <add>, %155, %cst_87 [1] : vector<8x8xf32> to vector<8xf32>
    %157 = vector.shape_cast %156 : vector<8xf32> to vector<8x1xf32>
    %cst_88 = arith.constant 0.000000e+00 : f32
    %158 = vector.broadcast %cst_88 : f32 to vector<8x1xf32>
    %159 = arith.cmpf ogt, %157, %158 : vector<8x1xf32>
    %cst_89 = arith.constant 1.000000e+00 : f32
    %160 = vector.broadcast %cst_89 : f32 to vector<8x1xf32>
    %161 = arith.select %159, %157, %160 : vector<8x1xi1>, vector<8x1xf32>
    %162 = tpu.reciprocal %161 {approx = true} : vector<8x1xf32> -> vector<8x1xf32>
    %163 = arith.mulf %161, %162 : vector<8x1xf32>
    %cst_90 = arith.constant 2.000000e+00 : f32
    %164 = vector.broadcast %cst_90 : f32 to vector<8x1xf32>
    %165 = arith.subf %164, %163 : vector<8x1xf32>
    %166 = arith.mulf %162, %165 : vector<8x1xf32>
    %c0_91 = arith.constant 0 : index
    %c3_92 = arith.constant 3 : index
    %c0_93 = arith.constant 0 : index
    %167 = vector.load %arg6[%c0_91, %c3_92, %c0_93] : memref<8x8x1xf32, #tpu.memory_space<vmem>>, vector<8x1x1xf32>
    %168 = vector.shape_cast %167 : vector<8x1x1xf32> to vector<8x1xf32>
    %169 = arith.mulf %166, %168 : vector<8x1xf32>
    %170 = vector.broadcast %169 : vector<8x1xf32> to vector<8x8xf32>
    %171 = arith.mulf %155, %170 : vector<8x8xf32>
    %c0_94 = arith.constant 0 : index
    %c3_95 = arith.constant 3 : index
    %c0_96 = arith.constant 0 : index
    %172 = vector.load %arg9[%c0_94, %c3_95, %c0_96] : memref<8x8x8xf32, #tpu.memory_space<vmem>>, vector<8x1x8xf32>
    %173 = vector.shape_cast %172 : vector<8x1x8xf32> to vector<8x8xf32>
    %174 = vector.shape_cast %171 : vector<8x8xf32> to vector<8x1x8xf32>
    tpu.vector_store %arg9[%c0_94, %c3_95, %c0_96], %174 {strides = array<i32>} : memref<8x8x8xf32, #tpu.memory_space<vmem>>, vector<8x1x8xf32>,
    %c0_97 = arith.constant 0 : index
    %c0_98 = arith.constant 0 : index
    %175 = vector.load %arg10[%c0_97, %c0_98] : memref<8x64xf32, #tpu.memory_space<vmem>>, vector<8x64xf32>
    %176 = vector.shape_cast %171 : vector<8x8xf32> to vector<8x8x1xf32>
    %177 = vector.broadcast %176 : vector<8x8x1xf32> to vector<8x8x64xf32>
    %178 = arith.mulf %177, %139 : vector<8x8x64xf32>
    %cst_99 = arith.constant dense<0.000000e+00> : vector<8x64xf32>
    %179 = vector.multi_reduction <add>, %178, %cst_99 [1] : vector<8x8x64xf32> to vector<8x64xf32>
    %180 = arith.addf %175, %179 : vector<8x64xf32>
    %c0_100 = arith.constant 0 : index
    %c0_101 = arith.constant 0 : index
    %181 = vector.load %arg10[%c0_100, %c0_101] : memref<8x64xf32, #tpu.memory_space<vmem>>, vector<8x64xf32>
    tpu.vector_store %arg10[%c0_100, %c0_101], %180 {strides = array<i32>} : memref<8x64xf32, #tpu.memory_space<vmem>>, vector<8x64xf32>,
    %c0_102 = arith.constant 0 : index
    %c4 = arith.constant 4 : index
    %c0_103 = arith.constant 0 : index
    %c0_104 = arith.constant 0 : index
    %182 = vector.load %arg4[%c0_102, %c4, %c0_103, %c0_104] : memref<8x8x8x64xf32, #tpu.memory_space<vmem>>, vector<8x1x8x64xf32>
    %183 = vector.shape_cast %182 : vector<8x1x8x64xf32> to vector<8x8x64xf32>
    %184 = vector.broadcast %4 : vector<8x1x64xf32> to vector<8x8x64xf32>
    %185 = arith.mulf %183, %184 : vector<8x8x64xf32>
    %cst_105 = arith.constant dense<0.000000e+00> : vector<8x8xf32>
    %186 = vector.multi_reduction <add>, %185, %cst_105 [2] : vector<8x8x64xf32> to vector<8x8xf32>
    %c0_106 = arith.constant 0 : index
    %c4_107 = arith.constant 4 : index
    %c0_108 = arith.constant 0 : index
    %187 = vector.load %arg5[%c0_106, %c4_107, %c0_108] : memref<8x8x1xi32, #tpu.memory_space<vmem>>, vector<8x1x1xi32>
    %188 = vector.shape_cast %187 : vector<8x1x1xi32> to vector<8x1xi32>
    %189 = vector.broadcast %188 : vector<8x1xi32> to vector<8x8xi32>
    %190 = arith.cmpi slt, %5, %189 : vector<8x8xi32>
    %cst_109 = arith.constant -3.40282347E+38 : f32
    %191 = vector.broadcast %cst_109 : f32 to vector<8x8xf32>
    %192 = arith.select %190, %186, %191 : vector<8x8xi1>, vector<8x8xf32>
    %cst_110 = arith.constant dense<0xFF800000> : vector<8xf32>
    %193 = vector.multi_reduction <maximumf>, %192, %cst_110 [1] : vector<8x8xf32> to vector<8xf32>
    %194 = vector.shape_cast %193 : vector<8xf32> to vector<8x1xf32>
    %195 = vector.broadcast %194 : vector<8x1xf32> to vector<8x8xf32>
    %196 = arith.subf %192, %195 : vector<8x8xf32>
    %197 = math.exp %196 : vector<8x8xf32>
    %cst_111 = arith.constant 0.000000e+00 : f32
    %198 = vector.broadcast %cst_111 : f32 to vector<8x8xf32>
    %199 = arith.select %190, %197, %198 : vector<8x8xi1>, vector<8x8xf32>
    %cst_112 = arith.constant dense<0.000000e+00> : vector<8xf32>
    %200 = vector.multi_reduction <add>, %199, %cst_112 [1] : vector<8x8xf32> to vector<8xf32>
    %201 = vector.shape_cast %200 : vector<8xf32> to vector<8x1xf32>
    %cst_113 = arith.constant 0.000000e+00 : f32
    %202 = vector.broadcast %cst_113 : f32 to vector<8x1xf32>
    %203 = arith.cmpf ogt, %201, %202 : vector<8x1xf32>
    %cst_114 = arith.constant 1.000000e+00 : f32
    %204 = vector.broadcast %cst_114 : f32 to vector<8x1xf32>
    %205 = arith.select %203, %201, %204 : vector<8x1xi1>, vector<8x1xf32>
    %206 = tpu.reciprocal %205 {approx = true} : vector<8x1xf32> -> vector<8x1xf32>
    %207 = arith.mulf %205, %206 : vector<8x1xf32>
    %cst_115 = arith.constant 2.000000e+00 : f32
    %208 = vector.broadcast %cst_115 : f32 to vector<8x1xf32>
    %209 = arith.subf %208, %207 : vector<8x1xf32>
    %210 = arith.mulf %206, %209 : vector<8x1xf32>
    %c0_116 = arith.constant 0 : index
    %c4_117 = arith.constant 4 : index
    %c0_118 = arith.constant 0 : index
    %211 = vector.load %arg6[%c0_116, %c4_117, %c0_118] : memref<8x8x1xf32, #tpu.memory_space<vmem>>, vector<8x1x1xf32>
    %212 = vector.shape_cast %211 : vector<8x1x1xf32> to vector<8x1xf32>
    %213 = arith.mulf %210, %212 : vector<8x1xf32>
    %214 = vector.broadcast %213 : vector<8x1xf32> to vector<8x8xf32>
    %215 = arith.mulf %199, %214 : vector<8x8xf32>
    %c0_119 = arith.constant 0 : index
    %c4_120 = arith.constant 4 : index
    %c0_121 = arith.constant 0 : index
    %216 = vector.load %arg9[%c0_119, %c4_120, %c0_121] : memref<8x8x8xf32, #tpu.memory_space<vmem>>, vector<8x1x8xf32>
    %217 = vector.shape_cast %216 : vector<8x1x8xf32> to vector<8x8xf32>
    %218 = vector.shape_cast %215 : vector<8x8xf32> to vector<8x1x8xf32>
    tpu.vector_store %arg9[%c0_119, %c4_120, %c0_121], %218 {strides = array<i32>} : memref<8x8x8xf32, #tpu.memory_space<vmem>>, vector<8x1x8xf32>,
    %c0_122 = arith.constant 0 : index
    %c0_123 = arith.constant 0 : index
    %219 = vector.load %arg10[%c0_122, %c0_123] : memref<8x64xf32, #tpu.memory_space<vmem>>, vector<8x64xf32>
    %220 = vector.shape_cast %215 : vector<8x8xf32> to vector<8x8x1xf32>
    %221 = vector.broadcast %220 : vector<8x8x1xf32> to vector<8x8x64xf32>
    %222 = arith.mulf %221, %183 : vector<8x8x64xf32>
    %cst_124 = arith.constant dense<0.000000e+00> : vector<8x64xf32>
    %223 = vector.multi_reduction <add>, %222, %cst_124 [1] : vector<8x8x64xf32> to vector<8x64xf32>
    %224 = arith.addf %219, %223 : vector<8x64xf32>
    %c0_125 = arith.constant 0 : index
    %c0_126 = arith.constant 0 : index
    %225 = vector.load %arg10[%c0_125, %c0_126] : memref<8x64xf32, #tpu.memory_space<vmem>>, vector<8x64xf32>
    tpu.vector_store %arg10[%c0_125, %c0_126], %224 {strides = array<i32>} : memref<8x64xf32, #tpu.memory_space<vmem>>, vector<8x64xf32>,
    %c0_127 = arith.constant 0 : index
    %c5 = arith.constant 5 : index
    %c0_128 = arith.constant 0 : index
    %c0_129 = arith.constant 0 : index
    %226 = vector.load %arg4[%c0_127, %c5, %c0_128, %c0_129] : memref<8x8x8x64xf32, #tpu.memory_space<vmem>>, vector<8x1x8x64xf32>
    %227 = vector.shape_cast %226 : vector<8x1x8x64xf32> to vector<8x8x64xf32>
    %228 = vector.broadcast %4 : vector<8x1x64xf32> to vector<8x8x64xf32>
    %229 = arith.mulf %227, %228 : vector<8x8x64xf32>
    %cst_130 = arith.constant dense<0.000000e+00> : vector<8x8xf32>
    %230 = vector.multi_reduction <add>, %229, %cst_130 [2] : vector<8x8x64xf32> to vector<8x8xf32>
    %c0_131 = arith.constant 0 : index
    %c5_132 = arith.constant 5 : index
    %c0_133 = arith.constant 0 : index
    %231 = vector.load %arg5[%c0_131, %c5_132, %c0_133] : memref<8x8x1xi32, #tpu.memory_space<vmem>>, vector<8x1x1xi32>
    %232 = vector.shape_cast %231 : vector<8x1x1xi32> to vector<8x1xi32>
    %233 = vector.broadcast %232 : vector<8x1xi32> to vector<8x8xi32>
    %234 = arith.cmpi slt, %5, %233 : vector<8x8xi32>
    %cst_134 = arith.constant -3.40282347E+38 : f32
    %235 = vector.broadcast %cst_134 : f32 to vector<8x8xf32>
    %236 = arith.select %234, %230, %235 : vector<8x8xi1>, vector<8x8xf32>
    %cst_135 = arith.constant dense<0xFF800000> : vector<8xf32>
    %237 = vector.multi_reduction <maximumf>, %236, %cst_135 [1] : vector<8x8xf32> to vector<8xf32>
    %238 = vector.shape_cast %237 : vector<8xf32> to vector<8x1xf32>
    %239 = vector.broadcast %238 : vector<8x1xf32> to vector<8x8xf32>
    %240 = arith.subf %236, %239 : vector<8x8xf32>
    %241 = math.exp %240 : vector<8x8xf32>
    %cst_136 = arith.constant 0.000000e+00 : f32
    %242 = vector.broadcast %cst_136 : f32 to vector<8x8xf32>
    %243 = arith.select %234, %241, %242 : vector<8x8xi1>, vector<8x8xf32>
    %cst_137 = arith.constant dense<0.000000e+00> : vector<8xf32>
    %244 = vector.multi_reduction <add>, %243, %cst_137 [1] : vector<8x8xf32> to vector<8xf32>
    %245 = vector.shape_cast %244 : vector<8xf32> to vector<8x1xf32>
    %cst_138 = arith.constant 0.000000e+00 : f32
    %246 = vector.broadcast %cst_138 : f32 to vector<8x1xf32>
    %247 = arith.cmpf ogt, %245, %246 : vector<8x1xf32>
    %cst_139 = arith.constant 1.000000e+00 : f32
    %248 = vector.broadcast %cst_139 : f32 to vector<8x1xf32>
    %249 = arith.select %247, %245, %248 : vector<8x1xi1>, vector<8x1xf32>
    %250 = tpu.reciprocal %249 {approx = true} : vector<8x1xf32> -> vector<8x1xf32>
    %251 = arith.mulf %249, %250 : vector<8x1xf32>
    %cst_140 = arith.constant 2.000000e+00 : f32
    %252 = vector.broadcast %cst_140 : f32 to vector<8x1xf32>
    %253 = arith.subf %252, %251 : vector<8x1xf32>
    %254 = arith.mulf %250, %253 : vector<8x1xf32>
    %c0_141 = arith.constant 0 : index
    %c5_142 = arith.constant 5 : index
    %c0_143 = arith.constant 0 : index
    %255 = vector.load %arg6[%c0_141, %c5_142, %c0_143] : memref<8x8x1xf32, #tpu.memory_space<vmem>>, vector<8x1x1xf32>
    %256 = vector.shape_cast %255 : vector<8x1x1xf32> to vector<8x1xf32>
    %257 = arith.mulf %254, %256 : vector<8x1xf32>
    %258 = vector.broadcast %257 : vector<8x1xf32> to vector<8x8xf32>
    %259 = arith.mulf %243, %258 : vector<8x8xf32>
    %c0_144 = arith.constant 0 : index
    %c5_145 = arith.constant 5 : index
    %c0_146 = arith.constant 0 : index
    %260 = vector.load %arg9[%c0_144, %c5_145, %c0_146] : memref<8x8x8xf32, #tpu.memory_space<vmem>>, vector<8x1x8xf32>
    %261 = vector.shape_cast %260 : vector<8x1x8xf32> to vector<8x8xf32>
    %262 = vector.shape_cast %259 : vector<8x8xf32> to vector<8x1x8xf32>
    tpu.vector_store %arg9[%c0_144, %c5_145, %c0_146], %262 {strides = array<i32>} : memref<8x8x8xf32, #tpu.memory_space<vmem>>, vector<8x1x8xf32>,
    %c0_147 = arith.constant 0 : index
    %c0_148 = arith.constant 0 : index
    %263 = vector.load %arg10[%c0_147, %c0_148] : memref<8x64xf32, #tpu.memory_space<vmem>>, vector<8x64xf32>
    %264 = vector.shape_cast %259 : vector<8x8xf32> to vector<8x8x1xf32>
    %265 = vector.broadcast %264 : vector<8x8x1xf32> to vector<8x8x64xf32>
    %266 = arith.mulf %265, %227 : vector<8x8x64xf32>
    %cst_149 = arith.constant dense<0.000000e+00> : vector<8x64xf32>
    %267 = vector.multi_reduction <add>, %266, %cst_149 [1] : vector<8x8x64xf32> to vector<8x64xf32>
    %268 = arith.addf %263, %267 : vector<8x64xf32>
    %c0_150 = arith.constant 0 : index
    %c0_151 = arith.constant 0 : index
    %269 = vector.load %arg10[%c0_150, %c0_151] : memref<8x64xf32, #tpu.memory_space<vmem>>, vector<8x64xf32>
    tpu.vector_store %arg10[%c0_150, %c0_151], %268 {strides = array<i32>} : memref<8x64xf32, #tpu.memory_space<vmem>>, vector<8x64xf32>,
    %c0_152 = arith.constant 0 : index
    %c6 = arith.constant 6 : index
    %c0_153 = arith.constant 0 : index
    %c0_154 = arith.constant 0 : index
    %270 = vector.load %arg4[%c0_152, %c6, %c0_153, %c0_154] : memref<8x8x8x64xf32, #tpu.memory_space<vmem>>, vector<8x1x8x64xf32>
    %271 = vector.shape_cast %270 : vector<8x1x8x64xf32> to vector<8x8x64xf32>
    %272 = vector.broadcast %4 : vector<8x1x64xf32> to vector<8x8x64xf32>
    %273 = arith.mulf %271, %272 : vector<8x8x64xf32>
    %cst_155 = arith.constant dense<0.000000e+00> : vector<8x8xf32>
    %274 = vector.multi_reduction <add>, %273, %cst_155 [2] : vector<8x8x64xf32> to vector<8x8xf32>
    %c0_156 = arith.constant 0 : index
    %c6_157 = arith.constant 6 : index
    %c0_158 = arith.constant 0 : index
    %275 = vector.load %arg5[%c0_156, %c6_157, %c0_158] : memref<8x8x1xi32, #tpu.memory_space<vmem>>, vector<8x1x1xi32>
    %276 = vector.shape_cast %275 : vector<8x1x1xi32> to vector<8x1xi32>
    %277 = vector.broadcast %276 : vector<8x1xi32> to vector<8x8xi32>
    %278 = arith.cmpi slt, %5, %277 : vector<8x8xi32>
    %cst_159 = arith.constant -3.40282347E+38 : f32
    %279 = vector.broadcast %cst_159 : f32 to vector<8x8xf32>
    %280 = arith.select %278, %274, %279 : vector<8x8xi1>, vector<8x8xf32>
    %cst_160 = arith.constant dense<0xFF800000> : vector<8xf32>
    %281 = vector.multi_reduction <maximumf>, %280, %cst_160 [1] : vector<8x8xf32> to vector<8xf32>
    %282 = vector.shape_cast %281 : vector<8xf32> to vector<8x1xf32>
    %283 = vector.broadcast %282 : vector<8x1xf32> to vector<8x8xf32>
    %284 = arith.subf %280, %283 : vector<8x8xf32>
    %285 = math.exp %284 : vector<8x8xf32>
    %cst_161 = arith.constant 0.000000e+00 : f32
    %286 = vector.broadcast %cst_161 : f32 to vector<8x8xf32>
    %287 = arith.select %278, %285, %286 : vector<8x8xi1>, vector<8x8xf32>
    %cst_162 = arith.constant dense<0.000000e+00> : vector<8xf32>
    %288 = vector.multi_reduction <add>, %287, %cst_162 [1] : vector<8x8xf32> to vector<8xf32>
    %289 = vector.shape_cast %288 : vector<8xf32> to vector<8x1xf32>
    %cst_163 = arith.constant 0.000000e+00 : f32
    %290 = vector.broadcast %cst_163 : f32 to vector<8x1xf32>
    %291 = arith.cmpf ogt, %289, %290 : vector<8x1xf32>
    %cst_164 = arith.constant 1.000000e+00 : f32
    %292 = vector.broadcast %cst_164 : f32 to vector<8x1xf32>
    %293 = arith.select %291, %289, %292 : vector<8x1xi1>, vector<8x1xf32>
    %294 = tpu.reciprocal %293 {approx = true} : vector<8x1xf32> -> vector<8x1xf32>
    %295 = arith.mulf %293, %294 : vector<8x1xf32>
    %cst_165 = arith.constant 2.000000e+00 : f32
    %296 = vector.broadcast %cst_165 : f32 to vector<8x1xf32>
    %297 = arith.subf %296, %295 : vector<8x1xf32>
    %298 = arith.mulf %294, %297 : vector<8x1xf32>
    %c0_166 = arith.constant 0 : index
    %c6_167 = arith.constant 6 : index
    %c0_168 = arith.constant 0 : index
    %299 = vector.load %arg6[%c0_166, %c6_167, %c0_168] : memref<8x8x1xf32, #tpu.memory_space<vmem>>, vector<8x1x1xf32>
    %300 = vector.shape_cast %299 : vector<8x1x1xf32> to vector<8x1xf32>
    %301 = arith.mulf %298, %300 : vector<8x1xf32>
    %302 = vector.broadcast %301 : vector<8x1xf32> to vector<8x8xf32>
    %303 = arith.mulf %287, %302 : vector<8x8xf32>
    %c0_169 = arith.constant 0 : index
    %c6_170 = arith.constant 6 : index
    %c0_171 = arith.constant 0 : index
    %304 = vector.load %arg9[%c0_169, %c6_170, %c0_171] : memref<8x8x8xf32, #tpu.memory_space<vmem>>, vector<8x1x8xf32>
    %305 = vector.shape_cast %304 : vector<8x1x8xf32> to vector<8x8xf32>
    %306 = vector.shape_cast %303 : vector<8x8xf32> to vector<8x1x8xf32>
    tpu.vector_store %arg9[%c0_169, %c6_170, %c0_171], %306 {strides = array<i32>} : memref<8x8x8xf32, #tpu.memory_space<vmem>>, vector<8x1x8xf32>,
    %c0_172 = arith.constant 0 : index
    %c0_173 = arith.constant 0 : index
    %307 = vector.load %arg10[%c0_172, %c0_173] : memref<8x64xf32, #tpu.memory_space<vmem>>, vector<8x64xf32>
    %308 = vector.shape_cast %303 : vector<8x8xf32> to vector<8x8x1xf32>
    %309 = vector.broadcast %308 : vector<8x8x1xf32> to vector<8x8x64xf32>
    %310 = arith.mulf %309, %271 : vector<8x8x64xf32>
    %cst_174 = arith.constant dense<0.000000e+00> : vector<8x64xf32>
    %311 = vector.multi_reduction <add>, %310, %cst_174 [1] : vector<8x8x64xf32> to vector<8x64xf32>
    %312 = arith.addf %307, %311 : vector<8x64xf32>
    %c0_175 = arith.constant 0 : index
    %c0_176 = arith.constant 0 : index
    %313 = vector.load %arg10[%c0_175, %c0_176] : memref<8x64xf32, #tpu.memory_space<vmem>>, vector<8x64xf32>
    tpu.vector_store %arg10[%c0_175, %c0_176], %312 {strides = array<i32>} : memref<8x64xf32, #tpu.memory_space<vmem>>, vector<8x64xf32>,
    %c0_177 = arith.constant 0 : index
    %c7 = arith.constant 7 : index
    %c0_178 = arith.constant 0 : index
    %c0_179 = arith.constant 0 : index
    %314 = vector.load %arg4[%c0_177, %c7, %c0_178, %c0_179] : memref<8x8x8x64xf32, #tpu.memory_space<vmem>>, vector<8x1x8x64xf32>
    %315 = vector.shape_cast %314 : vector<8x1x8x64xf32> to vector<8x8x64xf32>
    %316 = vector.broadcast %4 : vector<8x1x64xf32> to vector<8x8x64xf32>
    %317 = arith.mulf %315, %316 : vector<8x8x64xf32>
    %cst_180 = arith.constant dense<0.000000e+00> : vector<8x8xf32>
    %318 = vector.multi_reduction <add>, %317, %cst_180 [2] : vector<8x8x64xf32> to vector<8x8xf32>
    %c0_181 = arith.constant 0 : index
    %c7_182 = arith.constant 7 : index
    %c0_183 = arith.constant 0 : index
    %319 = vector.load %arg5[%c0_181, %c7_182, %c0_183] : memref<8x8x1xi32, #tpu.memory_space<vmem>>, vector<8x1x1xi32>
    %320 = vector.shape_cast %319 : vector<8x1x1xi32> to vector<8x1xi32>
    %321 = vector.broadcast %320 : vector<8x1xi32> to vector<8x8xi32>
    %322 = arith.cmpi slt, %5, %321 : vector<8x8xi32>
    %cst_184 = arith.constant -3.40282347E+38 : f32
    %323 = vector.broadcast %cst_184 : f32 to vector<8x8xf32>
    %324 = arith.select %322, %318, %323 : vector<8x8xi1>, vector<8x8xf32>
    %cst_185 = arith.constant dense<0xFF800000> : vector<8xf32>
    %325 = vector.multi_reduction <maximumf>, %324, %cst_185 [1] : vector<8x8xf32> to vector<8xf32>
    %326 = vector.shape_cast %325 : vector<8xf32> to vector<8x1xf32>
    %327 = vector.broadcast %326 : vector<8x1xf32> to vector<8x8xf32>
    %328 = arith.subf %324, %327 : vector<8x8xf32>
    %329 = math.exp %328 : vector<8x8xf32>
    %cst_186 = arith.constant 0.000000e+00 : f32
    %330 = vector.broadcast %cst_186 : f32 to vector<8x8xf32>
    %331 = arith.select %322, %329, %330 : vector<8x8xi1>, vector<8x8xf32>
    %cst_187 = arith.constant dense<0.000000e+00> : vector<8xf32>
    %332 = vector.multi_reduction <add>, %331, %cst_187 [1] : vector<8x8xf32> to vector<8xf32>
    %333 = vector.shape_cast %332 : vector<8xf32> to vector<8x1xf32>
    %cst_188 = arith.constant 0.000000e+00 : f32
    %334 = vector.broadcast %cst_188 : f32 to vector<8x1xf32>
    %335 = arith.cmpf ogt, %333, %334 : vector<8x1xf32>
    %cst_189 = arith.constant 1.000000e+00 : f32
    %336 = vector.broadcast %cst_189 : f32 to vector<8x1xf32>
    %337 = arith.select %335, %333, %336 : vector<8x1xi1>, vector<8x1xf32>
    %338 = tpu.reciprocal %337 {approx = true} : vector<8x1xf32> -> vector<8x1xf32>
    %339 = arith.mulf %337, %338 : vector<8x1xf32>
    %cst_190 = arith.constant 2.000000e+00 : f32
    %340 = vector.broadcast %cst_190 : f32 to vector<8x1xf32>
    %341 = arith.subf %340, %339 : vector<8x1xf32>
    %342 = arith.mulf %338, %341 : vector<8x1xf32>
    %c0_191 = arith.constant 0 : index
    %c7_192 = arith.constant 7 : index
    %c0_193 = arith.constant 0 : index
    %343 = vector.load %arg6[%c0_191, %c7_192, %c0_193] : memref<8x8x1xf32, #tpu.memory_space<vmem>>, vector<8x1x1xf32>
    %344 = vector.shape_cast %343 : vector<8x1x1xf32> to vector<8x1xf32>
    %345 = arith.mulf %342, %344 : vector<8x1xf32>
    %346 = vector.broadcast %345 : vector<8x1xf32> to vector<8x8xf32>
    %347 = arith.mulf %331, %346 : vector<8x8xf32>
    %c0_194 = arith.constant 0 : index
    %c7_195 = arith.constant 7 : index
    %c0_196 = arith.constant 0 : index
    %348 = vector.load %arg9[%c0_194, %c7_195, %c0_196] : memref<8x8x8xf32, #tpu.memory_space<vmem>>, vector<8x1x8xf32>
    %349 = vector.shape_cast %348 : vector<8x1x8xf32> to vector<8x8xf32>
    %350 = vector.shape_cast %347 : vector<8x8xf32> to vector<8x1x8xf32>
    tpu.vector_store %arg9[%c0_194, %c7_195, %c0_196], %350 {strides = array<i32>} : memref<8x8x8xf32, #tpu.memory_space<vmem>>, vector<8x1x8xf32>,
    %c0_197 = arith.constant 0 : index
    %c0_198 = arith.constant 0 : index
    %351 = vector.load %arg10[%c0_197, %c0_198] : memref<8x64xf32, #tpu.memory_space<vmem>>, vector<8x64xf32>
    %352 = vector.shape_cast %347 : vector<8x8xf32> to vector<8x8x1xf32>
    %353 = vector.broadcast %352 : vector<8x8x1xf32> to vector<8x8x64xf32>
    %354 = arith.mulf %353, %315 : vector<8x8x64xf32>
    %cst_199 = arith.constant dense<0.000000e+00> : vector<8x64xf32>
    %355 = vector.multi_reduction <add>, %354, %cst_199 [1] : vector<8x8x64xf32> to vector<8x64xf32>
    %356 = arith.addf %351, %355 : vector<8x64xf32>
    %c0_200 = arith.constant 0 : index
    %c0_201 = arith.constant 0 : index
    %357 = vector.load %arg10[%c0_200, %c0_201] : memref<8x64xf32, #tpu.memory_space<vmem>>, vector<8x64xf32>
    tpu.vector_store %arg10[%c0_200, %c0_201], %356 {strides = array<i32>} : memref<8x64xf32, #tpu.memory_space<vmem>>, vector<8x64xf32>,
    %c2_i32 = arith.constant 2 : i32
    %358 = arith.cmpi eq, %arg1, %c2_i32 : i32
    %359 = arith.extui %358 : i1 to i32
    %c0_i32_202 = arith.constant 0 : i32
    %360 = arith.cmpi ne, %359, %c0_i32_202 : i32
    scf.if %360 {
      %c0_203 = arith.constant 0 : index
      %c0_204 = arith.constant 0 : index
      %361 = vector.load %arg10[%c0_203, %c0_204] : memref<8x64xf32, #tpu.memory_space<vmem>>, vector<8x64xf32>
      %c0_205 = arith.constant 0 : index
      %c0_206 = arith.constant 0 : index
      %362 = vector.load %arg7[%c0_205, %c0_206] : memref<64x64xf32, #tpu.memory_space<vmem>>, vector<64x64xf32>
      %cst_207 = arith.constant dense<0.000000e+00> : vector<8x64xf32>
      %363 = tpu.matmul %361, %362, %cst_207 {dimension_numbers = #tpu.dot_dimension_numbers<[1], [0], [0], [1], [0, 0, 1, 1], [], []>} : vector<8x64xf32>, vector<64x64xf32>, vector<8x64xf32> -> vector<8x64xf32>
      %c0_208 = arith.constant 0 : index
      %c0_209 = arith.constant 0 : index
      %364 = vector.load %arg3[%c0_208, %c0_209] : memref<8x64xf32, #tpu.memory_space<vmem>>, vector<8x64xf32>
      %365 = arith.addf %363, %364 : vector<8x64xf32>
      %366 = math.tanh %365 : vector<8x64xf32>
      %c0_210 = arith.constant 0 : index
      %c0_211 = arith.constant 0 : index
      %367 = vector.load %arg8[%c0_210, %c0_211] : memref<8x64xf32, #tpu.memory_space<vmem>>, vector<8x64xf32>
      tpu.vector_store %arg8[%c0_210, %c0_211], %366 {strides = array<i32>} : memref<8x64xf32, #tpu.memory_space<vmem>>, vector<8x64xf32>,
    } else {
    }
    return
  }
  func.func @transform_0(%arg0: i32, %arg1: i32) -> (i32, i32) {
    %c0_i32 = arith.constant 0 : i32
    %c0_i32_0 = arith.constant 0 : i32
    return %arg0, %c0_i32 : i32, i32
  }
  func.func @transform_1(%arg0: i32, %arg1: i32) -> (i32, i32) {
    %c0_i32 = arith.constant 0 : i32
    %c0_i32_0 = arith.constant 0 : i32
    return %arg0, %c0_i32 : i32, i32
  }
  func.func @transform_2(%arg0: i32, %arg1: i32) -> (i32, i32, i32, i32) {
    %c0_i32 = arith.constant 0 : i32
    %c0_i32_0 = arith.constant 0 : i32
    %c0_i32_1 = arith.constant 0 : i32
    return %arg0, %arg1, %c0_i32, %c0_i32_0 : i32, i32, i32, i32
  }
  func.func @transform_3(%arg0: i32, %arg1: i32) -> (i32, i32, i32) {
    %c0_i32 = arith.constant 0 : i32
    %c0_i32_0 = arith.constant 0 : i32
    return %arg0, %arg1, %c0_i32 : i32, i32, i32
  }
  func.func @transform_4(%arg0: i32, %arg1: i32) -> (i32, i32, i32) {
    %c0_i32 = arith.constant 0 : i32
    %c0_i32_0 = arith.constant 0 : i32
    return %arg0, %arg1, %c0_i32 : i32, i32, i32
  }
  func.func @transform_5(%arg0: i32, %arg1: i32) -> (i32, i32) {
    %c0_i32 = arith.constant 0 : i32
    %c0_i32_0 = arith.constant 0 : i32
    %c0_i32_1 = arith.constant 0 : i32
    return %c0_i32, %c0_i32_0 : i32, i32
  }
  func.func @transform_6(%arg0: i32, %arg1: i32) -> (i32, i32) {
    %c0_i32 = arith.constant 0 : i32
    %c0_i32_0 = arith.constant 0 : i32
    return %arg0, %c0_i32 : i32, i32
  }
  func.func @transform_7(%arg0: i32, %arg1: i32) -> (i32, i32, i32) {
    %c0_i32 = arith.constant 0 : i32
    %c0_i32_0 = arith.constant 0 : i32
    return %arg0, %arg1, %c0_i32 : i32, i32, i32
  }
}

</mosaic_0001>

<bundles_post_ra>
// kernel: word_global_attention.1
= control target key start
LH: loop header
LB: loop body
LE: loop exit
PB: predicated region body
PF: predicated region fallthrough
CT: control target
= control target key end

     0   :  { %s6682_s0 = inlined_call_operand.vmem [shape: f32[16,64], index: 0, kind: input, shape index: {}]   ;;  %s6683_s1 = inlined_call_operand.vmem [shape: f32[16,64], index: 1, kind: input, shape index: {}]   ;;  %s6684_s2 = inlined_call_operand.vmem [shape: f32[16,24,8,64], index: 2, kind: input, shape index: {}]   ;;  %s6685_s3 = inlined_call_operand.vmem [shape: s32[16,24,1], index: 3, kind: input, shape index: {}]   ;;  %s6686_s4 = inlined_call_operand.vmem [shape: f32[16,24,1], index: 4, kind: input, shape index: {}]   ;;  %s6687_s5 = inlined_call_operand.vmem [shape: f32[64,64], index: 5, kind: input, shape index: {}]   ;;  %s6688_s6 = inlined_call_operand.hbm [shape: f32[16,64], index: 6, kind: output, shape index: {0}]   ;;  %s6689_s7 = inlined_call_operand.vmem [shape: f32[16,24,8], index: 7, kind: output, shape index: {1}]  }
   0x1   :  { %6697 = sst [smem:[#allocation17_spill]] %s6684_s2 }
   0x2   :  { %6698 = sst [smem:[#allocation18_spill]] %s6685_s3 }
   0x3   :  { %6699 = sst [smem:[#allocation19_spill]] %s6686_s4 }
   0x4   :  { %13 = vsyncpa [#allocation7], 0 }
   0x5   :  { %15 = vsyncpa [#allocation7 + $0x1], 0  ;;  %s4904_s24 = smov 0   ;;  %s4906_s25 = smov 0  }
   0x6   :  { %s4908_s26 = smov 0   ;;  %s4910_s27 = smov 0  }
   0x7   :  { %s4912_s28 = smov 0   ;;  %s4914_s29 = smov 0  }
   0x8   :  { %s4916_s30 = smov 0   ;;  %s4918_s8 = smov 0  }
   0x9   :  { %s4920_s9 = smov 0   ;;  %s4922_s10 = smov 0  }
   0xa LB: > { %6700 = sst [smem:[#allocation10_spill]] %s4848_s8  ;;  %s4431_s11 = sadd.s32 4294967295, %s4856_s10   ;;  %s4856_s10 = sphi %s4922_s10, %s21_s10   ;;  %s4852_s9 = sphi %s4920_s9, %s6722_s9   ;;  %s4848_s8 = sphi %s4918_s8, %s6728_s8   ;;  %s4844_s30 = sphi %s4916_s30, %s6720_s30   ;;  %s4840_s29 = sphi %s4914_s29, %s6719_s29   ;;  %s4836_s28 = sphi %s4912_s28, %s6727_s28   ;;  %s4832_s27 = sphi %s4910_s27, %s6726_s27   ;;  %s4828_s26 = sphi %s4908_s26, %s6725_s26   ;;  %s4824_s25 = sphi %s4906_s25, %s6724_s25   ;;  %s4820_s24 = sphi %s4904_s24, %s6723_s24  }
   0xb   : > { %6701 = sst [smem:[#allocation11_spill]] %s4852_s9  ;;  %s4432_s12 = sadd.s32 4294967294, %s4856_s10  }
   0xc   : > { %s30_s13 = sadd.s32 1, %s4848_s8  ;;  %s33_s14 = sadd.s32 1, %s4852_s9 }
   0xd   : > { %p31_p0 = scmp.ge.s32.totalorder %s30_s13, 3  ;;  %s94_s15 = sadd.s32 1, %s4836_s28 }
   0xe   : > { %p101_p1 = scmp.ne.s32.totalorder %s4836_s28, %s4832_s27  ;;  %p102_p2 = scmp.eq.s32.totalorder %s4856_s10, 0 }
   0xf   : > { %s6730_s13 = smov (%p31_p0, %s30_s13), 0  ;;  %s6732_s14 = smov (!%p31_p0, %s33_s14), %s4852_s9 }
  0x10   : > { %6702 = sst [smem:[#allocation12_spill]] %s6730_s13  ;;  %s90_s16 = ssub.s32 %s4848_s8, %s6730_s13 }
  0x11   : > { %p4970_p3 = por %p102_p2, %p101_p1  ;;  %p35_p4 = scmp.ge.s32.totalorder %s6732_s14, 2 }
  0x12   : > { %s197_s18 = sadd.s32 1, %s4828_s26  ;;  %p207_p5 = scmp.ne.s32.totalorder %s4828_s26, %s4824_s25 }
  0x13   : > { %p208_p6 = scmp.eq.s32.totalorder %s4431_s11, 5  ;;  %s6734_s14 = smov (%p35_p4, %s6732_s14), 0 }
  0x14   : > { %6704 = sst [smem:[#allocation13_spill]] %s6734_s14  ;;  %p213_p8 = scmp.ne.s32.totalorder %s4824_s25, %s4820_s24 }
  0x15   : > { %p4979_p7 = por %p208_p6, %p207_p5  ;;  %s89_s20 = ssub.s32 %s4852_s9, %s6734_s14 }
  0x16   : > { %p214_p9 = scmp.eq.s32.totalorder %s4432_s12, 5  ;;  %s91_s21 = sor.u32 %s90_s16, %s89_s20 }
  0x17   : > { %p195_p10 = scmp.eq.s32.totalorder %s89_s20, 0  ;;  %p92_p11 = scmp.eq.s32.totalorder %s91_s21, 0 }
  0x18   : > { %p4987_p12 = por %p214_p9, %p213_p8  ;;  %p5000_p13 = por %p208_p6, %p101_p1 }
  0x19   : > { %s4992_s23 = scalar_select %p195_p10, %s4828_s26, %s197_s18  }
  0x1a   : > { %s6706_s22 = scalar_select %p4987_p12, 1, 0 }
  0x1b   : > { %6707 = sst [smem:[#allocation14_spill]] %s4992_s23  ;;  %p4434_p0 = scmp.ge.s32.totalorder %s4856_s10, 6 }
  0x1c   : > { %s4995_s11 = scalar_select %p92_p11, %s4836_s28, %s94_s15  }
  0x1d   : > { %261 = sbr.rel (%p4434_p0) target bundleno = 104 (0x68), region = 20 }
  0x1e   : > { %6708 = sst [smem:[#allocation15_spill]] %s4995_s11 }
  0x22   : > { %278 = sbr.rel (!%p4970_p3) target bundleno = 76 (0x4c), region = 32  ;;  %s280_s12 = sand.u32 (%p4970_p3), 1, %s4836_s28  }
  0x23   : > { %s4437_s16 = sshll.u32 (%p4970_p3), %s4848_s8, 3  ;;  %s4435_s18 = sshll.u32 (%p4970_p3), %s280_s12, 9 }
  0x24   : > { %s4551_s20 = smul.u32 (%p4970_p3), 192, %s4852_s9  ;;  %s6710_s2 = sld [smem:[#allocation17_spill]] (%p4970_p3) }
  0x25   : > { %s5018_s12 = scalar_lea.vmem (%p4970_p3), [#allocation3], %s4435_s18 }
  0x26   : > { %s286_s15 = sadd.s32 (%p4970_p3), %s4551_s20, %s4437_s16 }
  0x27   : > { %s4439_s21 = sshll.u32 %s286_s15, 3 }
  0x2a   : > { %s5013_s23 = scalar_lea.vmem %s6710_s2, %s4439_s21 }
  0x2b   : > { %v443_v0 = vld [vmem:[%s5013_s23] sm:$0xff]  ;;  %v445_v1 = vld [vmem:[%s5013_s23 + $0x8] sm:$0xff]  ;;  %v447_v2 = vld [vmem:[%s5013_s23 + $0x10] sm:$0xff] }
  0x2c   : > { %444 = vst [vmem:[%s5018_s12] sm:$0xff] %v443_v0  ;;  %446 = vst [vmem:[%s5018_s12 + $0x8] sm:$0xff] %v445_v1  ;;  %v449_v3 = vld [vmem:[%s5013_s23 + $0x18] sm:$0xff]  ;;  %v451_v4 = vld [vmem:[%s5013_s23 + $0x20] sm:$0xff] }
  0x2d   : > { %448 = vst [vmem:[%s5018_s12 + $0x10] sm:$0xff] %v447_v2  ;;  %v453_v5 = vld [vmem:[%s5013_s23 + $0x28] sm:$0xff]  ;;  %450 = vst [vmem:[%s5018_s12 + $0x18] sm:$0xff] %v449_v3  ;;  %v455_v6 = vld [vmem:[%s5013_s23 + $0x30] sm:$0xff] }
  0x2e   : > { %452 = vst [vmem:[%s5018_s12 + $0x20] sm:$0xff] %v451_v4  ;;  %454 = vst [vmem:[%s5018_s12 + $0x28] sm:$0xff] %v453_v5  ;;  %v457_v7 = vld [vmem:[%s5013_s23 + $0x38] sm:$0xff]  ;;  %v459_v8 = vld [vmem:[%s5013_s23 + $0xc0] sm:$0xff] }
  0x2f   : > { %456 = vst [vmem:[%s5018_s12 + $0x30] sm:$0xff] %v455_v6  ;;  %458 = vst [vmem:[%s5018_s12 + $0x38] sm:$0xff] %v457_v7  ;;  %v461_v9 = vld [vmem:[%s5013_s23 + $0xc8] sm:$0xff]  ;;  %v463_v10 = vld [vmem:[%s5013_s23 + $0xd0] sm:$0xff] }
  0x30   : > { %460 = vst [vmem:[%s5018_s12 + $0x40] sm:$0xff] %v459_v8  ;;  %v465_v11 = vld [vmem:[%s5013_s23 + $0xd8] sm:$0xff]  ;;  %462 = vst [vmem:[%s5018_s12 + $0x48] sm:$0xff] %v461_v9  ;;  %v467_v12 = vld [vmem:[%s5013_s23 + $0xe0] sm:$0xff] }
  0x31   : > { %464 = vst [vmem:[%s5018_s12 + $0x50] sm:$0xff] %v463_v10  ;;  %466 = vst [vmem:[%s5018_s12 + $0x58] sm:$0xff] %v465_v11  ;;  %v469_v13 = vld [vmem:[%s5013_s23 + $0xe8] sm:$0xff]  ;;  %v471_v14 = vld [vmem:[%s5013_s23 + $0xf0] sm:$0xff] }
  0x32   : > { %468 = vst [vmem:[%s5018_s12 + $0x60] sm:$0xff] %v467_v12  ;;  %470 = vst [vmem:[%s5018_s12 + $0x68] sm:$0xff] %v469_v13  ;;  %v473_v15 = vld [vmem:[%s5013_s23 + $0xf8] sm:$0xff]  ;;  %v475_v16 = vld [vmem:[%s5013_s23 + $0x180] sm:$0xff] }
  0x33   : > { %472 = vst [vmem:[%s5018_s12 + $0x70] sm:$0xff] %v471_v14  ;;  %v477_v17 = vld [vmem:[%s5013_s23 + $0x188] sm:$0xff]  ;;  %474 = vst [vmem:[%s5018_s12 + $0x78] sm:$0xff] %v473_v15  ;;  %v479_v18 = vld [vmem:[%s5013_s23 + $0x190] sm:$0xff] }
  0x34   : > { %476 = vst [vmem:[%s5018_s12 + $0x80] sm:$0xff] %v475_v16  ;;  %478 = vst [vmem:[%s5018_s12 + $0x88] sm:$0xff] %v477_v17  ;;  %v481_v19 = vld [vmem:[%s5013_s23 + $0x198] sm:$0xff]  ;;  %v483_v20 = vld [vmem:[%s5013_s23 + $0x1a0] sm:$0xff] }
  0x35   : > { %480 = vst [vmem:[%s5018_s12 + $0x90] sm:$0xff] %v479_v18  ;;  %482 = vst [vmem:[%s5018_s12 + $0x98] sm:$0xff] %v481_v19  ;;  %v485_v21 = vld [vmem:[%s5013_s23 + $0x1a8] sm:$0xff]  ;;  %v487_v22 = vld [vmem:[%s5013_s23 + $0x1b0] sm:$0xff] }
  0x36   : > { %484 = vst [vmem:[%s5018_s12 + $0xa0] sm:$0xff] %v483_v20  ;;  %v489_v23 = vld [vmem:[%s5013_s23 + $0x1b8] sm:$0xff]  ;;  %486 = vst [vmem:[%s5018_s12 + $0xa8] sm:$0xff] %v485_v21  ;;  %v491_v24 = vld [vmem:[%s5013_s23 + $0x240] sm:$0xff] }
  0x37   : > { %488 = vst [vmem:[%s5018_s12 + $0xb0] sm:$0xff] %v487_v22  ;;  %490 = vst [vmem:[%s5018_s12 + $0xb8] sm:$0xff] %v489_v23  ;;  %v493_v25 = vld [vmem:[%s5013_s23 + $0x248] sm:$0xff]  ;;  %v495_v26 = vld [vmem:[%s5013_s23 + $0x250] sm:$0xff] }
  0x38   : > { %492 = vst [vmem:[%s5018_s12 + $0xc0] sm:$0xff] %v491_v24  ;;  %494 = vst [vmem:[%s5018_s12 + $0xc8] sm:$0xff] %v493_v25  ;;  %v497_v27 = vld [vmem:[%s5013_s23 + $0x258] sm:$0xff]  ;;  %v499_v28 = vld [vmem:[%s5013_s23 + $0x260] sm:$0xff] }
  0x39   : > { %496 = vst [vmem:[%s5018_s12 + $0xd0] sm:$0xff] %v495_v26  ;;  %v501_v29 = vld [vmem:[%s5013_s23 + $0x268] sm:$0xff]  ;;  %498 = vst [vmem:[%s5018_s12 + $0xd8] sm:$0xff] %v497_v27  ;;  %v503_v30 = vld [vmem:[%s5013_s23 + $0x270] sm:$0xff] }
  0x3a   : > { %500 = vst [vmem:[%s5018_s12 + $0xe0] sm:$0xff] %v499_v28  ;;  %502 = vst [vmem:[%s5018_s12 + $0xe8] sm:$0xff] %v501_v29  ;;  %v505_v31 = vld [vmem:[%s5013_s23 + $0x278] sm:$0xff]  ;;  %v507_v32 = vld [vmem:[%s5013_s23 + $0x300] sm:$0xff] }
  0x3b   : > { %504 = vst [vmem:[%s5018_s12 + $0xf0] sm:$0xff] %v503_v30  ;;  %506 = vst [vmem:[%s5018_s12 + $0xf8] sm:$0xff] %v505_v31  ;;  %v509_v33 = vld [vmem:[%s5013_s23 + $0x308] sm:$0xff]  ;;  %v511_v34 = vld [vmem:[%s5013_s23 + $0x310] sm:$0xff] }
  0x3c   : > { %508 = vst [vmem:[%s5018_s12 + $0x100] sm:$0xff] %v507_v32  ;;  %v513_v35 = vld [vmem:[%s5013_s23 + $0x318] sm:$0xff]  ;;  %510 = vst [vmem:[%s5018_s12 + $0x108] sm:$0xff] %v509_v33  ;;  %v515_v36 = vld [vmem:[%s5013_s23 + $0x320] sm:$0xff] }
  0x3d   : > { %512 = vst [vmem:[%s5018_s12 + $0x110] sm:$0xff] %v511_v34  ;;  %514 = vst [vmem:[%s5018_s12 + $0x118] sm:$0xff] %v513_v35  ;;  %v517_v37 = vld [vmem:[%s5013_s23 + $0x328] sm:$0xff]  ;;  %v519_v38 = vld [vmem:[%s5013_s23 + $0x330] sm:$0xff] }
  0x3e   : > { %516 = vst [vmem:[%s5018_s12 + $0x120] sm:$0xff] %v515_v36  ;;  %518 = vst [vmem:[%s5018_s12 + $0x128] sm:$0xff] %v517_v37  ;;  %v521_v39 = vld [vmem:[%s5013_s23 + $0x338] sm:$0xff]  ;;  %v523_v40 = vld [vmem:[%s5013_s23 + $0x3c0] sm:$0xff] }
  0x3f   : > { %520 = vst [vmem:[%s5018_s12 + $0x130] sm:$0xff] %v519_v38  ;;  %v525_v41 = vld [vmem:[%s5013_s23 + $0x3c8] sm:$0xff]  ;;  %522 = vst [vmem:[%s5018_s12 + $0x138] sm:$0xff] %v521_v39  ;;  %v527_v42 = vld [vmem:[%s5013_s23 + $0x3d0] sm:$0xff] }
  0x40   : > { %524 = vst [vmem:[%s5018_s12 + $0x140] sm:$0xff] %v523_v40  ;;  %526 = vst [vmem:[%s5018_s12 + $0x148] sm:$0xff] %v525_v41  ;;  %v529_v43 = vld [vmem:[%s5013_s23 + $0x3d8] sm:$0xff]  ;;  %v531_v44 = vld [vmem:[%s5013_s23 + $0x3e0] sm:$0xff] }
  0x41   : > { %528 = vst [vmem:[%s5018_s12 + $0x150] sm:$0xff] %v527_v42  ;;  %530 = vst [vmem:[%s5018_s12 + $0x158] sm:$0xff] %v529_v43  ;;  %v533_v45 = vld [vmem:[%s5013_s23 + $0x3e8] sm:$0xff]  ;;  %v535_v46 = vld [vmem:[%s5013_s23 + $0x3f0] sm:$0xff] }
  0x42   : > { %532 = vst [vmem:[%s5018_s12 + $0x160] sm:$0xff] %v531_v44  ;;  %v537_v47 = vld [vmem:[%s5013_s23 + $0x3f8] sm:$0xff]  ;;  %534 = vst [vmem:[%s5018_s12 + $0x168] sm:$0xff] %v533_v45  ;;  %v539_v48 = vld [vmem:[%s5013_s23 + $0x480] sm:$0xff] }
  0x43   : > { %536 = vst [vmem:[%s5018_s12 + $0x170] sm:$0xff] %v535_v46  ;;  %538 = vst [vmem:[%s5018_s12 + $0x178] sm:$0xff] %v537_v47  ;;  %v541_v49 = vld [vmem:[%s5013_s23 + $0x488] sm:$0xff]  ;;  %v543_v50 = vld [vmem:[%s5013_s23 + $0x490] sm:$0xff] }
  0x44   : > { %540 = vst [vmem:[%s5018_s12 + $0x180] sm:$0xff] %v539_v48  ;;  %542 = vst [vmem:[%s5018_s12 + $0x188] sm:$0xff] %v541_v49  ;;  %v545_v51 = vld [vmem:[%s5013_s23 + $0x498] sm:$0xff]  ;;  %v547_v52 = vld [vmem:[%s5013_s23 + $0x4a0] sm:$0xff] }
  0x45   : > { %544 = vst [vmem:[%s5018_s12 + $0x190] sm:$0xff] %v543_v50  ;;  %v549_v53 = vld [vmem:[%s5013_s23 + $0x4a8] sm:$0xff]  ;;  %546 = vst [vmem:[%s5018_s12 + $0x198] sm:$0xff] %v545_v51  ;;  %v551_v54 = vld [vmem:[%s5013_s23 + $0x4b0] sm:$0xff] }
  0x46   : > { %548 = vst [vmem:[%s5018_s12 + $0x1a0] sm:$0xff] %v547_v52  ;;  %550 = vst [vmem:[%s5018_s12 + $0x1a8] sm:$0xff] %v549_v53  ;;  %v553_v55 = vld [vmem:[%s5013_s23 + $0x4b8] sm:$0xff]  ;;  %v555_v56 = vld [vmem:[%s5013_s23 + $0x540] sm:$0xff] }
  0x47   : > { %552 = vst [vmem:[%s5018_s12 + $0x1b0] sm:$0xff] %v551_v54  ;;  %554 = vst [vmem:[%s5018_s12 + $0x1b8] sm:$0xff] %v553_v55  ;;  %v557_v57 = vld [vmem:[%s5013_s23 + $0x548] sm:$0xff]  ;;  %v559_v58 = vld [vmem:[%s5013_s23 + $0x550] sm:$0xff] }
  0x48   : > { %556 = vst [vmem:[%s5018_s12 + $0x1c0] sm:$0xff] %v555_v56  ;;  %v561_v59 = vld [vmem:[%s5013_s23 + $0x558] sm:$0xff]  ;;  %558 = vst [vmem:[%s5018_s12 + $0x1c8] sm:$0xff] %v557_v57  ;;  %v563_v60 = vld [vmem:[%s5013_s23 + $0x560] sm:$0xff] }
  0x49   : > { %560 = vst [vmem:[%s5018_s12 + $0x1d0] sm:$0xff] %v559_v58  ;;  %562 = vst [vmem:[%s5018_s12 + $0x1d8] sm:$0xff] %v561_v59  ;;  %v565_v61 = vld [vmem:[%s5013_s23 + $0x568] sm:$0xff]  ;;  %v567_v62 = vld [vmem:[%s5013_s23 + $0x570] sm:$0xff] }
  0x4a   : > { %564 = vst [vmem:[%s5018_s12 + $0x1e0] sm:$0xff] %v563_v60  ;;  %566 = vst [vmem:[%s5018_s12 + $0x1e8] sm:$0xff] %v565_v61  ;;  %v569_v63 = vld [vmem:[%s5013_s23 + $0x578] sm:$0xff] }
  0x4b   : > { %568 = vst [vmem:[%s5018_s12 + $0x1f0] sm:$0xff] %v567_v62  ;;  %570 = vst [vmem:[%s5018_s12 + $0x1f8] sm:$0xff] %v569_v63 }
  0x4c PF: > { %576 = sbr.rel (!%p4970_p3) target bundleno = 90 (0x5a), region = 70  ;;  %s578_s14 = sand.u32 (%p4970_p3), 1, %s4836_s28  }
  0x4d   : > { %s4552_s11 = smul.u32 (%p4970_p3), 24, %s4852_s9  ;;  %s4440_s16 = sshll.u32 (%p4970_p3), %s578_s14, 6 }
  0x4e   : > { %s6711_s3 = sld [smem:[#allocation18_spill]] (%p4970_p3)  ;;  %s580_s23 = scalar_lea.vmem (%p4970_p3), [#allocation4], %s4440_s16 }
  0x4f   : > { %s583_s18 = sadd.s32 (%p4970_p3), %s4848_s8, %s4552_s11 }
  0x50   : > { %s4443_s20 = sshll.u32 (%p4970_p3), %s583_s18, 3 }
  0x54   : > { %s585_s2 = scalar_lea.vmem %s6711_s3, %s4443_s20 }
  0x55   : > { %v628_v0 = vld [vmem:[%s585_s2] sm:$0xff]  ;;  %v630_v1 = vld [vmem:[%s585_s2 + $0x18] sm:$0xff]  ;;  %v632_v2 = vld [vmem:[%s585_s2 + $0x30] sm:$0xff] }
  0x56   : > { %629 = vst [vmem:[%s580_s23] sm:$0xff] %v628_v0  ;;  %631 = vst [vmem:[%s580_s23 + $0x8] sm:$0xff] %v630_v1  ;;  %v634_v3 = vld [vmem:[%s585_s2 + $0x48] sm:$0xff]  ;;  %v636_v4 = vld [vmem:[%s585_s2 + $0x60] sm:$0xff] }
  0x57   : > { %633 = vst [vmem:[%s580_s23 + $0x10] sm:$0xff] %v632_v2  ;;  %v638_v5 = vld [vmem:[%s585_s2 + $0x78] sm:$0xff]  ;;  %635 = vst [vmem:[%s580_s23 + $0x18] sm:$0xff] %v634_v3  ;;  %v640_v6 = vld [vmem:[%s585_s2 + $0x90] sm:$0xff] }
  0x58   : > { %637 = vst [vmem:[%s580_s23 + $0x20] sm:$0xff] %v636_v4  ;;  %639 = vst [vmem:[%s580_s23 + $0x28] sm:$0xff] %v638_v5  ;;  %v642_v7 = vld [vmem:[%s585_s2 + $0xa8] sm:$0xff] }
  0x59   : > { %641 = vst [vmem:[%s580_s23 + $0x30] sm:$0xff] %v640_v6  ;;  %643 = vst [vmem:[%s580_s23 + $0x38] sm:$0xff] %v642_v7 }
  0x5a PF: > { %649 = sbr.rel (!%p4970_p3) target bundleno = 104 (0x68), region = 108  ;;  %s651_s12 = sand.u32 (%p4970_p3), 1, %s4836_s28  }
  0x5b   : > { %s4553_s14 = smul.u32 (%p4970_p3), 24, %s4852_s9  ;;  %s4444_s11 = sshll.u32 (%p4970_p3), %s651_s12, 6 }
  0x5c   : > { %s6712_s4 = sld [smem:[#allocation19_spill]] (%p4970_p3)  ;;  %s653_s2 = scalar_lea.vmem (%p4970_p3), [#allocation5], %s4444_s11 }
  0x5d   : > { %s656_s16 = sadd.s32 (%p4970_p3), %s4848_s8, %s4553_s14 }
  0x5e   : > { %s4447_s18 = sshll.u32 (%p4970_p3), %s656_s16, 3 }
  0x62   : > { %s658_s21 = scalar_lea.vmem %s6712_s4, %s4447_s18 }
  0x63   : > { %v701_v8 = vld [vmem:[%s658_s21] sm:$0xff]  ;;  %v703_v9 = vld [vmem:[%s658_s21 + $0x18] sm:$0xff]  ;;  %v705_v10 = vld [vmem:[%s658_s21 + $0x30] sm:$0xff] }
  0x64   : > { %702 = vst [vmem:[%s653_s2] sm:$0xff] %v701_v8  ;;  %704 = vst [vmem:[%s653_s2 + $0x8] sm:$0xff] %v703_v9  ;;  %v707_v11 = vld [vmem:[%s658_s21 + $0x48] sm:$0xff]  ;;  %v709_v12 = vld [vmem:[%s658_s21 + $0x60] sm:$0xff] }
  0x65   : > { %706 = vst [vmem:[%s653_s2 + $0x10] sm:$0xff] %v705_v10  ;;  %v711_v13 = vld [vmem:[%s658_s21 + $0x78] sm:$0xff]  ;;  %708 = vst [vmem:[%s653_s2 + $0x18] sm:$0xff] %v707_v11  ;;  %v713_v14 = vld [vmem:[%s658_s21 + $0x90] sm:$0xff] }
  0x66   : > { %710 = vst [vmem:[%s653_s2 + $0x20] sm:$0xff] %v709_v12  ;;  %712 = vst [vmem:[%s653_s2 + $0x28] sm:$0xff] %v711_v13  ;;  %v715_v15 = vld [vmem:[%s658_s21 + $0xa8] sm:$0xff] }
  0x67   : > { %714 = vst [vmem:[%s653_s2 + $0x30] sm:$0xff] %v713_v14  ;;  %716 = vst [vmem:[%s653_s2 + $0x38] sm:$0xff] %v715_v15 }
  0x68 PF: > { %p4448_p1 = scmp.ge.s32.totalorder %s4856_s10, 1  ;;  %p721_p2 = scmp.lt.s32.totalorder %s4856_s10, 7 }
  0x6a   : > { %p722_p3 = pnand %p4448_p1, %p721_p2 }
  0x6c   : > { %725 = sbr.rel (%p722_p3) target bundleno = 2847 (0xb1f), region = 146 }
  0x71   : > { %s728_s17 = sand.u32 1, %s4832_s27   ;;  %s6693_s23 = sand.u32 1, %s4824_s25  }
  0x72   : > { %s4449_s12 = sshll.u32 %s728_s17, 9  ;;  %s4450_s14 = sshll.u32 %s728_s17, 6 }
  0x73   : > { %s5167_s11 = sshll.u32 %s6693_s23, 3  ;;  %p793_p4 = scmp.lt.s32.totalorder %s4844_s30, 1 }
  0x74   : > { %s5179_s27 = scalar_lea.vmem [#allocation3], %s4449_s12  ;;  %s5181_s9 = scalar_lea.vmem [#allocation4], %s4450_s14 }
  0x75   : > { %s794_s16 = scalar_select %p793_p4, %s4844_s30, 1 }
  0x76   : > { %s5183_s17 = scalar_lea.vmem [#allocation5], %s4450_s14  ;;  %s786_s23 = scalar_lea.vmem [#allocation6], %s5167_s11 }
  0x77   : > { %s4454_s18 = sshll.u32 %s794_s16, 3  ;;  %s5186_s8 = scalar_lea.vmem [#allocation8], %s4450_s14 }
  0x78   : > { %s796_s21 = scalar_lea.vmem %s6682_s0, %s4454_s18  ;;  %s5177_s4 = scalar_lea.vmem %s6683_s1, %s4454_s18 }
  0x79   : > { %p4456_p5 = scmp.ne.s32.totalorder %s4840_s29, 0 }
  0x7b   : > { %809 = sbr.rel (%p4456_p5) target bundleno = 130 (0x82), region = 162 }
  0x80   : > { %vm810_vm0 = vcmask 523264   ;;  %v4858_v16 = vmov 0.0  }
  0x81   : > { %811 = vst.msk [vmem:[#allocation2] sm:$0xff] %vm810_vm0, %v4858_v16 }
  0x82 PF: > { %v818_v17 = vlaneseq  ;;  %v4859_v18 = vmov 1966171168   ;;  %v812_v20 = vld [vmem:[%s796_s21] sm:$0xff]  ;;  %v4860_v22 = vmov 0   ;;  %v865_v33 = vld [vmem:[%s5179_s27] sm:$0xff]  ;;  %vm921_vm1 = vcmask 523264  }
  0x83   : > { %v816_v19 = vunpack.c.l.s4 %v4859_v18  ;;  %4647 = vset.pattern.permute.xlu1 %v4860_v22  ;;  %4648 = vset.pattern.permute.xlu0 %v4860_v22  ;;  %v814_v24 = vcombine.high %v812_v20, %v812_v20  ;;  %v869_v34 = vld [vmem:[%s5179_s27 + $0x100] sm:$0xff]  ;;  %v4457_v3 = vld [vmem:[%s5179_s27 + $0x8] sm:$0xff]  ;;  %vm979_vm2 = vcmask 1041409   ;;  %vm982_vm3 = vcmask 1042434   ;;  %p4513_p6 = scmp.ne.s32.totalorder %s4840_s29, 2 }
  0x84   : > { %v5190_v21 = vshrl.u32 %v818_v17, 7  ;;  %v867_v39 = vld [vmem:[%s5179_s27 + $0x80] sm:$0xff]  ;;  %v4458_v6 = vld [vmem:[%s5179_s27 + $0x48] sm:$0xff]  ;;  %vm985_vm4 = vcmask 1043459   ;;  %vm988_vm5 = vcmask 1044484   ;;  %vm991_vm6 = vcmask 1045509  }
  0x85   : > { %v817_v23 = vunpack.c.0.s8 %v816_v19  ;;  %v870_v40 = vld [vmem:[%s5179_s27 + $0x140] sm:$0xff]  ;;  %v4459_v9 = vld [vmem:[%s5179_s27 + $0x88] sm:$0xff]  ;;  %vm994_vm7 = vcmask 1046534   ;;  %vm997_vm8 = vcmask 1047559   ;;  %vm1049_vm9 = vcmask 64512  }
  0x86   : > { %v5197_v27 = vsub.s32 0, %v5190_v21  ;;  %v866_v47 = vld [vmem:[%s5179_s27 + $0x40] sm:$0xff]  ;;  %v4461_v12 = vld [vmem:[%s5179_s27 + $0x108] sm:$0xff] }
  0x87   : > { %v5193_v25 = vsub.s32 %v817_v23, %v5190_v21  ;;  %v868_v54 = vld [vmem:[%s5179_s27 + $0xc0] sm:$0xff]  ;;  %v4460_v15 = vld [vmem:[%s5179_s27 + $0xc8] sm:$0xff] }
  0x88   : > { %v871_v60 = vld [vmem:[%s5179_s27 + $0x180] sm:$0xff]  ;;  %v4463_v19 = vld [vmem:[%s5179_s27 + $0x188] sm:$0xff] }
  0x89   : > { %v821_v26 = vrot.slane %v812_v20, %v5193_v25  ;;  %v828_v28 = vrot.slane %v814_v24, %v5193_v25  ;;  %v872_v0 = vld [vmem:[%s5179_s27 + $0x1c0] sm:$0xff]  ;;  %v4462_v23 = vld [vmem:[%s5179_s27 + $0x148] sm:$0xff] }
  0x8b   : > { %v837_v29 = vrot.slane %v821_v26, %v5193_v25  ;;  %v844_v30 = vrot.slane %v828_v28, %v5193_v25  ;;  %v830_v31 = vcombine.high %v828_v28, %v828_v28  ;;  %v829_v32 = vcombine.high %v821_v26, %v821_v26 }
  0x8d   : > { %v5205_v35 = vrot.slane %v837_v29, %v5197_v27  ;;  %v859_v36 = vcombine.high %v837_v29, %v837_v29  ;;  %v5208_v37 = vrot.slane %v844_v30, %v5197_v27  ;;  %v858_v38 = vrot.slane %v830_v31, %v5193_v25 }
  0x8e   : > { %v851_v41 = vrot.slane %v829_v32, %v5193_v25  ;;  %v860_v42 = vcombine.high %v844_v30, %v844_v30  ;;  %v4464_v30 = vld [vmem:[%s5179_s27 + $0x1c8] sm:$0xff] }
  0x8f   : > { %v913_v43 = vmul.f32 %v5205_v35, %v865_v33  ;;  %v5216_v44 = vrot.slane %v859_v36, %v5197_v27  ;;  %v917_v45 = vmul.f32 %v5208_v37, %v869_v34  ;;  %v5220_v46 = vrot.slane %v858_v38, %v5197_v27  ;;  %v947_v36 = vld [vmem:[%s5181_s9 + $0x8] sm:$0x1] }
  0x90   : > { %v5224_v48 = vrot.slane %v851_v41, %v5197_v27  ;;  %v861_v49 = vcombine.high %v851_v41, %v851_v41  ;;  %v862_v53 = vcombine.high %v858_v38, %v858_v38  ;;  %v5237_v59 = vrot.slane %v860_v42, %v5197_v27  ;;  %v948_v38 = vld [vmem:[%s5181_s9 + $0x10] sm:$0x1]  ;;  %v950_v41 = vld [vmem:[%s5181_s9 + $0x20] sm:$0x1]  ;;  %v1352_v42 = vld [vmem:[%s5181_s9 + $0x9] sm:$0x1] }
  0x91   : > { %v922_v50 = vsel %vm921_vm1, %v913_v43, 0.0  ;;  %v915_v51 = vmul.f32 %v5216_v44, %v867_v39  ;;  %v918_v52 = vmul.f32 %v5220_v46, %v870_v40  ;;  %v934_v57 = vsel %vm921_vm1, %v917_v45, 0.0  ;;  %v949_v39 = vld [vmem:[%s5181_s9 + $0x18] sm:$0x1]  ;;  %v946_v40 = vld [vmem:[%s5181_s9] sm:$0x1] }
  0x92   : > { %923 = vadd.xlane.f32.xlu0 %v922_v50  ;;  %v5231_v55 = vrot.slane %v861_v49, %v5197_v27  ;;  %v914_v58 = vmul.f32 %v5224_v48, %v866_v47  ;;  %v5243_v63 = vrot.slane %v862_v53, %v5197_v27  ;;  %v919_v2 = vmul.f32 %v5237_v59, %v871_v60  ;;  %v951_v43 = vld [vmem:[%s5181_s9 + $0x28] sm:$0x1]  ;;  %v1355_v45 = vld [vmem:[%s5181_s9 + $0x21] sm:$0x1]  ;;  %v952_v47 = vld [vmem:[%s5181_s9 + $0x30] sm:$0x1] }
  0x93   : > { %v928_v56 = vsel %vm921_vm1, %v915_v51, 0.0  ;;  %v937_v61 = vsel %vm921_vm1, %v918_v52, 0.0  ;;  %v1319_v8 = vmul.f32 %v4457_v3, %v5205_v35  ;;  %v1320_v11 = vmul.f32 %v4458_v6, %v5224_v48  ;;  %v1357_v49 = vld [vmem:[%s5181_s9 + $0x31] sm:$0x1]  ;;  %v953_v50 = vld [vmem:[%s5181_s9 + $0x38] sm:$0x1] }
  0x94   : > { %929 = vadd.xlane.f32.xlu1 %v928_v56  ;;  %v916_v62 = vmul.f32 %v5231_v55, %v868_v54  ;;  %v925_v1 = vsel %vm921_vm1, %v914_v58, 0.0  ;;  %v920_v5 = vmul.f32 %v5243_v63, %v872_v0  ;;  %v940_v7 = vsel %vm921_vm1, %v919_v2, 0.0  ;;  %v1351_v51 = vld [vmem:[%s5181_s9 + $0x1] sm:$0x1]  ;;  %v1353_v52 = vld [vmem:[%s5181_s9 + $0x11] sm:$0x1] }
  0x95   : > { %v1327_v13 = vsel %vm921_vm1, %v1319_v8, 0.0  ;;  %v1321_v14 = vmul.f32 %v4459_v9, %v5216_v44  ;;  %v1330_v16 = vsel %vm921_vm1, %v1320_v11, 0.0  ;;  %v1323_v18 = vmul.f32 %v4461_v12, %v5208_v37  ;;  %v1354_v53 = vld [vmem:[%s5181_s9 + $0x19] sm:$0x1]  ;;  %v1356_v54 = vld [vmem:[%s5181_s9 + $0x29] sm:$0x1] }
  0x96   : > { %935 = vadd.xlane.f32.xlu0 %v934_v57  ;;  %v931_v4 = vsel %vm921_vm1, %v916_v62, 0.0  ;;  %v943_v10 = vsel %vm921_vm1, %v920_v5, 0.0  ;;  %v1322_v22 = vmul.f32 %v4460_v15, %v5231_v55  ;;  %v1325_v26 = vmul.f32 %v4463_v19, %v5237_v59  ;;  %v1358_v56 = vld [vmem:[%s5181_s9 + $0x39] sm:$0x1] }
  0x97   : > { %v1333_v20 = vsel %vm921_vm1, %v1321_v14, 0.0  ;;  %v1339_v24 = vsel %vm921_vm1, %v1323_v18, 0.0  ;;  %v1324_v29 = vmul.f32 %v4462_v23, %v5220_v46  ;;  %v1326_v33 = vmul.f32 %v4464_v30, %v5243_v63 }
  0x98   : > { %938 = vadd.xlane.f32.xlu1 %v937_v61  ;;  %v1336_v28 = vsel %vm921_vm1, %v1322_v22, 0.0  ;;  %v1345_v31 = vsel %vm921_vm1, %v1325_v26, 0.0  ;;  %v5305_v9 = vand.u32 127, %v818_v17 }
  0x99   : > { %v1342_v32 = vsel %vm921_vm1, %v1324_v29, 0.0  ;;  %v1348_v34 = vsel %vm921_vm1, %v1326_v33, 0.0 }
  0x9a   : > { %926 = vadd.xlane.f32.xlu0 %v925_v1  ;;  %v5311_v12 = vsub.s32 %v5305_v9, %v5190_v21 }
  0x9c   : > { %932 = vadd.xlane.f32.xlu1 %v931_v4 }
  0x9e   : > { %941 = vadd.xlane.f32.xlu0 %v940_v7 }
  0xa0   : > { %944 = vadd.xlane.f32.xlu1 %v943_v10 }
  0xa2   : > { %1328 = vadd.xlane.f32.xlu0 %v1327_v13 }
  0xa4   : > { %1331 = vadd.xlane.f32.xlu1 %v1330_v16 }
  0xa6   : > { %1334 = vadd.xlane.f32.xlu0 %v1333_v20 }
  0xa8   : > { %1340 = vadd.xlane.f32.xlu1 %v1339_v24 }
  0xaa   : > { %1337 = vadd.xlane.f32.xlu0 %v1336_v28 }
  0xac   : > { %1346 = vadd.xlane.f32.xlu1 %v1345_v31 }
  0xae   : > { %1343 = vadd.xlane.f32.xlu0 %v1342_v32 }
  0xb2   : > { %1349 = vadd.xlane.f32.xlu0 %v1348_v34 }
  0xbd   : > { %958 = vperm.xlu1 %4647, %v947_v36  }
  0xc1   : > { %961 = vperm.xlu1 %4647, %v948_v38  }
  0xc5   : > { %964 = vperm.xlu1 %4647, %v949_v39  }
  0xc8   : > { %955 = vperm.xlu0 %4648, %v946_v40  }
  0xc9   : > { %967 = vperm.xlu1 %4647, %v950_v41  }
  0xcc   : > { %1363 = vperm.xlu0 %4648, %v1352_v42  }
  0xcd   : > { %970 = vperm.xlu1 %4647, %v951_v43  }
  0xd0   : > { %1372 = vperm.xlu0 %4648, %v1355_v45  }
  0xd1   : > { %973 = vperm.xlu1 %4647, %v952_v47  }
  0xd4   : > { %1378 = vperm.xlu0 %4648, %v1357_v49  }
  0xd5   : > { %976 = vperm.xlu1 %4647, %v953_v50  }
  0xd9   : > { %1360 = vperm.xlu1 %4647, %v1351_v51  }
  0xdd   : > { %1366 = vperm.xlu1 %4647, %v1353_v52  }
  0xe1   : > { %1369 = vperm.xlu1 %4647, %v1354_v53  }
  0xe5   : > { %1375 = vperm.xlu1 %4647, %v1356_v54  }
  0xe9   : > { %1381 = vperm.xlu1 %4647, %v1358_v56   ;;  %v4465_v56 = vld [vmem:[%s5179_s27 + $0x10] sm:$0xff] }
 0x11b   : > { %v924_v57 = vpop.xlane.xlu0 %923 }
 0x11c   : > { %v1011_v14 = vrot.slane %v924_v57, %v5311_v12 }
 0x11d   : > { %v930_v58 = vpop.xlane.xlu1 %929 }
 0x11e   : > { %v1019_v17 = vrot.slane %v930_v58, %v5311_v12 }
 0x11f   : > { %v936_v60 = vpop.xlane.xlu0 %935 }
 0x120   : > { %v1027_v28 = vrot.slane %v936_v60, %v5311_v12 }
 0x121   : > { %v939_v61 = vpop.xlane.xlu1 %938 }
 0x122   : > { %v1031_v38 = vrot.slane %v939_v61, %v5311_v12 }
 0x123   : > { %v927_v62 = vpop.xlane.xlu0 %926 }
 0x124   : > { %v1015_v15 = vrot.slane %v927_v62, %v5311_v12  ;;  %v1715_v62 = vmul.f32 %v4465_v56, %v5205_v35 }
 0x125   : > { %v933_v0 = vpop.xlane.xlu1 %932 }
 0x126   : > { %v1040_v19 = vsel %vm979_vm2, %v1015_v15, %v1011_v14  ;;  %v1023_v20 = vrot.slane %v933_v0, %v5311_v12 }
 0x127   : > { %v942_v1 = vpop.xlane.xlu0 %941  ;;  %v1041_v24 = vsel %vm982_vm3, %v1019_v17, %v1040_v19  ;;  %v4470_v17 = vld [vmem:[%s5179_s27 + $0x150] sm:$0xff] }
 0x128   : > { %v1042_v30 = vsel %vm985_vm4, %v1023_v20, %v1041_v24  ;;  %v1035_v41 = vrot.slane %v942_v1, %v5311_v12 }
 0x129   : > { %v945_v2 = vpop.xlane.xlu1 %944  ;;  %v1043_v34 = vsel %vm988_vm5, %v1027_v28, %v1042_v30 }
 0x12a   : > { %v1044_v47 = vsel %vm991_vm6, %v1031_v38, %v1043_v34  ;;  %v1039_v49 = vrot.slane %v945_v2, %v5311_v12  ;;  %v4468_v2 = vld [vmem:[%s5179_s27 + $0xd0] sm:$0xff] }
 0x12b   : > { %v5292_v3 = vpop.xlane.xlu0 %1328  ;;  %v1045_v54 = vsel %vm994_vm7, %v1035_v41, %v1044_v47  ;;  %v1718_v19 = vmul.f32 %v4468_v2, %v5231_v55  ;;  %v4467_v2 = vld [vmem:[%s5179_s27 + $0x90] sm:$0xff] }
 0x12c   : > { %v1046_v61 = vsel %vm997_vm8, %v1039_v49, %v1045_v54 }
 0x12d   : > { %v5294_v4 = vpop.xlane.xlu1 %1331 }
 0x12e   : > { %v1413_v14 = vrot.slane %v5294_v4, %v5311_v12 }
 0x12f   : > { %v5296_v5 = vpop.xlane.xlu0 %1334 }
 0x131   : > { %v5298_v6 = vpop.xlane.xlu1 %1340 }
 0x133   : > { %v5300_v7 = vpop.xlane.xlu0 %1337 }
 0x134   : > { %v1421_v4 = vrot.slane %v5300_v7, %v5311_v12 }
 0x135   : > { %v5302_v8 = vpop.xlane.xlu1 %1346 }
 0x137   : > { %v5307_v11 = vpop.xlane.xlu0 %1343 }
 0x138   : > { %v1429_v7 = vrot.slane %v5307_v11, %v5311_v12 }
 0x139   : > { %v959_v10 = vpop.permute.xlu1 %958 }
 0x13a   : > { %v978_v26 = vrot.slane %v959_v10, 7 }
 0x13b   : > { %v5315_v16 = vpop.xlane.xlu0 %1349 }
 0x13c   : > { %v1437_v11 = vrot.slane %v5315_v16, %v5311_v12 }
 0x13d   : > { %v962_v13 = vpop.permute.xlu1 %961 }
 0x13e   : > { %v981_v31 = vrot.slane %v962_v13, 6  ;;  %v1409_v13 = vrot.slane %v5292_v3, %v5311_v12 }
 0x140   : > { %v1438_v3 = vsel %vm979_vm2, %v1413_v14, %v1409_v13  ;;  %v1717_v14 = vmul.f32 %v4467_v2, %v5216_v44 }
 0x141   : > { %v965_v18 = vpop.permute.xlu1 %964 }
 0x142   : > { %v984_v36 = vrot.slane %v965_v18, 5  ;;  %v1723_v18 = vsel %vm921_vm1, %v1715_v62, 0.0 }
 0x143   : > { %v956_v22 = vpop.permute.xlu0 %955 }
 0x144   : > { %v980_v29 = vsel %vm979_vm2, %v978_v26, %v956_v22  ;;  %v1720_v26 = vmul.f32 %v4470_v17, %v5220_v46  ;;  %v4471_v17 = vld [vmem:[%s5179_s27 + $0x190] sm:$0xff] }
 0x145   : > { %v968_v23 = vpop.permute.xlu1 %967  ;;  %v983_v33 = vsel %vm982_vm3, %v981_v31, %v980_v29  ;;  %v1732_v29 = vsel %vm921_vm1, %v1718_v19, 0.0 }
 0x146   : > { %v987_v39 = vrot.slane %v968_v23, 4  ;;  %v986_v42 = vsel %vm985_vm4, %v984_v36, %v983_v33  ;;  %v1417_v23 = vrot.slane %v5296_v5, %v5311_v12  ;;  %v1738_v36 = vsel %vm921_vm1, %v1720_v26, 0.0  ;;  %v1749_v26 = vld [vmem:[%s5181_s9 + $0x12] sm:$0x1] }
 0x147   : > { %v1364_v0 = vpop.permute.xlu0 %1363 }
 0x148   : > { %v989_v50 = vsel %vm988_vm5, %v987_v39, %v986_v42  ;;  %v1383_v20 = vrot.slane %v1364_v0, 7  ;;  %v1439_v5 = vsel %vm982_vm3, %v1417_v23, %v1438_v3  ;;  %v1425_v42 = vrot.slane %v5298_v6, %v5311_v12  ;;  %v1748_v23 = vld [vmem:[%s5181_s9 + $0xa] sm:$0x1]  ;;  %v1751_v3 = vld [vmem:[%s5181_s9 + $0x22] sm:$0x1] }
 0x149   : > { %v971_v32 = vpop.permute.xlu1 %970  ;;  %v1440_v38 = vsel %vm985_vm4, %v1421_v4, %v1439_v5  ;;  %v1433_v6 = vrot.slane %v5302_v8, %v5311_v12  ;;  %v1753_v4 = vld [vmem:[%s5181_s9 + $0x32] sm:$0x1] }
 0x14a   : > { %v990_v43 = vrot.slane %v971_v32, 3  ;;  %v4472_v32 = vld [vmem:[%s5179_s27 + $0x1d0] sm:$0xff]  ;;  %v1441_v49 = vsel %vm988_vm5, %v1425_v42, %v1440_v38 }
 0x14b   : > { %v1373_v24 = vpop.permute.xlu0 %1372  ;;  %v1722_v41 = vmul.f32 %v4472_v32, %v5243_v63 }
 0x14c   : > { %v992_v52 = vsel %vm991_vm6, %v990_v43, %v989_v50  ;;  %v1389_v39 = vrot.slane %v1373_v24, 4 }
 0x14d   : > { %v974_v40 = vpop.permute.xlu1 %973  ;;  %v1744_v54 = vsel %vm921_vm1, %v1722_v41, 0.0 }
 0x14e   : > { %v993_v45 = vrot.slane %v974_v40, 2 }
 0x14f   : > { %v1379_v43 = vpop.permute.xlu0 %1378 }
 0x150   : > { %v995_v57 = vsel %vm994_vm7, %v993_v45, %v992_v52  ;;  %v1393_v52 = vrot.slane %v1379_v43, 2 }
 0x151   : > { %v977_v51 = vpop.permute.xlu1 %976 }
 0x152   : > { %v996_v53 = vrot.slane %v977_v51, 1  ;;  %v1442_v51 = vsel %vm991_vm6, %v1429_v7, %v1441_v49 }
 0x153   : > { %v1443_v62 = vsel %vm994_vm7, %v1433_v6, %v1442_v51 }
 0x154   : > { %v5337_v58 = vsel %vm997_vm8, %v996_v53, %v995_v57  ;;  %v4466_v57 = vld [vmem:[%s5179_s27 + $0x50] sm:$0xff]  ;;  %v1444_v16 = vsel %vm997_vm8, %v1437_v11, %v1443_v62 }
 0x155   : > { %v1361_v60 = vpop.permute.xlu1 %1360  ;;  %vm999_vm10 = vcmp.lt.s32.totalorder %v5305_v9, %v5337_v58  ;;  %v1716_v8 = vmul.f32 %v4466_v57, %v5224_v48 }
 0x156   : > { %v5346_v1 = vsel %vm999_vm10, %v1046_v61, -3.4028235e+38  ;;  %v1384_v30 = vsel %vm979_vm2, %v1383_v20, %v1361_v60 }
 0x157   : > { %v1050_v10 = vsel %vm1049_vm9, %v5346_v1, -inf  ;;  %v1726_v13 = vsel %vm921_vm1, %v1716_v8, 0.0 }
 0x158   : > { %1051 = vmax.xlane.f32.xlu1 %v1050_v10 }
 0x159   : > { %v1367_v15 = vpop.permute.xlu1 %1366 }
 0x15a   : > { %v1385_v22 = vrot.slane %v1367_v15, 6  ;;  %v4469_v15 = vld [vmem:[%s5179_s27 + $0x110] sm:$0xff] }
 0x15b   : > { %v1719_v19 = vmul.f32 %v4469_v15, %v5208_v37 }
 0x15c   : > { %1724 = vadd.xlane.f32.xlu1 %v1723_v18  ;;  %v1386_v33 = vsel %vm982_vm3, %v1385_v22, %v1384_v30  ;;  %v1729_v18 = vsel %vm921_vm1, %v1717_v14, 0.0  ;;  %v1721_v22 = vmul.f32 %v4471_v17, %v5237_v59  ;;  %v1752_v30 = vld [vmem:[%s5181_s9 + $0x2a] sm:$0x1] }
 0x15d   : > { %v1370_v28 = vpop.permute.xlu1 %1369  ;;  %v1735_v20 = vsel %vm921_vm1, %v1719_v19, 0.0 }
 0x15e   : > { %v1387_v31 = vrot.slane %v1370_v28, 5  ;;  %v1741_v24 = vsel %vm921_vm1, %v1721_v22, 0.0  ;;  %v1747_v28 = vld [vmem:[%s5181_s9 + $0x2] sm:$0x1] }
 0x160   : > { %v1388_v34 = vsel %vm985_vm4, %v1387_v31, %v1386_v33  ;;  %1733 = vadd.xlane.f32.xlu1 %v1732_v29  ;;  %v1750_v29 = vld [vmem:[%s5181_s9 + $0x1a] sm:$0x1] }
 0x161   : > { %v1376_v40 = vpop.permute.xlu1 %1375  ;;  %v1390_v47 = vsel %vm988_vm5, %v1389_v39, %v1388_v34  ;;  %v1754_v31 = vld [vmem:[%s5181_s9 + $0x3a] sm:$0x1] }
 0x162   : > { %v1391_v45 = vrot.slane %v1376_v40, 3 }
 0x164   : > { %v1392_v50 = vsel %vm991_vm6, %v1391_v45, %v1390_v47  ;;  %1739 = vadd.xlane.f32.xlu1 %v1738_v36 }
 0x165   : > { %v1382_v53 = vpop.permute.xlu1 %1381  ;;  %v1394_v60 = vsel %vm994_vm7, %v1393_v52, %v1392_v50 }
 0x166   : > { %v1395_v56 = vrot.slane %v1382_v53, 1 }
 0x168   : > { %1745 = vadd.xlane.f32.xlu1 %v1744_v54  ;;  %v5389_v61 = vsel %vm997_vm8, %v1395_v56, %v1394_v60 }
 0x169   : > { %vm1397_vm11 = vcmp.lt.s32.totalorder %v5305_v9, %v5389_v61 }
 0x16a   : > { %v1446_v0 = vsel %vm1397_vm11, %v1444_v16, -3.4028235e+38 }
 0x16b   : > { %v1447_v10 = vsel %vm1049_vm9, %v1446_v0, -inf }
 0x16c   : > { %1448 = vmax.xlane.f32.xlu0 %v1447_v10 }
 0x170   : > { %1727 = vadd.xlane.f32.xlu0 %v1726_v13 }
 0x174   : > { %1730 = vadd.xlane.f32.xlu0 %v1729_v18 }
 0x178   : > { %1736 = vadd.xlane.f32.xlu0 %v1735_v20 }
 0x179   : > { %1759 = vperm.xlu1 %4647, %v1748_v23  }
 0x17c   : > { %1742 = vadd.xlane.f32.xlu0 %v1741_v24 }
 0x17d   : > { %1762 = vperm.xlu1 %4647, %v1749_v26  }
 0x181   : > { %1768 = vperm.xlu1 %4647, %v1751_v3  }
 0x185   : > { %1774 = vperm.xlu1 %4647, %v1753_v4  }
 0x192   : > { %1756 = vperm.xlu0 %4648, %v1747_v28  }
 0x196   : > { %1765 = vperm.xlu0 %4648, %v1750_v29  }
 0x19a   : > { %1771 = vperm.xlu0 %4648, %v1752_v30  }
 0x19e   : > { %1777 = vperm.xlu0 %4648, %v1754_v31  }
 0x1e1   : > { %v1052_v32 = vpop.xlane.xlu1 %1051 }
 0x1e2   : > { %v1053_v33 = vsub.f32 %v5346_v1, %v1052_v32 }
 0x1e4   : > { %v1054_v5 = vmul.f32 1.442695, %v1053_v33 }
 0x1e5   : > { %v1725_v34 = vpop.xlane.xlu1 %1724 }
 0x1e6   : > { %4650 = vpow2.f32 %v1054_v5  ;;  %v1805_v52 = vrot.slane %v1725_v34, %v5311_v12 }
 0x1e9   : > { %v1734_v36 = vpop.xlane.xlu1 %1733 }
 0x1ea   : > { %v1817_v60 = vrot.slane %v1734_v36, %v5311_v12 }
 0x1ed   : > { %v1740_v41 = vpop.xlane.xlu1 %1739 }
 0x1ee   : > { %v1825_v15 = vrot.slane %v1740_v41, %v5311_v12 }
 0x1f1   : > { %v1746_v45 = vpop.xlane.xlu1 %1745 }
 0x1f2   : > { %v1833_v4 = vrot.slane %v1746_v45, %v5311_v12 }
 0x1f3   : > { %v4651_v38 = vpop.eup %4650 }
 0x1f4   : > { %v5422_v7 = vsel %vm999_vm10, %v4651_v38, 0.0  ;;  %vm1162_vm10 = vcmask 57344  }
 0x1f5   : > { %v1449_v39 = vpop.xlane.xlu0 %1448  ;;  %v1057_v40 = vsel %vm1049_vm9, %v5422_v7, 0.0  ;;  %v1760_v47 = vpop.permute.xlu1 %1759 }
 0x1f6   : > { %1058 = vadd.xlane.f32.xlu0 %v1057_v40  ;;  %v1450_v49 = vsub.f32 %v1446_v0, %v1449_v39  ;;  %v1779_v54 = vrot.slane %v1760_v47, 7  ;;  %v4474_v39 = vld [vmem:[%s5179_s27 + $0x58] sm:$0xff] }
 0x1f8   : > { %v1451_v11 = vmul.f32 1.442695, %v1450_v49  ;;  %v4479_v49 = vld [vmem:[%s5179_s27 + $0x198] sm:$0xff] }
 0x1f9   : > { %v1728_v42 = vpop.xlane.xlu0 %1727  ;;  %v1763_v51 = vpop.permute.xlu1 %1762 }
 0x1fa   : > { %v1809_v58 = vrot.slane %v1728_v42, %v5311_v12  ;;  %4652 = vpow2.f32 %v1451_v11  ;;  %v1781_v16 = vrot.slane %v1763_v51, 6  ;;  %v2112_v42 = vmul.f32 %v4474_v39, %v5224_v48  ;;  %v2143_v11 = vld [vmem:[%s5181_s9 + $0x3] sm:$0x1] }
 0x1fc   : > { %v1834_v62 = vsel %vm979_vm2, %v1809_v58, %v1805_v52  ;;  %v2145_v52 = vld [vmem:[%s5181_s9 + $0x13] sm:$0x1]  ;;  %v2146_v58 = vld [vmem:[%s5181_s9 + $0x1b] sm:$0x1] }
 0x1fd   : > { %v1731_v43 = vpop.xlane.xlu0 %1730  ;;  %v1769_v56 = vpop.permute.xlu1 %1768 }
 0x1fe   : > { %v1813_v6 = vrot.slane %v1731_v43, %v5311_v12  ;;  %v1785_v18 = vrot.slane %v1769_v56, 4  ;;  %v4477_v43 = vld [vmem:[%s5179_s27 + $0x118] sm:$0xff] }
 0x1ff   : > { %v2115_v47 = vmul.f32 %v4477_v43, %v5208_v37 }
 0x200   : > { %v1835_v0 = vsel %vm982_vm3, %v1813_v6, %v1834_v62 }
 0x201   : > { %v1737_v1 = vpop.xlane.xlu0 %1736  ;;  %v1836_v19 = vsel %vm985_vm4, %v1817_v60, %v1835_v0  ;;  %v1775_v22 = vpop.permute.xlu1 %1774  ;;  %v2131_v61 = vsel %vm921_vm1, %v2115_v47, 0.0  ;;  %v4473_v60 = vld [vmem:[%s5179_s27 + $0x18] sm:$0xff] }
 0x202   : > { %v1821_v2 = vrot.slane %v1737_v1, %v5311_v12  ;;  %v1789_v28 = vrot.slane %v1775_v22, 2  ;;  %v2122_v1 = vsel %vm921_vm1, %v2112_v42, 0.0  ;;  %v4475_v0 = vld [vmem:[%s5179_s27 + $0x98] sm:$0xff] }
 0x203   : > { %v4480_v22 = vld [vmem:[%s5179_s27 + $0x1d8] sm:$0xff] }
 0x204   : > { %v1837_v20 = vsel %vm988_vm5, %v1821_v2, %v1836_v19  ;;  %v4478_v19 = vld [vmem:[%s5179_s27 + $0x158] sm:$0xff] }
 0x205   : > { %v1743_v50 = vpop.xlane.xlu0 %1742  ;;  %v1838_v30 = vsel %vm991_vm6, %v1825_v15, %v1837_v20  ;;  %v2116_v20 = vmul.f32 %v4478_v19, %v5220_v46 }
 0x206   : > { %v1829_v23 = vrot.slane %v1743_v50, %v5311_v12  ;;  %v2117_v50 = vmul.f32 %v4479_v49, %v5237_v59 }
 0x207   : > { %v4653_v34 = vpop.eup %4652 }
 0x208   : > { %v1839_v32 = vsel %vm994_vm7, %v1829_v23, %v1838_v30  ;;  %v5456_v41 = vsel %vm1397_vm11, %v4653_v34, 0.0  ;;  %v2137_v51 = vsel %vm921_vm1, %v2117_v50, 0.0  ;;  %v2134_v23 = vsel %vm921_vm1, %v2116_v20, 0.0  ;;  %v1067_v20 = vld [vmem:[%s5183_s17 + $0x8] sm:$0x1] }
 0x209   : > { %v1840_v36 = vsel %vm997_vm8, %v1833_v4, %v1839_v32  ;;  %v1454_v45 = vsel %vm1049_vm9, %v5456_v41, 0.0  ;;  %v2147_v4 = vld [vmem:[%s5181_s9 + $0x23] sm:$0x1] }
 0x20d   : > { %v1757_v53 = vpop.permute.xlu0 %1756 }
 0x20e   : > { %v1780_v57 = vsel %vm979_vm2, %v1779_v54, %v1757_v53  ;;  %v2148_v53 = vld [vmem:[%s5181_s9 + $0x2b] sm:$0x1]  ;;  %v2150_v54 = vld [vmem:[%s5181_s9 + $0x3b] sm:$0x1] }
 0x20f   : > { %v1782_v13 = vsel %vm982_vm3, %v1781_v16, %v1780_v57  ;;  %v2111_v16 = vmul.f32 %v4473_v60, %v5205_v35 }
 0x211   : > { %v1766_v8 = vpop.permute.xlu0 %1765 }
 0x212   : > { %v1783_v10 = vrot.slane %v1766_v8, 5 }
 0x214   : > { %v1784_v14 = vsel %vm985_vm4, %v1783_v10, %v1782_v13  ;;  %v2119_v10 = vsel %vm921_vm1, %v2111_v16, 0.0  ;;  %v2113_v13 = vmul.f32 %v4475_v0, %v5216_v44 }
 0x215   : > { %v1772_v17 = vpop.permute.xlu0 %1771  ;;  %v1786_v26 = vsel %vm988_vm5, %v1785_v18, %v1784_v14  ;;  %v4476_v14 = vld [vmem:[%s5179_s27 + $0xd8] sm:$0xff] }
 0x216   : > { %v1787_v24 = vrot.slane %v1772_v17, 3  ;;  %v2125_v15 = vsel %vm921_vm1, %v2113_v13, 0.0  ;;  %v2114_v18 = vmul.f32 %v4476_v14, %v5231_v55 }
 0x218   : > { %v1788_v3 = vsel %vm991_vm6, %v1787_v24, %v1786_v26  ;;  %v2128_v17 = vsel %vm921_vm1, %v2114_v18, 0.0  ;;  %v2118_v24 = vmul.f32 %v4480_v22, %v5243_v63 }
 0x219   : > { %v1778_v29 = vpop.permute.xlu0 %1777  ;;  %v1790_v33 = vsel %vm994_vm7, %v1789_v28, %v1788_v3  ;;  %v2144_v3 = vld [vmem:[%s5181_s9 + $0xb] sm:$0x1]  ;;  %v2149_v28 = vld [vmem:[%s5181_s9 + $0x33] sm:$0x1] }
 0x21a   : > { %v1791_v31 = vrot.slane %v1778_v29, 1  ;;  %v2140_v26 = vsel %vm921_vm1, %v2118_v24, 0.0 }
 0x21c   : > { %v1792_v5 = vsel %vm997_vm8, %v1791_v31, %v1790_v33 }
 0x21d   : > { %vm1793_vm12 = vcmp.lt.s32.totalorder %v5305_v9, %v1792_v5 }
 0x21e   : > { %v1842_v38 = vsel %vm1793_vm12, %v1840_v36, -3.4028235e+38 }
 0x21f   : > { %v1843_v40 = vsel %vm1049_vm9, %v1842_v38, -inf }
 0x220   : > { %1844 = vmax.xlane.f32.xlu1 %v1843_v40 }
 0x224   : > { %1455 = vadd.xlane.f32.xlu1 %v1454_v45 }
 0x228   : > { %2123 = vadd.xlane.f32.xlu1 %v2122_v1 }
 0x22c   : > { %2132 = vadd.xlane.f32.xlu1 %v2131_v61 }
 0x230   : > { %2138 = vadd.xlane.f32.xlu1 %v2137_v51 }
 0x241   : > { %2152 = vperm.xlu1 %4647, %v2143_v11  }
 0x245   : > { %2158 = vperm.xlu1 %4647, %v2145_v52  }
 0x249   : > { %2161 = vperm.xlu1 %4647, %v2146_v58  }
 0x24d   : > { %2167 = vperm.xlu1 %4647, %v2148_v53  }
 0x251   : > { %2173 = vperm.xlu1 %4647, %v2150_v54  }
 0x27f   : > { %v1059_v31 = vpop.xlane.xlu0 %1058 }
 0x280   : > { %vm1060_vm13 = vcmp.gt.f32.partialorder %v1059_v31, 0.0 }
 0x2a9   : > { %v1845_v6 = vpop.xlane.xlu1 %1844 }
 0x2aa   : > { %v1846_v56 = vsub.f32 %v1842_v38, %v1845_v6  ;;  %v5503_v6 = vsel %vm1060_vm13, %v1059_v31, 1.0  ;;  %v1082_v31 = vrot.slane %v1067_v20, 7 }
 0x2ac   : > { %v1847_v57 = vmul.f32 1.442695, %v1846_v56 }
 0x2ad   : > { %v1456_v29 = vpop.xlane.xlu1 %1455 }
 0x2ae   : > { %4654 = vpow2.f32 %v1847_v57  ;;  %vm1457_vm14 = vcmp.gt.f32.partialorder %v1456_v29, 0.0 }
 0x2af   : > { %4656 = vrcp.f32 %v5503_v6  ;;  %v5516_v22 = vsel %vm1457_vm14, %v1456_v29, 1.0 }
 0x2b0   : > { %4658 = vrcp.f32 %v5516_v22 }
 0x2b1   : > { %v2124_v30 = vpop.xlane.xlu1 %2123 }
 0x2b2   : > { %v2205_v1 = vrot.slane %v2124_v30, %v5311_v12  ;;  %v1068_v30 = vld [vmem:[%s5183_s17 + $0x10] sm:$0x1] }
 0x2b5   : > { %v2133_v32 = vpop.xlane.xlu1 %2132 }
 0x2b6   : > { %v2217_v56 = vrot.slane %v2133_v32, %v5311_v12 }
 0x2b9   : > { %v2139_v34 = vpop.xlane.xlu1 %2138 }
 0x2bb   : > { %v4655_v62 = vpop.eup %4654 }
 0x2bc   : > { %v5477_v8 = vsel %vm1793_vm12, %v4655_v62, 0.0 }
 0x2bd   : > { %v1850_v2 = vsel %vm1049_vm9, %v5477_v8, 0.0  ;;  %v2153_v38 = vpop.permute.xlu1 %2152 }
 0x2be   : > { %1851 = vadd.xlane.f32.xlu0 %v1850_v2 }
 0x2c1   : > { %v2159_v40 = vpop.permute.xlu1 %2158 }
 0x2c2   : > { %2120 = vadd.xlane.f32.xlu0 %v2119_v10  ;;  %v2177_v52 = vrot.slane %v2159_v40, 6  ;;  %v1069_v40 = vld [vmem:[%s5183_s17 + $0x18] sm:$0x1] }
 0x2c5   : > { %v2162_v43 = vpop.permute.xlu1 %2161 }
 0x2c6   : > { %2126 = vadd.xlane.f32.xlu0 %v2125_v15  ;;  %v2179_v58 = vrot.slane %v2162_v43, 5  ;;  %v2225_v15 = vrot.slane %v2139_v34, %v5311_v12  ;;  %v1464_v34 = vld [vmem:[%s5183_s17 + $0x9] sm:$0x1] }
 0x2c9   : > { %v2168_v50 = vpop.permute.xlu1 %2167 }
 0x2ca   : > { %2129 = vadd.xlane.f32.xlu0 %v2128_v17  ;;  %v2183_v18 = vrot.slane %v2168_v50, 3  ;;  %v1086_v50 = vrot.slane %v1069_v40, 5 }
 0x2cd   : > { %v2174_v13 = vpop.permute.xlu1 %2173 }
 0x2ce   : > { %2135 = vadd.xlane.f32.xlu0 %v2134_v23 }
 0x2d2   : > { %2141 = vadd.xlane.f32.xlu0 %v2140_v26 }
 0x2e8   : > { %2155 = vperm.xlu0 %4648, %v2144_v3   ;;  %v2187_v3 = vrot.slane %v2174_v13, 1  ;;  %v1862_v13 = vld [vmem:[%s5183_s17 + $0x1a] sm:$0x1] }
 0x2ec   : > { %2164 = vperm.xlu0 %4648, %v2147_v4  }
 0x2f0   : > { %2170 = vperm.xlu0 %4648, %v2149_v28  }
 0x347   : > { %v1852_v33 = vpop.xlane.xlu0 %1851 }
 0x348   : > { %vm1853_vm15 = vcmp.gt.f32.partialorder %v1852_v33, 0.0 }
 0x34b   : > { %v2121_v5 = vpop.xlane.xlu0 %2120 }
 0x34c   : > { %v2201_v47 = vrot.slane %v2121_v5, %v5311_v12  ;;  %v1066_v5 = vld [vmem:[%s5183_s17] sm:$0x1] }
 0x34e   : > { %v2230_v53 = vsel %vm979_vm2, %v2205_v1, %v2201_v47  ;;  %v1479_v1 = vrot.slane %v1464_v34, 7  ;;  %v1463_v47 = vld [vmem:[%s5183_s17 + $0x1] sm:$0x1]  ;;  %v1469_v34 = vld [vmem:[%s5183_s17 + $0x31] sm:$0x1] }
 0x34f   : > { %v2127_v36 = vpop.xlane.xlu0 %2126 }
 0x350   : > { %v2209_v49 = vrot.slane %v2127_v36, %v5311_v12  ;;  %v5530_v36 = vsel %vm1853_vm15, %v1852_v33, 1.0  ;;  %v1083_v33 = vsel %vm979_vm2, %v1082_v31, %v1066_v5 }
 0x351   : > { %4660 = vrcp.f32 %v5530_v36 }
 0x352   : > { %v2231_v57 = vsel %vm982_vm3, %v2209_v49, %v2230_v53  ;;  %v1860_v49 = vld [vmem:[%s5183_s17 + $0xa] sm:$0x1]  ;;  %v1861_v53 = vld [vmem:[%s5183_s17 + $0x12] sm:$0x1] }
 0x353   : > { %v2130_v39 = vpop.xlane.xlu0 %2129 }
 0x354   : > { %v2213_v51 = vrot.slane %v2130_v39, %v5311_v12 }
 0x356   : > { %v2232_v16 = vsel %vm985_vm4, %v2213_v51, %v2231_v57 }
 0x357   : > { %v2136_v42 = vpop.xlane.xlu0 %2135  ;;  %v2233_v19 = vsel %vm988_vm5, %v2217_v56, %v2232_v16  ;;  %v1071_v56 = vld [vmem:[%s5183_s17 + $0x28] sm:$0x1] }
 0x358   : > { %v2221_v0 = vrot.slane %v2136_v42, %v5311_v12  ;;  %v1084_v42 = vrot.slane %v1068_v30, 6  ;;  %v1073_v30 = vld [vmem:[%s5183_s17 + $0x38] sm:$0x1] }
 0x35a   : > { %v2234_v23 = vsel %vm991_vm6, %v2221_v0, %v2233_v19  ;;  %v1085_v51 = vsel %vm982_vm3, %v1084_v42, %v1083_v33  ;;  %v1467_v0 = vld [vmem:[%s5183_s17 + $0x21] sm:$0x1] }
 0x35b   : > { %v2142_v45 = vpop.xlane.xlu0 %2141  ;;  %v2235_v32 = vsel %vm994_vm7, %v2225_v15, %v2234_v23  ;;  %v1087_v16 = vsel %vm985_vm4, %v1086_v50, %v1085_v51  ;;  %v1072_v15 = vld [vmem:[%s5183_s17 + $0x30] sm:$0x1]  ;;  %v1468_v23 = vld [vmem:[%s5183_s17 + $0x29] sm:$0x1]  ;;  %v1489_v50 = vrot.slane %v1469_v34, 2 }
 0x35c   : > { %v2229_v24 = vrot.slane %v2142_v45, %v5311_v12  ;;  %v1465_v45 = vld [vmem:[%s5183_s17 + $0x11] sm:$0x1]  ;;  %v1092_v31 = vrot.slane %v1072_v15, 2 }
 0x363   : > { %v2156_v61 = vpop.permute.xlu0 %2155 }
 0x364   : > { %v2175_v11 = vrot.slane %v2156_v61, 7  ;;  %v1070_v61 = vld [vmem:[%s5183_s17 + $0x20] sm:$0x1] }
 0x365   : > { %v1088_v57 = vrot.slane %v1070_v61, 4  ;;  %v1470_v61 = vld [vmem:[%s5183_s17 + $0x39] sm:$0x1] }
 0x366   : > { %v2176_v54 = vsel %vm979_vm2, %v2175_v11, %v2153_v38  ;;  %v2236_v38 = vsel %vm997_vm8, %v2229_v24, %v2235_v32  ;;  %v1466_v11 = vld [vmem:[%s5183_s17 + $0x19] sm:$0x1]  ;;  %v1485_v24 = vrot.slane %v1467_v0, 4 }
 0x367   : > { %v2178_v60 = vsel %vm982_vm3, %v2177_v52, %v2176_v54  ;;  %v2165_v62 = vpop.permute.xlu0 %2164  ;;  %v1481_v52 = vrot.slane %v1465_v45, 6  ;;  %v1875_v54 = vrot.slane %v1860_v49, 7  ;;  %v1089_v20 = vsel %vm988_vm5, %v1088_v57, %v1087_v16  ;;  %v1866_v16 = vld [vmem:[%s5183_s17 + $0x3a] sm:$0x1] }
 0x368   : > { %v2180_v2 = vsel %vm985_vm4, %v2179_v58, %v2178_v60  ;;  %v2181_v10 = vrot.slane %v2165_v62, 4  ;;  %v1480_v58 = vsel %vm979_vm2, %v1479_v1, %v1463_v47  ;;  %v1859_v60 = vld [vmem:[%s5183_s17 + $0x2] sm:$0x1]  ;;  %v4657_v62 = vpop.eup %4656  ;;  %v1094_v1 = vrot.slane %v1073_v30, 1 }
 0x369   : > { %v1876_v19 = vsel %vm979_vm2, %v1875_v54, %v1859_v60  ;;  %v1491_v57 = vrot.slane %v1470_v61, 1 }
 0x36a   : > { %v2182_v14 = vsel %vm988_vm5, %v2181_v10, %v2180_v2  ;;  %v1483_v2 = vrot.slane %v1466_v11, 5  ;;  %v1482_v10 = vsel %vm982_vm3, %v1481_v52, %v1480_v58  ;;  %v1865_v11 = vld [vmem:[%s5183_s17 + $0x32] sm:$0x1] }
 0x36b   : > { %v2171_v17 = vpop.permute.xlu0 %2170  ;;  %v2184_v4 = vsel %vm991_vm6, %v2183_v18, %v2182_v14  ;;  %v1877_v14 = vrot.slane %v1861_v53, 6  ;;  %v1090_v18 = vrot.slane %v1071_v56, 3  ;;  %v1885_v0 = vrot.slane %v1865_v11, 2 }
 0x36c   : > { %v2185_v26 = vrot.slane %v2171_v17, 2  ;;  %v1063_v17 = vmul.f32 %v4657_v62, %v5503_v6  ;;  %v1487_v6 = vrot.slane %v1468_v23, 3  ;;  %v4482_v23 = vld [vmem:[%s5179_s27 + $0x60] sm:$0xff] }
 0x36d   : > { %v1878_v32 = vsel %vm982_vm3, %v1877_v14, %v1876_v19  ;;  %v1091_v5 = vsel %vm991_vm6, %v1090_v18, %v1089_v20 }
 0x36e   : > { %v2186_v28 = vsel %vm994_vm7, %v2185_v26, %v2184_v4  ;;  %v4659_v26 = vpop.eup %4658  ;;  %v1863_v4 = vld [vmem:[%s5183_s17 + $0x22] sm:$0x1]  ;;  %v1093_v49 = vsel %vm994_vm7, %v1092_v31, %v1091_v5 }
 0x36f   : > { %v5525_v29 = vsel %vm997_vm8, %v2187_v3, %v2186_v28  ;;  %v1484_v3 = vsel %vm985_vm4, %v1483_v2, %v1482_v10  ;;  %v1879_v28 = vrot.slane %v1862_v13, 5  ;;  %v1460_v40 = vmul.f32 %v4659_v26, %v5516_v22  ;;  %v4661_v45 = vpop.eup %4660 }
 0x370   : > { %vm2189_vm0 = vcmp.lt.s32.totalorder %v5305_v9, %v5525_v29  ;;  %v1486_v42 = vsel %vm988_vm5, %v1485_v24, %v1484_v3  ;;  %v1881_v33 = vrot.slane %v1863_v4, 4  ;;  %v1856_v22 = vmul.f32 %v4661_v45, %v5530_v36  ;;  %v4483_v24 = vld [vmem:[%s5179_s27 + $0xa0] sm:$0xff] }
 0x371   : > { %v5538_v39 = vsel %vm2189_vm0, %v2236_v38, -3.4028235e+38  ;;  %v1064_v38 = vsub.f32 2.0, %v1063_v17  ;;  %v1880_v47 = vsel %vm985_vm4, %v1879_v28, %v1878_v32  ;;  %v1488_v51 = vsel %vm991_vm6, %v1487_v6, %v1486_v42  ;;  %v4485_v4 = vld [vmem:[%s5179_s27 + $0x120] sm:$0xff] }
 0x372   : > { %v2239_v43 = vsel %vm1049_vm9, %v5538_v39, -inf  ;;  %v1461_v58 = vsub.f32 2.0, %v1460_v40  ;;  %v1882_v54 = vsel %vm988_vm5, %v1881_v33, %v1880_v47  ;;  %v1095_v56 = vsel %vm997_vm8, %v1094_v1, %v1093_v49  ;;  %v4487_v32 = vld [vmem:[%s5179_s27 + $0x1a0] sm:$0xff] }
 0x373   : > { %2240 = vmax.xlane.f32.xlu0 %v2239_v43  ;;  %v1864_v43 = vld [vmem:[%s5183_s17 + $0x2a] sm:$0x1]  ;;  %v1065_v53 = vmul.f32 %v4657_v62, %v1064_v38  ;;  %v1490_v60 = vsel %vm994_vm7, %v1489_v50, %v1488_v51  ;;  %v1857_v10 = vsub.f32 2.0, %v1856_v22  ;;  %v1887_v62 = vrot.slane %v1866_v16, 1  ;;  %v4481_v47 = vld [vmem:[%s5179_s27 + $0x20] sm:$0xff] }
 0x374   : > { %v1883_v52 = vrot.slane %v1864_v43, 3  ;;  %v1462_v14 = vmul.f32 %v4659_v26, %v1461_v58  ;;  %v1492_v36 = vsel %vm997_vm8, %v1491_v57, %v1490_v60  ;;  %v2508_v3 = vmul.f32 %v4482_v23, %v5224_v48 }
 0x375   : > { %v1097_v13 = vmul.f32 %v1095_v56, %v1065_v53  ;;  %v1858_v19 = vmul.f32 %v4661_v45, %v1857_v10  ;;  %v2509_v26 = vmul.f32 %v4483_v24, %v5216_v44  ;;  %v2511_v31 = vmul.f32 %v4485_v4, %v5208_v37 }
 0x376   : > { %v1884_v2 = vsel %vm991_vm6, %v1883_v52, %v1882_v54  ;;  %v1494_v18 = vmul.f32 %v1492_v36, %v1462_v14  ;;  %v2518_v28 = vsel %vm921_vm1, %v2508_v3, 0.0  ;;  %v2513_v34 = vmul.f32 %v4487_v32, %v5237_v59 }
 0x377   : > { %v1886_v15 = vsel %vm994_vm7, %v1885_v0, %v1884_v2  ;;  %v2521_v30 = vsel %vm921_vm1, %v2509_v26, 0.0  ;;  %v2527_v5 = vsel %vm921_vm1, %v2511_v31, 0.0  ;;  %v2507_v51 = vmul.f32 %v4481_v47, %v5205_v35 }
 0x378   : > { %v1888_v17 = vsel %vm997_vm8, %v1887_v62, %v1886_v15  ;;  %v2533_v6 = vsel %vm921_vm1, %v2513_v34, 0.0 }
 0x379   : > { %v1890_v20 = vmul.f32 %v1888_v17, %v1858_v19  ;;  %v2515_v14 = vsel %vm921_vm1, %v2507_v51, 0.0 }
 0x389   : > { %1100 = vperm.xlu0 %4648, %v1097_v13  }
 0x38d   : > { %1497 = vperm.xlu0 %4648, %v1494_v18   ;;  %v4484_v18 = vld [vmem:[%s5179_s27 + $0xe0] sm:$0xff] }
 0x38e   : > { %v2510_v31 = vmul.f32 %v4484_v18, %v5231_v55 }
 0x390   : > { %v2524_v47 = vsel %vm921_vm1, %v2510_v31, 0.0 }
 0x391   : > { %1893 = vperm.xlu0 %4648, %v1890_v20  }
 0x3b0   : > { %2519 = vadd.xlane.f32.xlu0 %v2518_v28 }
 0x3b4   : > { %2522 = vadd.xlane.f32.xlu0 %v2521_v30 }
 0x3b8   : > { %2528 = vadd.xlane.f32.xlu0 %v2527_v5 }
 0x3bc   : > { %2534 = vadd.xlane.f32.xlu0 %v2533_v6 }
 0x3fc   : > { %v2241_v38 = vpop.xlane.xlu0 %2240 }
 0x3fd   : > { %v2242_v40 = vsub.f32 %v5538_v39, %v2241_v38 }
 0x3ff   : > { %v2243_v42 = vmul.f32 1.442695, %v2242_v40  ;;  %v4486_v40 = vld [vmem:[%s5179_s27 + $0x160] sm:$0xff] }
 0x401   : > { %4662 = vpow2.f32 %v2243_v42 }
 0x404   : > { %v1101_v43 = vpop.permute.xlu0 %1100 }
 0x405   : > { %v5601_v33 = vmul.f32 %v1101_v43, %v5422_v7 }
 0x407   : > { %v1105_v45 = vcombine.high %v5601_v33, %v5601_v33  ;;  %v1112_v1 = vrot.slane %v5601_v33, %v5193_v25 }
 0x408   : > { %v1498_v49 = vpop.permute.xlu0 %1497 }
 0x409   : > { %v1119_v61 = vrot.slane %v1105_v45, %v5193_v25  ;;  %v1120_v39 = vcombine.high %v1112_v1, %v1112_v1  ;;  %v1128_v50 = vrot.slane %v1112_v1, %v5193_v25  ;;  %v5611_v7 = vmul.f32 %v1498_v49, %v5456_v41 }
 0x40a   : > { %v2512_v49 = vmul.f32 %v4486_v40, %v5220_v46 }
 0x40b   : > { %v1121_v11 = vcombine.high %v1119_v61, %v1119_v61  ;;  %v1135_v52 = vrot.slane %v1119_v61, %v5193_v25  ;;  %v1142_v58 = vrot.slane %v1120_v39, %v5193_v25  ;;  %v1150_v22 = vcombine.high %v1128_v50, %v1128_v50  ;;  %1163 = vst.msk [vmem:[%s5186_s8] sm:$0x1] %vm1162_vm10, %v1128_v50  ;;  %v4488_v61 = vld [vmem:[%s5179_s27 + $0x1e0] sm:$0xff] }
 0x40c   : > { %v1502_v53 = vcombine.high %v5611_v7, %v5611_v7  ;;  %v1509_v54 = vrot.slane %v5611_v7, %v5193_v25  ;;  %v1894_v41 = vpop.permute.xlu0 %1893  ;;  %v2530_v39 = vsel %vm921_vm1, %v2512_v49, 0.0  ;;  %v2514_v50 = vmul.f32 %v4488_v61, %v5243_v63 }
 0x40d   : > { %v1149_v56 = vrot.slane %v1121_v11, %v5193_v25  ;;  %v1151_v57 = vcombine.high %v1135_v52, %v1135_v52  ;;  %v1152_v60 = vcombine.high %v1142_v58, %v1142_v58  ;;  %1164 = vst.msk [vmem:[%s5186_s8 + $0x8] sm:$0x1] %vm1162_vm10, %v1142_v58  ;;  %1165 = vst.msk [vmem:[%s5186_s8 + $0x10] sm:$0x1] %vm1162_vm10, %v1150_v22  ;;  %v5711_v22 = vsub.s32 3, %v5190_v21 }
 0x40e   : > { %1167 = vst.msk [vmem:[%s5186_s8 + $0x20] sm:$0x1] %vm1162_vm10, %v1135_v52  ;;  %v5630_v16 = vmul.f32 %v1894_v41, %v5477_v8  ;;  %v4663_v0 = vpop.eup %4662  ;;  %v1516_v2 = vrot.slane %v1502_v53, %v5193_v25  ;;  %v1517_v10 = vcombine.high %v1509_v54, %v1509_v54  ;;  %v1525_v13 = vrot.slane %v1509_v54, %v5193_v25 }
 0x40f   : > { %v1153_v36 = vcombine.high %v1149_v56, %v1149_v56  ;;  %1166 = vst.msk [vmem:[%s5186_s8 + $0x18] sm:$0x1] %vm1162_vm10, %v1152_v60  ;;  %1168 = vst.msk [vmem:[%s5186_s8 + $0x28] sm:$0x1] %vm1162_vm10, %v1149_v56  ;;  %v5648_v15 = vsel %vm2189_vm0, %v4663_v0, 0.0  ;;  %v2536_v51 = vsel %vm921_vm1, %v2514_v50, 0.0  ;;  %v1175_v11 = vrot.slane %v5601_v33, %v5197_v27 }
 0x410   : > { %1169 = vst.msk [vmem:[%s5186_s8 + $0x30] sm:$0x1] %vm1162_vm10, %v1151_v57  ;;  %v1898_v8 = vcombine.high %v5630_v16, %v5630_v16  ;;  %v1905_v62 = vrot.slane %v5630_v16, %v5193_v25  ;;  %v1518_v19 = vcombine.high %v1516_v2, %v1516_v2  ;;  %v1532_v17 = vrot.slane %v1516_v2, %v5193_v25 }
 0x411   : > { %v1539_v20 = vrot.slane %v1517_v10, %v5193_v25  ;;  %v1547_v23 = vcombine.high %v1525_v13, %v1525_v13  ;;  %1559 = vst.msk [vmem:[%s5186_s8 + $0x1] sm:$0x1] %vm1162_vm10, %v1525_v13  ;;  %1170 = vst.msk [vmem:[%s5186_s8 + $0x38] sm:$0x1] %vm1162_vm10, %v1153_v36  ;;  %v2246_v26 = vsel %vm1049_vm9, %v5648_v15, 0.0  ;;  %v5706_v52 = vsub.s32 1, %v5190_v21 }
 0x412   : > { %v1912_v24 = vrot.slane %v1898_v8, %v5193_v25  ;;  %v1913_v29 = vcombine.high %v1905_v62, %v1905_v62  ;;  %v1921_v3 = vrot.slane %v1905_v62, %v5193_v25  ;;  %v1546_v4 = vrot.slane %v1518_v19, %v5193_v25  ;;  %1563 = vst.msk [vmem:[%s5186_s8 + $0x21] sm:$0x1] %vm1162_vm10, %v1532_v17 }
 0x413   : > { %v1548_v28 = vcombine.high %v1532_v17, %v1532_v17  ;;  %v1549_v30 = vcombine.high %v1539_v20, %v1539_v20  ;;  %1560 = vst.msk [vmem:[%s5186_s8 + $0x9] sm:$0x1] %vm1162_vm10, %v1539_v20  ;;  %1561 = vst.msk [vmem:[%s5186_s8 + $0x11] sm:$0x1] %vm1162_vm10, %v1547_v23  ;;  %2247 = vadd.xlane.f32.xlu1 %v2246_v26  ;;  %v1182_v58 = vrot.slane %v5601_v33, %v5706_v52  ;;  %v2256_v17 = vld [vmem:[%s5183_s17 + $0xb] sm:$0x1] }
 0x414   : > { %v1914_v32 = vcombine.high %v1912_v24, %v1912_v24  ;;  %v1928_v5 = vrot.slane %v1912_v24, %v5193_v25  ;;  %v1935_v34 = vrot.slane %v1913_v29, %v5193_v25  ;;  %v1943_v6 = vcombine.high %v1921_v3, %v1921_v3  ;;  %1955 = vst.msk [vmem:[%s5186_s8 + $0x2] sm:$0x1] %vm1162_vm10, %v1921_v3  ;;  %v2257_v20 = vld [vmem:[%s5183_s17 + $0x13] sm:$0x1]  ;;  %v2255_v24 = vld [vmem:[%s5183_s17 + $0x3] sm:$0x1] }
 0x415   : > { %v1550_v38 = vcombine.high %v1546_v4, %v1546_v4  ;;  %1562 = vst.msk [vmem:[%s5186_s8 + $0x19] sm:$0x1] %vm1162_vm10, %v1549_v30  ;;  %1564 = vst.msk [vmem:[%s5186_s8 + $0x29] sm:$0x1] %vm1162_vm10, %v1546_v4  ;;  %v1196_v53 = vrot.slane %v5601_v33, %v5711_v22  ;;  %v5716_v54 = vsub.s32 5, %v5190_v21  ;;  %v5721_v56 = vsub.s32 7, %v5190_v21 }
 0x416   : > { %1565 = vst.msk [vmem:[%s5186_s8 + $0x31] sm:$0x1] %vm1162_vm10, %v1548_v28  ;;  %v1942_v42 = vrot.slane %v1914_v32, %v5193_v25  ;;  %v1944_v43 = vcombine.high %v1928_v5, %v1928_v5  ;;  %v1945_v45 = vcombine.high %v1935_v34, %v1935_v34  ;;  %1956 = vst.msk [vmem:[%s5186_s8 + $0xa] sm:$0x1] %vm1162_vm10, %v1935_v34  ;;  %v5728_v0 = vsub.s32 2, %v5190_v21 }
 0x417   : > { %1957 = vst.msk [vmem:[%s5186_s8 + $0x12] sm:$0x1] %vm1162_vm10, %v1943_v6  ;;  %1959 = vst.msk [vmem:[%s5186_s8 + $0x22] sm:$0x1] %vm1162_vm10, %v1928_v5  ;;  %2516 = vadd.xlane.f32.xlu1 %v2515_v14  ;;  %v1210_v41 = vrot.slane %v5601_v33, %v5716_v54  ;;  %v1224_v57 = vrot.slane %v5601_v33, %v5721_v56  ;;  %v1571_v60 = vrot.slane %v5611_v7, %v5197_v27  ;;  %v2258_v3 = vld [vmem:[%s5183_s17 + $0x1b] sm:$0x1] }
 0x418   : > { %1566 = vst.msk [vmem:[%s5186_s8 + $0x39] sm:$0x1] %vm1162_vm10, %v1550_v38  ;;  %v1946_v1 = vcombine.high %v1942_v42, %v1942_v42  ;;  %1958 = vst.msk [vmem:[%s5186_s8 + $0x1a] sm:$0x1] %vm1162_vm10, %v1945_v45  ;;  %v1585_v2 = vrot.slane %v5611_v7, %v5728_v0  ;;  %v5733_v10 = vsub.s32 4, %v5190_v21  ;;  %v5738_v14 = vsub.s32 6, %v5190_v21 }
 0x419   : > { %1960 = vst.msk [vmem:[%s5186_s8 + $0x2a] sm:$0x1] %vm1162_vm10, %v1942_v42  ;;  %1961 = vst.msk [vmem:[%s5186_s8 + $0x32] sm:$0x1] %vm1162_vm10, %v1944_v43  ;;  %v1967_v8 = vrot.slane %v5630_v16, %v5197_v27  ;;  %v1974_v62 = vrot.slane %v5630_v16, %v5706_v52  ;;  %v1988_v18 = vrot.slane %v5630_v16, %v5711_v22  ;;  %v2271_v23 = vrot.slane %v2256_v17, 7 }
 0x41a   : > { %1962 = vst.msk [vmem:[%s5186_s8 + $0x3a] sm:$0x1] %vm1162_vm10, %v1946_v1  ;;  %6713 = vst [vmem:[#allocation16_spill] sm:$0xff] %v5721_v56  ;;  %v1599_v13 = vrot.slane %v5611_v7, %v5733_v10  ;;  %v1613_v36 = vrot.slane %v5611_v7, %v5738_v14  ;;  %v2002_v21 = vrot.slane %v5630_v16, %v5716_v54  ;;  %v2273_v26 = vrot.slane %v2257_v20, 6  ;;  %v2259_v30 = vld [vmem:[%s5183_s17 + $0x23] sm:$0x1] }
 0x41b   : > { %2525 = vadd.xlane.f32.xlu1 %v2524_v47  ;;  %v2016_v19 = vrot.slane %v5630_v16, %v5721_v56  ;;  %v2272_v28 = vsel %vm979_vm2, %v2271_v23, %v2255_v24  ;;  %v2275_v31 = vrot.slane %v2258_v3, 5  ;;  %v2260_v5 = vld [vmem:[%s5183_s17 + $0x2b] sm:$0x1]  ;;  %v2277_v34 = vrot.slane %v2259_v30, 4  ;;  %v2261_v38 = vld [vmem:[%s5183_s17 + $0x33] sm:$0x1] }
 0x41c   : > { %v2274_v32 = vsel %vm982_vm3, %v2273_v26, %v2272_v28  ;;  %v2279_v40 = vrot.slane %v2260_v5, 3  ;;  %v2262_v43 = vld [vmem:[%s5183_s17 + $0x3b] sm:$0x1]  ;;  %v2281_v45 = vrot.slane %v2261_v38, 2  ;;  %v4682_v3 = vld [vmem:[%s5179_s27 + $0x40] sm:$0xff] }
 0x41d   : > { %v2276_v6 = vsel %vm985_vm4, %v2275_v31, %v2274_v32  ;;  %v2283_v49 = vrot.slane %v2262_v43, 1 }
 0x41e   : > { %v2278_v42 = vsel %vm988_vm5, %v2277_v34, %v2276_v6  ;;  %v4684_v6 = vld [vmem:[%s5179_s27 + $0xc0] sm:$0xff] }
 0x41f   : > { %2531 = vadd.xlane.f32.xlu1 %v2530_v39  ;;  %v2280_v1 = vsel %vm991_vm6, %v2279_v40, %v2278_v42  ;;  %v4685_v40 = vld [vmem:[%s5179_s27 + $0x140] sm:$0xff] }
 0x420   : > { %v2282_v39 = vsel %vm994_vm7, %v2281_v45, %v2280_v1 }
 0x423   : > { %2537 = vadd.xlane.f32.xlu1 %v2536_v51  ;;  %v2284_v51 = vsel %vm997_vm8, %v2283_v49, %v2282_v39 }
 0x434   : > { %1177 = vbcast.lane.b32.xlu1 %v1175_v11, 256 }
 0x438   : > { %1184 = vbcast.lane.b32.xlu1 %v1182_v58, 256 }
 0x439   : > { %v5799_v5 = vpop.xlane.xlu0 %2519 }
 0x43c   : > { %1198 = vbcast.lane.b32.xlu1 %v1196_v53, 256  ;;  %v1189_v53 = vrot.slane %v5601_v33, %v5728_v0 }
 0x440   : > { %1212 = vbcast.lane.b32.xlu1 %v1210_v41, 256  ;;  %v1203_v41 = vrot.slane %v5601_v33, %v5733_v10 }
 0x444   : > { %1226 = vbcast.lane.b32.xlu1 %v1224_v57, 256  ;;  %v1217_v57 = vrot.slane %v5601_v33, %v5738_v14  ;;  %v1981_v33 = vrot.slane %v5630_v16, %v5728_v0 }
 0x448   : > { %1573 = vbcast.lane.b32.xlu1 %v1571_v60, 256  ;;  %v1578_v60 = vrot.slane %v5611_v7, %v5706_v52 }
 0x44c   : > { %1587 = vbcast.lane.b32.xlu1 %v1585_v2, 256  ;;  %v1592_v2 = vrot.slane %v5611_v7, %v5711_v22 }
 0x450   : > { %1601 = vbcast.lane.b32.xlu1 %v1599_v13, 256  ;;  %v1606_v13 = vrot.slane %v5611_v7, %v5716_v54 }
 0x454   : > { %1615 = vbcast.lane.b32.xlu1 %v1613_v36, 256  ;;  %v1620_v36 = vrot.slane %v5611_v7, %v5721_v56 }
 0x458   : > { %1969 = vbcast.lane.b32.xlu1 %v1967_v8, 256  ;;  %v1995_v8 = vrot.slane %v5630_v16, %v5733_v10 }
 0x45c   : > { %1976 = vbcast.lane.b32.xlu1 %v1974_v62, 256  ;;  %v2009_v62 = vrot.slane %v5630_v16, %v5738_v14 }
 0x460   : > { %1990 = vbcast.lane.b32.xlu1 %v1988_v18, 256 }
 0x464   : > { %2004 = vbcast.lane.b32.xlu1 %v2002_v21, 256 }
 0x468   : > { %2018 = vbcast.lane.b32.xlu1 %v2016_v19, 256 }
 0x49c   : > { %v2248_v29 = vpop.xlane.xlu1 %2247 }
 0x49d   : > { %vm2249_vm11 = vcmp.gt.f32.partialorder %v2248_v29, 0.0 }
 0x49e   : > { %v2250_v4 = vsel %vm2249_vm11, %v2248_v29, 1.0 }
 0x49f   : > { %4664 = vrcp.f32 %v2250_v4 }
 0x4a0   : > { %v5787_v18 = vpop.xlane.xlu1 %2516 }
 0x4a4   : > { %v5789_v21 = vpop.xlane.xlu1 %2525 }
 0x4a8   : > { %v5791_v7 = vpop.xlane.xlu1 %2531 }
 0x4ac   : > { %v4665_v47 = vpop.eup %4664  ;;  %v5793_v19 = vpop.xlane.xlu1 %2537 }
 0x4ad   : > { %v2252_v61 = vmul.f32 %v4665_v47, %v2250_v4  ;;  %v4683_v4 = vld [vmem:[%s5179_s27] sm:$0xff] }
 0x4af   : > { %v2253_v50 = vsub.f32 2.0, %v2252_v61 }
 0x4b0   : > { %v1178_v17 = vpop.permute.xlu1 %1177 }
 0x4b1   : > { %v2254_v11 = vmul.f32 %v4665_v47, %v2253_v50  ;;  %v1228_v16 = vmul.f32 %v4683_v4, %v1178_v17  ;;  %v5803_v47 = vpop.xlane.xlu0 %2522  ;;  %v4688_v17 = vld [vmem:[%s5179_s27 + $0x88] sm:$0xff] }
 0x4b3   : > { %v2286_v58 = vmul.f32 %v2284_v51, %v2254_v11  ;;  %v1236_v30 = vsel %vm921_vm1, %v1228_v16, 0.0 }
 0x4b4   : > { %v1185_v20 = vpop.permute.xlu1 %1184  ;;  %v1237_v34 = vrot.slane %v1236_v30, 4 }
 0x4b5   : > { %2289 = vperm.xlu0 %4648, %v2286_v58   ;;  %v1229_v26 = vmul.f32 %v4682_v3, %v1185_v20 }
 0x4b6   : > { %v1238_v1 = vadd.f32 %v1237_v34, %v1236_v30  ;;  %v4689_v34 = vld [vmem:[%s5179_s27 + $0x108] sm:$0xff] }
 0x4b7   : > { %v1243_v28 = vsel %vm921_vm1, %v1229_v26, 0.0 }
 0x4b8   : > { %v1199_v23 = vpop.permute.xlu1 %1198  ;;  %v1244_v32 = vrot.slane %v1243_v28, 4  ;;  %v1239_v50 = vrot.slane %v1238_v1, 2 }
 0x4b9   : > { %1191 = vbcast.lane.b32.xlu0 %v1189_v53, 256  ;;  %v1231_v38 = vmul.f32 %v4684_v6, %v1199_v23  ;;  %v4686_v53 = vld [vmem:[%s5179_s27 + $0x1c0] sm:$0xff] }
 0x4ba   : > { %v1245_v43 = vadd.f32 %v1244_v32, %v1243_v28 }
 0x4bb   : > { %v1257_v49 = vsel %vm921_vm1, %v1231_v38, 0.0 }
 0x4bc   : > { %v1213_v24 = vpop.permute.xlu1 %1212  ;;  %v1246_v39 = vrot.slane %v1245_v43, 2  ;;  %v1258_v51 = vrot.slane %v1257_v49, 4 }
 0x4bd   : > { %1205 = vbcast.lane.b32.xlu0 %v1203_v41, 256  ;;  %v1233_v42 = vmul.f32 %v4685_v40, %v1213_v24 }
 0x4bf   : > { %v1271_v61 = vsel %vm921_vm1, %v1233_v42, 0.0 }
 0x4c0   : > { %v1227_v29 = vpop.permute.xlu1 %1226  ;;  %v1272_v11 = vrot.slane %v1271_v61, 4 }
 0x4c1   : > { %1219 = vbcast.lane.b32.xlu0 %v1217_v57, 256  ;;  %v1235_v41 = vmul.f32 %v4686_v53, %v1227_v29  ;;  %v1247_v57 = vadd.f32 %v1246_v39, %v1245_v43 }
 0x4c3   : > { %v1248_v23 = vrot.slane %v1247_v57, 1 }
 0x4c4   : > { %v1574_v31 = vpop.permute.xlu1 %1573 }
 0x4c5   : > { %1580 = vbcast.lane.b32.xlu0 %v1578_v60, 256  ;;  %v5808_v60 = vpop.xlane.xlu0 %2528 }
 0x4c8   : > { %v1588_v45 = vpop.permute.xlu1 %1587 }
 0x4c9   : > { %1594 = vbcast.lane.b32.xlu0 %v1592_v2, 256  ;;  %v1240_v2 = vadd.f32 %v1239_v50, %v1238_v1  ;;  %v1626_v20 = vmul.f32 %v4688_v17, %v1588_v45  ;;  %v5814_v28 = vpop.xlane.xlu0 %2534 }
 0x4cb   : > { %v1241_v3 = vrot.slane %v1240_v2, 1  ;;  %v1646_v30 = vsel %vm921_vm1, %v1626_v20, 0.0 }
 0x4cc   : > { %v1602_v58 = vpop.permute.xlu1 %1601  ;;  %v1647_v45 = vrot.slane %v1646_v30, 4 }
 0x4cd   : > { %1608 = vbcast.lane.b32.xlu0 %v1606_v13, 256  ;;  %v4687_v13 = vld [vmem:[%s5179_s27 + $0x8] sm:$0xff]  ;;  %v1628_v6 = vmul.f32 %v4689_v34, %v1602_v58  ;;  %v1242_v38 = vadd.f32 %v1241_v3, %v1240_v2 }
 0x4d0   : > { %v1616_v24 = vpop.permute.xlu1 %1615 }
 0x4d1   : > { %1622 = vbcast.lane.b32.xlu0 %v1620_v36, 256  ;;  %v1624_v36 = vmul.f32 %v4687_v13, %v1574_v31  ;;  %v1249_v31 = vadd.f32 %v1248_v23, %v1247_v57  ;;  %v4691_v23 = vld [vmem:[%s5179_s27 + $0x80] sm:$0xff] }
 0x4d3   : > { %v1632_v26 = vsel %vm921_vm1, %v1624_v36, 0.0  ;;  %v5826_v39 = vsel %vm979_vm2, %v1249_v31, %v1242_v38 }
 0x4d4   : > { %v1633_v32 = vrot.slane %v1632_v26, 4  ;;  %v5820_v1 = vpop.permute.xlu1 %1969 }
 0x4d5   : > { %1983 = vbcast.lane.b32.xlu0 %v1981_v33, 256  ;;  %v1259_v33 = vadd.f32 %v1258_v51, %v1257_v49  ;;  %v1660_v51 = vsel %vm921_vm1, %v1628_v6, 0.0 }
 0x4d6   : > { %v1634_v50 = vadd.f32 %v1633_v32, %v1632_v26  ;;  %v1661_v26 = vrot.slane %v1660_v51, 4 }
 0x4d7   : > { %v1260_v4 = vrot.slane %v1259_v33, 2 }
 0x4d8   : > { %v1635_v3 = vrot.slane %v1634_v50, 2 }
 0x4d9   : > { %1997 = vbcast.lane.b32.xlu0 %v1995_v8, 256  ;;  %v1273_v8 = vadd.f32 %v1272_v11, %v1271_v61  ;;  %v1261_v40 = vadd.f32 %v1260_v4, %v1259_v33  ;;  %v4690_v11 = vld [vmem:[%s5179_s27 + $0x188] sm:$0xff]  ;;  %v1648_v33 = vadd.f32 %v1647_v45, %v1646_v30 }
 0x4da   : > { %v1630_v58 = vmul.f32 %v4690_v11, %v1616_v24 }
 0x4db   : > { %v1274_v29 = vrot.slane %v1273_v8, 2  ;;  %v1262_v2 = vrot.slane %v1261_v40, 1  ;;  %v1649_v38 = vrot.slane %v1648_v33, 2 }
 0x4dc   : > { %v1674_v4 = vsel %vm921_vm1, %v1630_v58, 0.0 }
 0x4dd   : > { %2011 = vbcast.lane.b32.xlu0 %v2009_v62, 256  ;;  %v1285_v62 = vsel %vm921_vm1, %v1235_v41, 0.0  ;;  %v5818_v42 = vadd.f32 %v1274_v29, %v1273_v8  ;;  %v1977_v29 = vpop.permute.xlu1 %1976 }
 0x4de   : > { %v1286_v16 = vrot.slane %v1285_v62, 4 }
 0x4df   : > { %v1276_v13 = vrot.slane %v5818_v42, 1 }
 0x4e0   : > { %v1287_v43 = vadd.f32 %v1286_v16, %v1285_v62 }
 0x4e2   : > { %v1288_v36 = vrot.slane %v1287_v43, 2 }
 0x4e4   : > { %v1289_v6 = vadd.f32 %v1288_v36, %v1287_v43  ;;  %v1675_v36 = vrot.slane %v1674_v4, 4 }
 0x530   : > { %v2290_v49 = vpop.permute.xlu0 %2289 }
 0x531   : > { %v5823_v61 = vmul.f32 %v2290_v49, %v5648_v15 }
 0x533   : > { %v2294_v53 = vcombine.high %v5823_v61, %v5823_v61  ;;  %v2301_v41 = vrot.slane %v5823_v61, %v5193_v25  ;;  %v2370_v57 = vrot.slane %v5823_v61, %v5706_v52  ;;  %v2363_v15 = vrot.slane %v5823_v61, %v5197_v27 }
 0x534   : > { %v1192_v8 = vpop.permute.xlu0 %1191  ;;  %v2384_v16 = vrot.slane %v5823_v61, %v5711_v22  ;;  %v2377_v11 = vrot.slane %v5823_v61, %v5728_v0 }
 0x535   : > { %v2308_v62 = vrot.slane %v2294_v53, %v5193_v25  ;;  %v2309_v17 = vcombine.high %v2301_v41, %v2301_v41  ;;  %v2317_v20 = vrot.slane %v2301_v41, %v5193_v25  ;;  %v1230_v24 = vmul.f32 %v4691_v23, %v1192_v8  ;;  %2372 = vbcast.lane.b32.xlu0 %v2370_v57, 256  ;;  %v4692_v8 = vld [vmem:[%s5179_s27 + $0x100] sm:$0xff] }
 0x536   : > { %2365 = vbcast.lane.b32.xlu1 %v2363_v15, 256  ;;  %v1636_v57 = vadd.f32 %v1635_v3, %v1634_v50  ;;  %v1662_v15 = vadd.f32 %v1661_v26, %v1660_v51  ;;  %v2398_v50 = vrot.slane %v5823_v61, %v5716_v54  ;;  %v5871_v51 = vadd.f32 %v1276_v13, %v5818_v42  ;;  %v1991_v3 = vpop.permute.xlu1 %1990 }
 0x537   : > { %v2310_v30 = vcombine.high %v2308_v62, %v2308_v62  ;;  %v2324_v31 = vrot.slane %v2308_v62, %v5193_v25  ;;  %v2331_v32 = vrot.slane %v2309_v17, %v5193_v25  ;;  %v2339_v34 = vcombine.high %v2317_v20, %v2317_v20  ;;  %2351 = vst.msk [vmem:[%s5186_s8 + $0x3] sm:$0x1] %vm1162_vm10, %v2317_v20 }
 0x538   : > { %v1250_v45 = vsel %vm921_vm1, %v1230_v24, 0.0  ;;  %v1206_v49 = vpop.permute.xlu0 %1205  ;;  %v5860_v17 = vadd.f32 %v1262_v2, %v1261_v40  ;;  %v1650_v24 = vadd.f32 %v1649_v38, %v1648_v33  ;;  %v2391_v26 = vrot.slane %v5823_v61, %v5733_v10  ;;  %v4694_v33 = vld [vmem:[%s5179_s27 + $0x10] sm:$0xff] }
 0x539   : > { %v2338_v58 = vrot.slane %v2310_v30, %v5193_v25  ;;  %v2340_v53 = vcombine.high %v2324_v31, %v2324_v31  ;;  %v2341_v41 = vcombine.high %v2331_v32, %v2331_v32  ;;  %2352 = vst.msk [vmem:[%s5186_s8 + $0xb] sm:$0x1] %vm1162_vm10, %v2331_v32  ;;  %2353 = vst.msk [vmem:[%s5186_s8 + $0x13] sm:$0x1] %vm1162_vm10, %v2339_v34  ;;  %v1251_v43 = vrot.slane %v1250_v45, 4  ;;  %v4693_v32 = vld [vmem:[%s5179_s27 + $0x180] sm:$0xff] }
 0x53a   : > { %2355 = vst.msk [vmem:[%s5186_s8 + $0x23] sm:$0x1] %vm1162_vm10, %v2324_v31  ;;  %2386 = vbcast.lane.b32.xlu0 %v2384_v16, 256  ;;  %v1232_v62 = vmul.f32 %v4692_v8, %v1206_v49  ;;  %2379 = vbcast.lane.b32.xlu1 %v2377_v11, 256  ;;  %v1290_v16 = vrot.slane %v1289_v6, 1  ;;  %v1637_v42 = vrot.slane %v1636_v57, 1  ;;  %v2020_v38 = vmul.f32 %v4694_v33, %v5820_v1 }
 0x53b   : > { %v2342_v20 = vcombine.high %v2338_v58, %v2338_v58  ;;  %2354 = vst.msk [vmem:[%s5186_s8 + $0x1b] sm:$0x1] %vm1162_vm10, %v2341_v41  ;;  %2356 = vst.msk [vmem:[%s5186_s8 + $0x2b] sm:$0x1] %vm1162_vm10, %v2338_v58  ;;  %v1252_v23 = vadd.f32 %v1251_v43, %v1250_v45  ;;  %v1663_v13 = vrot.slane %v1662_v15, 2  ;;  %v1676_v45 = vadd.f32 %v1675_v36, %v1674_v4  ;;  %v4695_v43 = vld [vmem:[%s5179_s27 + $0x50] sm:$0xff] }
 0x53c   : > { %2357 = vst.msk [vmem:[%s5186_s8 + $0x33] sm:$0x1] %vm1162_vm10, %v2340_v53  ;;  %v1264_v40 = vsel %vm921_vm1, %v1232_v62, 0.0  ;;  %v1220_v2 = vpop.permute.xlu0 %1219  ;;  %v2412_v53 = vrot.slane %v5823_v61, %v5721_v56  ;;  %v1651_v41 = vrot.slane %v1650_v24, 1  ;;  %v2021_v8 = vmul.f32 %v4695_v43, %v1977_v29  ;;  %v2540_v33 = vld [vmem:[%s5181_s9 + $0xc] sm:$0x1] }
 0x53d   : > { %2358 = vst.msk [vmem:[%s5186_s8 + $0x3b] sm:$0x1] %vm1162_vm10, %v2342_v20  ;;  %v1253_v30 = vrot.slane %v1252_v23, 2  ;;  %v1265_v31 = vrot.slane %v1264_v40, 4  ;;  %v1234_v34 = vmul.f32 %v4693_v32, %v1220_v2  ;;  %v2405_v4 = vrot.slane %v5823_v61, %v5738_v14  ;;  %v2539_v32 = vld [vmem:[%s5181_s9 + $0x4] sm:$0x1] }
 0x53e   : > { %2400 = vbcast.lane.b32.xlu0 %v2398_v50, 256  ;;  %2393 = vbcast.lane.b32.xlu1 %v2391_v26, 256  ;;  %v5887_v36 = vadd.f32 %v1290_v16, %v1289_v6  ;;  %v4696_v50 = vld [vmem:[%s5179_s27 + $0x48] sm:$0xff]  ;;  %v5890_v2 = vadd.f32 %v1637_v42, %v1636_v57  ;;  %v5892_v26 = vadd.f32 %v1663_v13, %v1662_v15  ;;  %v2028_v29 = vsel %vm921_vm1, %v2020_v38, 0.0  ;;  %v4701_v56 = vld [vmem:[%s5179_s27 + $0x1d0] sm:$0xff] }
 0x53f   : > { %v1254_v49 = vadd.f32 %v1253_v30, %v1252_v23  ;;  %v1266_v11 = vadd.f32 %v1265_v31, %v1264_v40  ;;  %v1278_v58 = vsel %vm921_vm1, %v1234_v34, 0.0  ;;  %v2005_v30 = vpop.permute.xlu1 %2004  ;;  %v1677_v61 = vrot.slane %v1676_v45, 2 }
 0x540   : > { %v1279_v62 = vrot.slane %v1278_v58, 4  ;;  %v1581_v20 = vpop.permute.xlu0 %1580  ;;  %v5898_v43 = vadd.f32 %v1651_v41, %v1650_v24  ;;  %v2035_v57 = vsel %vm921_vm1, %v2021_v8, 0.0  ;;  %v2029_v38 = vrot.slane %v2028_v29, 4 }
 0x541   : > { %v1255_v1 = vrot.slane %v1254_v49, 1  ;;  %v1267_v23 = vrot.slane %v1266_v11, 2  ;;  %v1625_v40 = vmul.f32 %v4696_v50, %v1581_v20  ;;  %v4698_v20 = vld [vmem:[%s5179_s27 + $0xd0] sm:$0xff] }
 0x542   : > { %2414 = vbcast.lane.b32.xlu0 %v2412_v53, 256  ;;  %v1280_v31 = vadd.f32 %v1279_v62, %v1278_v58  ;;  %2407 = vbcast.lane.b32.xlu1 %v2405_v4, 256  ;;  %v2023_v24 = vmul.f32 %v4698_v20, %v1991_v3  ;;  %v2542_v4 = vld [vmem:[%s5181_s9 + $0x1c] sm:$0x1] }
 0x543   : > { %v1256_v6 = vadd.f32 %v1255_v1, %v1254_v49  ;;  %v1268_v16 = vadd.f32 %v1267_v23, %v1266_v11  ;;  %v1639_v34 = vsel %vm921_vm1, %v1625_v40, 0.0  ;;  %v4697_v49 = vld [vmem:[%s5179_s27 + $0xc8] sm:$0xff]  ;;  %v1665_v11 = vrot.slane %v5892_v26, 1  ;;  %v2541_v40 = vld [vmem:[%s5181_s9 + $0x14] sm:$0x1] }
 0x544   : > { %v1281_v15 = vrot.slane %v1280_v31, 2  ;;  %v1640_v42 = vrot.slane %v1639_v34, 4  ;;  %v1595_v13 = vpop.permute.xlu0 %1594  ;;  %v5907_v1 = vadd.f32 %v1677_v61, %v1676_v45  ;;  %v2036_v23 = vrot.slane %v2035_v57, 4 }
 0x545   : > { %v1301_v58 = vsel %vm982_vm3, %v1256_v6, %v5826_v39  ;;  %v1269_v53 = vrot.slane %v1268_v16, 1  ;;  %v1627_v62 = vmul.f32 %v4697_v49, %v1595_v13  ;;  %v2019_v6 = vpop.permute.xlu1 %2018 }
 0x546   : > { %2548 = vperm.xlu0 %4648, %v2539_v32   ;;  %v1282_v41 = vadd.f32 %v1281_v15, %v1280_v31  ;;  %v1641_v8 = vadd.f32 %v1640_v42, %v1639_v34  ;;  %2551 = vperm.xlu1 %4647, %v2540_v33   ;;  %v1302_v32 = vsel %vm985_vm4, %v5860_v17, %v1301_v58  ;;  %v4699_v15 = vld [vmem:[%s5179_s27 + $0x150] sm:$0xff] }
 0x547   : > { %v1270_v50 = vadd.f32 %v1269_v53, %v1268_v16  ;;  %v1653_v39 = vsel %vm921_vm1, %v1627_v62, 0.0  ;;  %v5913_v33 = vadd.f32 %v2029_v38, %v2028_v29  ;;  %v2025_v45 = vmul.f32 %v4699_v15, %v2005_v30  ;;  %v4700_v16 = vld [vmem:[%s5179_s27 + $0x148] sm:$0xff]  ;;  %v1171_v38 = vld [vmem:[#allocation2] sm:$0xff] }
 0x548   : > { %v1283_v13 = vrot.slane %v1282_v41, 1  ;;  %v1642_v3 = vrot.slane %v1641_v8, 2  ;;  %v1654_v31 = vrot.slane %v1653_v39, 4  ;;  %v1609_v34 = vpop.permute.xlu0 %1608  ;;  %v2049_v53 = vsel %vm921_vm1, %v2023_v24, 0.0  ;;  %v2544_v62 = vld [vmem:[%s5181_s9 + $0x2c] sm:$0x1] }
 0x549   : > { %v1303_v61 = vsel %vm988_vm5, %v1270_v50, %v1302_v32  ;;  %v1629_v42 = vmul.f32 %v4700_v16, %v1609_v34  ;;  %v2037_v20 = vadd.f32 %v2036_v23, %v2035_v57  ;;  %v2027_v29 = vmul.f32 %v4701_v56, %v2019_v6  ;;  %v2543_v32 = vld [vmem:[%s5181_s9 + $0x24] sm:$0x1]  ;;  %v4702_v23 = vld [vmem:[%s5179_s27 + $0x1c8] sm:$0xff]  ;;  %v2546_v34 = vld [vmem:[%s5181_s9 + $0x3c] sm:$0x1] }
 0x54a   : > { %2557 = vperm.xlu0 %4648, %v2542_v4   ;;  %v1284_v49 = vadd.f32 %v1283_v13, %v1282_v41  ;;  %v1643_v17 = vadd.f32 %v1642_v3, %v1641_v8  ;;  %v1655_v58 = vadd.f32 %v1654_v31, %v1653_v39  ;;  %2554 = vperm.xlu1 %4647, %v2541_v40   ;;  %v2050_v40 = vrot.slane %v2049_v53, 4 }
 0x54b   : > { %v1304_v30 = vsel %vm991_vm6, %v5871_v51, %v1303_v61  ;;  %v1667_v50 = vsel %vm921_vm1, %v1629_v42, 0.0  ;;  %v2063_v57 = vsel %vm921_vm1, %v2025_v45, 0.0  ;;  %v1666_v15 = vadd.f32 %v1665_v11, %v5892_v26  ;;  %v2545_v42 = vld [vmem:[%s5181_s9 + $0x34] sm:$0x1] }
 0x54c   : > { %v1305_v4 = vsel %vm994_vm7, %v1284_v49, %v1304_v30  ;;  %v1644_v24 = vrot.slane %v1643_v17, 1  ;;  %v1656_v41 = vrot.slane %v1655_v58, 2  ;;  %v1668_v8 = vrot.slane %v1667_v50, 4  ;;  %v1623_v39 = vpop.permute.xlu0 %1622  ;;  %v4703_v26 = vld [vmem:[%s5179_s27 + $0x90] sm:$0xff] }
 0x54d   : > { %v1306_v56 = vsel %vm997_vm8, %v5887_v36, %v1305_v4  ;;  %v1631_v6 = vmul.f32 %v4702_v23, %v1623_v39  ;;  %v2038_v61 = vrot.slane %v2037_v20, 2  ;;  %v2077_v16 = vsel %vm921_vm1, %v2027_v29, 0.0 }
 0x54e   : > { %2563 = vperm.xlu0 %4648, %v2544_v62   ;;  %v1308_v51 = vadd.f32 %v1306_v56, %v1171_v38  ;;  %v1645_v13 = vadd.f32 %v1644_v24, %v1643_v17  ;;  %v1657_v3 = vadd.f32 %v1656_v41, %v1655_v58  ;;  %v1669_v31 = vadd.f32 %v1668_v8, %v1667_v50 }
 0x54f   : > { %2560 = vperm.xlu1 %4647, %v2543_v32   ;;  %v1681_v45 = vsel %vm921_vm1, %v1631_v6, 0.0  ;;  %v2031_v38 = vrot.slane %v5913_v33, 2  ;;  %v2051_v30 = vadd.f32 %v2050_v40, %v2049_v53  ;;  %v2064_v50 = vrot.slane %v2063_v57, 4 }
 0x550   : > { %1309 = vst.msk [vmem:[#allocation2] sm:$0xff] %vm921_vm1, %v1308_v51  ;;  %v1696_v36 = vsel %vm979_vm2, %v1645_v13, %v5890_v2  ;;  %v1658_v49 = vrot.slane %v1657_v3, 1  ;;  %v1670_v17 = vrot.slane %v1669_v31, 2  ;;  %v1682_v58 = vrot.slane %v1681_v45, 4  ;;  %v1984_v62 = vpop.permute.xlu0 %1983 }
 0x551   : > { %v2022_v11 = vmul.f32 %v4703_v26, %v1984_v62  ;;  %v1679_v29 = vrot.slane %v5907_v1, 1  ;;  %v2039_v41 = vadd.f32 %v2038_v61, %v2037_v20  ;;  %v2078_v2 = vrot.slane %v2077_v16, 4 }
 0x552   : > { %2569 = vperm.xlu0 %4648, %v2546_v34   ;;  %v1659_v32 = vadd.f32 %v1658_v49, %v1657_v3  ;;  %v1671_v4 = vadd.f32 %v1670_v17, %v1669_v31  ;;  %v1683_v24 = vadd.f32 %v1682_v58, %v1681_v45  ;;  %v1697_v8 = vsel %vm982_vm3, %v5898_v43, %v1696_v36  ;;  %v4704_v31 = vld [vmem:[%s5179_s27 + $0x110] sm:$0xff] }
 0x553   : > { %2566 = vperm.xlu1 %4647, %v2545_v42   ;;  %v2042_v39 = vsel %vm921_vm1, %v2022_v11, 0.0  ;;  %v2032_v51 = vadd.f32 %v2031_v38, %v5913_v33  ;;  %v2052_v13 = vrot.slane %v2051_v30, 2  ;;  %v2065_v3 = vadd.f32 %v2064_v50, %v2063_v57 }
 0x554   : > { %v1698_v53 = vsel %vm985_vm4, %v1659_v32, %v1697_v8  ;;  %v1672_v40 = vrot.slane %v1671_v4, 1  ;;  %v1684_v56 = vrot.slane %v1683_v24, 2  ;;  %v2043_v23 = vrot.slane %v2042_v39, 4  ;;  %v1998_v6 = vpop.permute.xlu0 %1997 }
 0x555   : > { %v2024_v34 = vmul.f32 %v4704_v31, %v1998_v6  ;;  %v1680_v20 = vadd.f32 %v1679_v29, %v5907_v1  ;;  %v2040_v42 = vrot.slane %v2039_v41, 1  ;;  %v2079_v36 = vadd.f32 %v2078_v2, %v2077_v16  ;;  %v4705_v1 = vld [vmem:[%s5179_s27 + $0x190] sm:$0xff] }
 0x556   : > { %v1673_v61 = vadd.f32 %v1672_v40, %v1671_v4  ;;  %v1685_v45 = vadd.f32 %v1684_v56, %v1683_v24  ;;  %v2044_v43 = vadd.f32 %v2043_v23, %v2042_v39  ;;  %v1699_v49 = vsel %vm988_vm5, %v1666_v15, %v1698_v53 }
 0x557   : > { %v2056_v17 = vsel %vm921_vm1, %v2024_v34, 0.0  ;;  %v2033_v50 = vrot.slane %v2032_v51, 1  ;;  %v2053_v26 = vadd.f32 %v2052_v13, %v2051_v30  ;;  %v2066_v11 = vrot.slane %v2065_v3, 2  ;;  %v1567_v39 = vld [vmem:[#allocation2] sm:$0xff] }
 0x558   : > { %v1700_v58 = vsel %vm991_vm6, %v1673_v61, %v1699_v49  ;;  %v1686_v62 = vrot.slane %v1685_v45, 1  ;;  %v2045_v33 = vrot.slane %v2044_v43, 2  ;;  %v2057_v38 = vrot.slane %v2056_v17, 4  ;;  %v2012_v57 = vpop.permute.xlu0 %2011 }
 0x559   : > { %v2026_v29 = vmul.f32 %v4705_v1, %v2012_v57  ;;  %v2041_v8 = vadd.f32 %v2040_v42, %v2039_v41  ;;  %v2080_v16 = vrot.slane %v2079_v36, 2  ;;  %v1701_v15 = vsel %vm994_vm7, %v1680_v20, %v1700_v58 }
 0x55a   : > { %v1687_v32 = vadd.f32 %v1686_v62, %v1685_v45  ;;  %v2046_v4 = vadd.f32 %v2045_v33, %v2044_v43  ;;  %v2058_v24 = vadd.f32 %v2057_v38, %v2056_v17  ;;  %v2034_v6 = vadd.f32 %v2033_v50, %v2032_v51 }
 0x55b   : > { %v2070_v2 = vsel %vm921_vm1, %v2026_v29, 0.0  ;;  %v2054_v30 = vrot.slane %v2053_v26, 1  ;;  %v2067_v13 = vadd.f32 %v2066_v11, %v2065_v3  ;;  %v2081_v43 = vadd.f32 %v2080_v16, %v2079_v36  ;;  %v4706_v16 = vld [vmem:[%s5179_s27 + $0x58] sm:$0xff] }
 0x55c   : > { %v1702_v53 = vsel %vm997_vm8, %v1687_v32, %v1701_v15  ;;  %v2047_v40 = vrot.slane %v2046_v4, 1  ;;  %v2059_v56 = vrot.slane %v2058_v24, 2  ;;  %v2071_v23 = vrot.slane %v2070_v2, 4 }
 0x55d   : > { %v1704_v31 = vadd.f32 %v1702_v53, %v1567_v39  ;;  %v2092_v41 = vsel %vm979_vm2, %v2041_v8, %v2034_v6  ;;  %v2055_v17 = vadd.f32 %v2054_v30, %v2053_v26  ;;  %v2068_v58 = vrot.slane %v2067_v13, 1 }
 0x55e   : > { %v2048_v34 = vadd.f32 %v2047_v40, %v2046_v4  ;;  %v2060_v61 = vadd.f32 %v2059_v56, %v2058_v24  ;;  %v2072_v45 = vadd.f32 %v2071_v23, %v2070_v2  ;;  %v2082_v51 = vrot.slane %v2081_v43, 1  ;;  %v4707_v2 = vld [vmem:[%s5179_s27 + $0x18] sm:$0xff] }
 0x55f   : > { %1705 = vst.msk [vmem:[#allocation2] sm:$0xff] %vm921_vm1, %v1704_v31  ;;  %v2069_v50 = vadd.f32 %v2068_v58, %v2067_v13  ;;  %v4708_v13 = vld [vmem:[%s5179_s27 + $0xd8] sm:$0xff] }
 0x560   : > { %v2093_v20 = vsel %vm982_vm3, %v2048_v34, %v2092_v41  ;;  %v2061_v42 = vrot.slane %v2060_v61, 1  ;;  %v2073_v49 = vrot.slane %v2072_v45, 2  ;;  %v2083_v11 = vadd.f32 %v2082_v51, %v2081_v43  ;;  %v4710_v51 = vld [vmem:[%s5179_s27 + $0x158] sm:$0xff] }
 0x561   : > { %v2094_v3 = vsel %vm985_vm4, %v2055_v17, %v2093_v20 }
 0x562   : > { %v2062_v62 = vadd.f32 %v2061_v42, %v2060_v61  ;;  %v2074_v33 = vadd.f32 %v2073_v49, %v2072_v45  ;;  %v4709_v61 = vld [vmem:[%s5179_s27 + $0x98] sm:$0xff] }
 0x564   : > { %v2095_v38 = vsel %vm988_vm5, %v2062_v62, %v2094_v3  ;;  %v2075_v57 = vrot.slane %v2074_v33, 1 }
 0x565   : > { %v2096_v1 = vsel %vm991_vm6, %v2069_v50, %v2095_v38  ;;  %v4711_v50 = vld [vmem:[%s5179_s27 + $0x118] sm:$0xff] }
 0x566   : > { %v2076_v36 = vadd.f32 %v2075_v57, %v2074_v33  ;;  %v1963_v32 = vld [vmem:[#allocation2] sm:$0xff] }
 0x568   : > { %v2097_v29 = vsel %vm994_vm7, %v2076_v36, %v2096_v1 }
 0x569   : > { %v2098_v26 = vsel %vm997_vm8, %v2083_v11, %v2097_v29 }
 0x56a   : > { %v2100_v4 = vadd.f32 %v2098_v26, %v1963_v32 }
 0x56c   : > { %2101 = vst.msk [vmem:[#allocation2] sm:$0xff] %vm921_vm1, %v2100_v4 }
 0x5a7   : > { %v2373_v24 = vpop.permute.xlu0 %2372 }
 0x5a8   : > { %v2366_v8 = vpop.permute.xlu1 %2365  ;;  %v2417_v15 = vmul.f32 %v4706_v16, %v2373_v24 }
 0x5a9   : > { %v2416_v39 = vmul.f32 %v4707_v2, %v2366_v8 }
 0x5aa   : > { %v2431_v53 = vsel %vm921_vm1, %v2417_v15, 0.0 }
 0x5ab   : > { %v2424_v40 = vsel %vm921_vm1, %v2416_v39, 0.0  ;;  %v2432_v56 = vrot.slane %v2431_v53, 4 }
 0x5ac   : > { %v2387_v23 = vpop.permute.xlu0 %2386  ;;  %v2425_v6 = vrot.slane %v2424_v40, 4  ;;  %v2380_v30 = vpop.permute.xlu1 %2379 }
 0x5ad   : > { %v2419_v31 = vmul.f32 %v4708_v13, %v2387_v23  ;;  %v2433_v34 = vadd.f32 %v2432_v56, %v2431_v53  ;;  %v2418_v45 = vmul.f32 %v4709_v61, %v2380_v30  ;;  %v4712_v53 = vld [vmem:[%s5179_s27 + $0x1d8] sm:$0xff] }
 0x5ae   : > { %v2426_v41 = vadd.f32 %v2425_v6, %v2424_v40  ;;  %v4713_v30 = vld [vmem:[%s5179_s27 + $0x198] sm:$0xff] }
 0x5af   : > { %v2445_v43 = vsel %vm921_vm1, %v2419_v31, 0.0  ;;  %v2434_v20 = vrot.slane %v2433_v34, 2  ;;  %v2438_v42 = vsel %vm921_vm1, %v2418_v45, 0.0 }
 0x5b0   : > { %v2446_v49 = vrot.slane %v2445_v43, 4  ;;  %v2401_v17 = vpop.permute.xlu0 %2400  ;;  %v2427_v58 = vrot.slane %v2426_v41, 2  ;;  %v2439_v62 = vrot.slane %v2438_v42, 4  ;;  %v2394_v33 = vpop.permute.xlu1 %2393 }
 0x5b1   : > { %v2421_v3 = vmul.f32 %v4710_v51, %v2401_v17  ;;  %v2435_v38 = vadd.f32 %v2434_v20, %v2433_v34  ;;  %v2420_v36 = vmul.f32 %v4711_v50, %v2394_v33  ;;  %v2601_v51 = vrot.slane %v5799_v5, %v5311_v12 }
 0x5b2   : > { %v2447_v57 = vadd.f32 %v2446_v49, %v2445_v43  ;;  %v2428_v11 = vadd.f32 %v2427_v58, %v2426_v41  ;;  %v2440_v1 = vadd.f32 %v2439_v62, %v2438_v42  ;;  %v2605_v5 = vrot.slane %v5803_v47, %v5311_v12 }
 0x5b3   : > { %v2459_v29 = vsel %vm921_vm1, %v2421_v3, 0.0  ;;  %v2436_v32 = vrot.slane %v2435_v38, 1  ;;  %v2452_v4 = vsel %vm921_vm1, %v2420_v36, 0.0 }
 0x5b4   : > { %v2448_v26 = vrot.slane %v2447_v57, 2  ;;  %v2460_v24 = vrot.slane %v2459_v29, 4  ;;  %v2415_v8 = vpop.permute.xlu0 %2414  ;;  %v2429_v16 = vrot.slane %v2428_v11, 1  ;;  %v2441_v15 = vrot.slane %v2440_v1, 2  ;;  %v2408_v39 = vpop.permute.xlu1 %2407 }
 0x5b5   : > { %v2453_v2 = vrot.slane %v2452_v4, 4  ;;  %v2423_v40 = vmul.f32 %v4712_v53, %v2415_v8  ;;  %v2437_v56 = vadd.f32 %v2436_v32, %v2435_v38  ;;  %v2422_v13 = vmul.f32 %v4713_v30, %v2408_v39 }
 0x5b6   : > { %v2449_v23 = vadd.f32 %v2448_v26, %v2447_v57  ;;  %v2461_v6 = vadd.f32 %v2460_v24, %v2459_v29  ;;  %v2430_v31 = vadd.f32 %v2429_v16, %v2428_v11  ;;  %v2442_v34 = vadd.f32 %v2441_v15, %v2440_v1 }
 0x5b7   : > { %v2454_v61 = vadd.f32 %v2453_v2, %v2452_v4  ;;  %v2473_v45 = vsel %vm921_vm1, %v2423_v40, 0.0  ;;  %v2466_v20 = vsel %vm921_vm1, %v2422_v13, 0.0  ;;  %v2597_v29 = vrot.slane %v5787_v18, %v5311_v12 }
 0x5b8   : > { %v2450_v41 = vrot.slane %v2449_v23, 1  ;;  %v2462_v43 = vrot.slane %v2461_v6, 2  ;;  %v2474_v42 = vrot.slane %v2473_v45, 4  ;;  %v2443_v49 = vrot.slane %v2442_v34, 1 }
 0x5b9   : > { %v2455_v17 = vrot.slane %v2454_v61, 2  ;;  %v2467_v58 = vrot.slane %v2466_v20, 4  ;;  %v2488_v50 = vsel %vm979_vm2, %v2437_v56, %v2430_v31  ;;  %v2626_v53 = vsel %vm979_vm2, %v2601_v51, %v2597_v29 }
 0x5ba   : > { %v2463_v62 = vadd.f32 %v2462_v43, %v2461_v6  ;;  %v2475_v33 = vadd.f32 %v2474_v42, %v2473_v45  ;;  %v2444_v3 = vadd.f32 %v2443_v49, %v2442_v34  ;;  %v2451_v36 = vadd.f32 %v2450_v41, %v2449_v23  ;;  %v2359_v43 = vld [vmem:[#allocation2] sm:$0xff] }
 0x5bb   : > { %v2456_v38 = vadd.f32 %v2455_v17, %v2454_v61  ;;  %v2468_v57 = vadd.f32 %v2467_v58, %v2466_v20  ;;  %v2609_v30 = vrot.slane %v5789_v21, %v5311_v12  ;;  %v2627_v31 = vsel %vm982_vm3, %v2605_v5, %v2626_v53  ;;  %v4490_v53 = vld [vmem:[%s5179_s27 + $0x68] sm:$0xff] }
 0x5bc   : > { %v2464_v11 = vrot.slane %v2463_v62, 1  ;;  %v2476_v1 = vrot.slane %v2475_v33, 2  ;;  %v2489_v32 = vsel %vm982_vm3, %v2444_v3, %v2488_v50  ;;  %v2613_v41 = vrot.slane %v5808_v60, %v5311_v12 }
 0x5bd   : > { %v2457_v26 = vrot.slane %v2456_v38, 1  ;;  %v2469_v4 = vrot.slane %v2468_v57, 2  ;;  %v2490_v15 = vsel %vm985_vm4, %v2451_v36, %v2489_v32  ;;  %v2628_v49 = vsel %vm985_vm4, %v2609_v30, %v2627_v31 }
 0x5be   : > { %v2477_v24 = vadd.f32 %v2476_v1, %v2475_v33  ;;  %v2465_v2 = vadd.f32 %v2464_v11, %v2463_v62  ;;  %v2617_v33 = vrot.slane %v5791_v7, %v5311_v12  ;;  %v2629_v60 = vsel %vm988_vm5, %v2613_v41, %v2628_v49  ;;  %v4495_v41 = vld [vmem:[%s5179_s27 + $0x1a8] sm:$0xff] }
 0x5bf   : > { %v2458_v8 = vadd.f32 %v2457_v26, %v2456_v38  ;;  %v2470_v16 = vadd.f32 %v2469_v4, %v2468_v57  ;;  %v2621_v50 = vrot.slane %v5814_v28, %v5311_v12  ;;  %v2625_v4 = vrot.slane %v5793_v19, %v5311_v12 }
 0x5c0   : > { %v2478_v39 = vrot.slane %v2477_v24, 1  ;;  %v2630_v29 = vsel %vm991_vm6, %v2617_v33, %v2629_v60  ;;  %v4500_v33 = vld [vmem:[%s5179_s27 + $0xf0] sm:$0xff] }
 0x5c1   : > { %v2491_v40 = vsel %vm988_vm5, %v2458_v8, %v2490_v15  ;;  %v2471_v56 = vrot.slane %v2470_v16, 1  ;;  %v2549_v18 = vpop.permute.xlu0 %2548  ;;  %v2552_v6 = vpop.permute.xlu1 %2551  ;;  %v2631_v28 = vsel %vm994_vm7, %v2621_v50, %v2630_v29  ;;  %v4502_v60 = vld [vmem:[%s5179_s27 + $0x170] sm:$0xff] }
 0x5c2   : > { %v2479_v23 = vadd.f32 %v2478_v39, %v2477_v24  ;;  %v2492_v47 = vsel %vm991_vm6, %v2465_v2, %v2491_v40  ;;  %v2571_v34 = vrot.slane %v2552_v6, 7  ;;  %v2632_v2 = vsel %vm997_vm8, %v2625_v4, %v2631_v28  ;;  %v4503_v50 = vld [vmem:[%s5179_s27 + $0x1b0] sm:$0xff] }
 0x5c3   : > { %v2472_v13 = vadd.f32 %v2471_v56, %v2470_v16  ;;  %v4489_v16 = vld [vmem:[%s5179_s27 + $0x28] sm:$0xff] }
 0x5c4   : > { %v2572_v58 = vsel %vm979_vm2, %v2571_v34, %v2549_v18  ;;  %v2903_v19 = vmul.f32 %v4489_v16, %v5205_v35  ;;  %v2904_v18 = vmul.f32 %v4490_v53, %v5224_v48  ;;  %v4493_v34 = vld [vmem:[%s5179_s27 + $0x128] sm:$0xff]  ;;  %v4509_v16 = vld [vmem:[%s5179_s27 + $0x138] sm:$0xff] }
 0x5c5   : > { %v2493_v61 = vsel %vm994_vm7, %v2472_v13, %v2492_v47  ;;  %v2558_v45 = vpop.permute.xlu0 %2557  ;;  %v2555_v42 = vpop.permute.xlu1 %2554  ;;  %v4492_v13 = vld [vmem:[%s5179_s27 + $0xe8] sm:$0xff] }
 0x5c6   : > { %v2494_v20 = vsel %vm997_vm8, %v2479_v23, %v2493_v61  ;;  %v2573_v21 = vrot.slane %v2555_v42, 6  ;;  %v2575_v62 = vrot.slane %v2558_v45, 5  ;;  %v2911_v56 = vsel %vm921_vm1, %v2903_v19, 0.0  ;;  %v4491_v23 = vld [vmem:[%s5179_s27 + $0xa8] sm:$0xff]  ;;  %v4512_v19 = vld [vmem:[%s5179_s27 + $0x1f8] sm:$0xff] }
 0x5c7   : > { %v2496_v17 = vadd.f32 %v2494_v20, %v2359_v43  ;;  %v2914_v6 = vsel %vm921_vm1, %v2904_v18, 0.0  ;;  %v2905_v30 = vmul.f32 %v4491_v23, %v5216_v44  ;;  %v2906_v47 = vmul.f32 %v4492_v13, %v5231_v55  ;;  %v4496_v42 = vld [vmem:[%s5179_s27 + $0x1e8] sm:$0xff]  ;;  %v2937_v18 = vld [vmem:[%s5181_s9 + $0x15] sm:$0x1]  ;;  %v2935_v23 = vld [vmem:[%s5181_s9 + $0x5] sm:$0x1] }
 0x5c8   : > { %v2574_v51 = vsel %vm982_vm3, %v2573_v21, %v2572_v58  ;;  %v2907_v45 = vmul.f32 %v4493_v34, %v5208_v37  ;;  %v2909_v20 = vmul.f32 %v4495_v41, %v5237_v59  ;;  %v4497_v21 = vld [vmem:[%s5179_s27 + $0x30] sm:$0xff]  ;;  %v3702_v53 = vmul.f32 %v4512_v19, %v5243_v63  ;;  %v3338_v34 = vld [vmem:[%s5181_s9 + $0x3e] sm:$0x1]  ;;  %v3731_v41 = vld [vmem:[%s5181_s9 + $0x27] sm:$0x1] }
 0x5c9   : > { %2497 = vst.msk [vmem:[#allocation2] sm:$0xff] %vm921_vm1, %v2496_v17  ;;  %v2564_v3 = vpop.permute.xlu0 %2563  ;;  %v2576_v36 = vsel %vm985_vm4, %v2575_v62, %v2574_v51  ;;  %v2917_v31 = vsel %vm921_vm1, %v2905_v30, 0.0  ;;  %v2920_v61 = vsel %vm921_vm1, %v2906_v47, 0.0  ;;  %v2910_v17 = vmul.f32 %v4496_v42, %v5243_v63  ;;  %v2940_v30 = vld [vmem:[%s5181_s9 + $0x2d] sm:$0x1] }
 0x5ca   : > { %v2561_v38 = vpop.permute.xlu1 %2560  ;;  %v2579_v11 = vrot.slane %v2564_v3, 3  ;;  %v2923_v43 = vsel %vm921_vm1, %v2907_v45, 0.0  ;;  %v2929_v49 = vsel %vm921_vm1, %v2909_v20, 0.0  ;;  %v3299_v62 = vmul.f32 %v4497_v21, %v5205_v35  ;;  %v3333_v13 = vld [vmem:[%s5181_s9 + $0x16] sm:$0x1] }
 0x5cb   : > { %v2577_v57 = vrot.slane %v2561_v38, 4  ;;  %v2932_v58 = vsel %vm921_vm1, %v2910_v17, 0.0  ;;  %v3302_v3 = vmul.f32 %v4500_v33, %v5231_v55  ;;  %v3335_v47 = vld [vmem:[%s5181_s9 + $0x26] sm:$0x1]  ;;  %v3727_v45 = vld [vmem:[%s5181_s9 + $0x7] sm:$0x1] }
 0x5cc   : > { %v3307_v51 = vsel %vm921_vm1, %v3299_v62, 0.0 }
 0x5cd   : > { %v2578_v1 = vsel %vm988_vm5, %v2577_v57, %v2576_v36  ;;  %v2570_v7 = vpop.permute.xlu0 %2569  ;;  %v3316_v38 = vsel %vm921_vm1, %v3302_v3, 0.0  ;;  %v3304_v57 = vmul.f32 %v4502_v60, %v5220_v46  ;;  %v4494_v60 = vld [vmem:[%s5179_s27 + $0x168] sm:$0xff] }
 0x5ce   : > { %v2567_v32 = vpop.permute.xlu1 %2566  ;;  %v2583_v26 = vrot.slane %v2570_v7, 1  ;;  %v2580_v8 = vsel %vm991_vm6, %v2579_v11, %v2578_v1  ;;  %v3305_v11 = vmul.f32 %v4503_v50, %v5237_v59  ;;  %v4504_v1 = vld [vmem:[%s5179_s27 + $0x1f0] sm:$0xff] }
 0x5cf   : > { %v2581_v24 = vrot.slane %v2567_v32, 2  ;;  %v3322_v36 = vsel %vm921_vm1, %v3304_v57, 0.0  ;;  %v3306_v29 = vmul.f32 %v4504_v1, %v5243_v63  ;;  %v4505_v32 = vld [vmem:[%s5179_s27 + $0x38] sm:$0xff]  ;;  %v2941_v63 = vld [vmem:[%s5181_s9 + $0x35] sm:$0x1] }
 0x5d0   : > { %v3325_v7 = vsel %vm921_vm1, %v3305_v11, 0.0  ;;  %v3695_v4 = vmul.f32 %v4505_v32, %v5205_v35 }
 0x5d1   : > { %v2582_v5 = vsel %vm994_vm7, %v2581_v24, %v2580_v8  ;;  %v4507_v24 = vld [vmem:[%s5179_s27 + $0xb8] sm:$0xff] }
 0x5d2   : > { %v6018_v15 = vsel %vm997_vm8, %v2583_v26, %v2582_v5  ;;  %v3328_v26 = vsel %vm921_vm1, %v3306_v29, 0.0  ;;  %v3703_v8 = vsel %vm921_vm1, %v3695_v4, 0.0  ;;  %v3697_v28 = vmul.f32 %v4507_v24, %v5216_v44 }
 0x5d3   : > { %vm2585_vm12 = vcmp.lt.s32.totalorder %v5305_v9, %v6018_v15 }
 0x5d4   : > { %v6027_v39 = vsel %vm2585_vm12, %v2632_v2, -3.4028235e+38  ;;  %v3709_v5 = vsel %vm921_vm1, %v3697_v28, 0.0  ;;  %v3699_v2 = vmul.f32 %v4509_v16, %v5208_v37  ;;  %v4499_v28 = vld [vmem:[%s5179_s27 + $0xb0] sm:$0xff] }
 0x5d5   : > { %v2635_v40 = vsel %vm1049_vm9, %v6027_v39, -inf  ;;  %v3301_v16 = vmul.f32 %v4499_v28, %v5216_v44 }
 0x5d6   : > { %2636 = vmax.xlane.f32.xlu1 %v2635_v40  ;;  %v3715_v35 = vsel %vm921_vm1, %v3699_v2, 0.0  ;;  %v3724_v40 = vsel %vm921_vm1, %v3702_v53, 0.0 }
 0x5d7   : > { %v3313_v2 = vsel %vm921_vm1, %v3301_v16, 0.0 }
 0x5da   : > { %2912 = vadd.xlane.f32.xlu1 %v2911_v56  ;;  %v2936_v56 = vld [vmem:[%s5181_s9 + $0xd] sm:$0x1] }
 0x5de   : > { %2915 = vadd.xlane.f32.xlu1 %v2914_v6  ;;  %v2939_v6 = vld [vmem:[%s5181_s9 + $0x25] sm:$0x1] }
 0x5e2   : > { %2918 = vadd.xlane.f32.xlu1 %v2917_v31  ;;  %v3331_v31 = vld [vmem:[%s5181_s9 + $0x6] sm:$0x1] }
 0x5e6   : > { %2921 = vadd.xlane.f32.xlu1 %v2920_v61  ;;  %v3729_v61 = vld [vmem:[%s5181_s9 + $0x17] sm:$0x1] }
 0x5ea   : > { %2924 = vadd.xlane.f32.xlu1 %v2923_v43  ;;  %v3733_v43 = vld [vmem:[%s5181_s9 + $0x37] sm:$0x1] }
 0x5ee   : > { %2930 = vadd.xlane.f32.xlu1 %v2929_v49 }
 0x5f2   : > { %2933 = vadd.xlane.f32.xlu1 %v2932_v58 }
 0x5f6   : > { %3308 = vadd.xlane.f32.xlu1 %v3307_v51 }
 0x5fa   : > { %3317 = vadd.xlane.f32.xlu1 %v3316_v38 }
 0x5fe   : > { %3323 = vadd.xlane.f32.xlu1 %v3322_v36  ;;  %v2908_v36 = vmul.f32 %v4494_v60, %v5220_v46 }
 0x600   : > { %v2926_v4 = vsel %vm921_vm1, %v2908_v36, 0.0 }
 0x602   : > { %3326 = vadd.xlane.f32.xlu1 %v3325_v7  ;;  %v4498_v7 = vld [vmem:[%s5179_s27 + $0x70] sm:$0xff] }
 0x603   : > { %v3300_v24 = vmul.f32 %v4498_v7, %v5224_v48  ;;  %v2657_v7 = vld [vmem:[%s5183_s17 + $0x34] sm:$0x1] }
 0x604   : > { %v2677_v28 = vrot.slane %v2657_v7, 2 }
 0x605   : > { %v3310_v15 = vsel %vm921_vm1, %v3300_v24, 0.0 }
 0x606   : > { %3329 = vadd.xlane.f32.xlu1 %v3328_v26 }
 0x60a   : > { %3704 = vadd.xlane.f32.xlu1 %v3703_v8 }
 0x60e   : > { %3710 = vadd.xlane.f32.xlu1 %v3709_v5  ;;  %v4501_v5 = vld [vmem:[%s5179_s27 + $0x130] sm:$0xff] }
 0x60f   : > { %v3303_v19 = vmul.f32 %v4501_v5, %v5208_v37 }
 0x611   : > { %v3319_v53 = vsel %vm921_vm1, %v3303_v19, 0.0 }
 0x612   : > { %3716 = vadd.xlane.f32.xlu1 %v3715_v35  ;;  %v4506_v35 = vld [vmem:[%s5179_s27 + $0x78] sm:$0xff] }
 0x616   : > { %3725 = vadd.xlane.f32.xlu1 %v3724_v40  ;;  %v3696_v40 = vmul.f32 %v4506_v35, %v5224_v48 }
 0x627   : > { %2947 = vperm.xlu1 %4647, %v2936_v56   ;;  %v4508_v56 = vld [vmem:[%s5179_s27 + $0xf8] sm:$0xff] }
 0x628   : > { %v3698_v44 = vmul.f32 %v4508_v56, %v5231_v55 }
 0x62b   : > { %2950 = vperm.xlu1 %4647, %v2937_v18   ;;  %v3706_v18 = vsel %vm921_vm1, %v3696_v40, 0.0 }
 0x62f   : > { %2944 = vperm.xlu1 %4647, %v2935_v23   ;;  %v4510_v23 = vld [vmem:[%s5179_s27 + $0x178] sm:$0xff] }
 0x630   : > { %v3700_v37 = vmul.f32 %v4510_v23, %v5220_v46 }
 0x632   : > { %v3718_v48 = vsel %vm921_vm1, %v3700_v37, 0.0 }
 0x633   : > { %2956 = vperm.xlu1 %4647, %v2939_v6   ;;  %v3712_v6 = vsel %vm921_vm1, %v3698_v44, 0.0 }
 0x637   : > { %2959 = vperm.xlu1 %4647, %v2940_v30   ;;  %v4511_v30 = vld [vmem:[%s5179_s27 + $0x1b8] sm:$0xff] }
 0x63b   : > { %2962 = vperm.xlu1 %4647, %v2941_v63   ;;  %v3701_v63 = vmul.f32 %v4511_v30, %v5237_v59 }
 0x63f   : > { %3346 = vperm.xlu1 %4647, %v3333_v13   ;;  %v3721_v13 = vsel %vm921_vm1, %v3701_v63, 0.0 }
 0x643   : > { %3340 = vperm.xlu1 %4647, %v3331_v31   ;;  %v2652_v31 = vld [vmem:[%s5183_s17 + $0xc] sm:$0x1] }
 0x647   : > { %3352 = vperm.xlu1 %4647, %v3335_v47  }
 0x64b   : > { %3361 = vperm.xlu1 %4647, %v3338_v34   ;;  %v2653_v34 = vld [vmem:[%s5183_s17 + $0x14] sm:$0x1] }
 0x64f   : > { %3742 = vperm.xlu1 %4647, %v3729_v61   ;;  %v2667_v61 = vrot.slane %v2652_v31, 7  ;;  %v2942_v31 = vld [vmem:[%s5181_s9 + $0x3d] sm:$0x1] }
 0x653   : > { %3736 = vperm.xlu1 %4647, %v3727_v45   ;;  %v2651_v45 = vld [vmem:[%s5183_s17 + $0x4] sm:$0x1] }
 0x657   : > { %3748 = vperm.xlu1 %4647, %v3731_v41   ;;  %v2654_v41 = vld [vmem:[%s5183_s17 + $0x1c] sm:$0x1] }
 0x65b   : > { %3754 = vperm.xlu1 %4647, %v3733_v43   ;;  %v2669_v43 = vrot.slane %v2653_v34, 6  ;;  %v3332_v34 = vld [vmem:[%s5181_s9 + $0xe] sm:$0x1] }
 0x65f   : > { %v2637_v20 = vpop.xlane.xlu1 %2636 }
 0x660   : > { %v2638_v42 = vsub.f32 %v6027_v39, %v2637_v20  ;;  %v2668_v20 = vsel %vm979_vm2, %v2667_v61, %v2651_v45  ;;  %v3334_v61 = vld [vmem:[%s5181_s9 + $0x1e] sm:$0x1]  ;;  %v3336_v45 = vld [vmem:[%s5181_s9 + $0x2e] sm:$0x1] }
 0x662   : > { %v2639_v49 = vmul.f32 1.442695, %v2638_v42 }
 0x663   : > { %v2913_v17 = vpop.xlane.xlu1 %2912 }
 0x664   : > { %4666 = vpow2.f32 %v2639_v49  ;;  %v2993_v58 = vrot.slane %v2913_v17, %v5311_v12  ;;  %v2655_v17 = vld [vmem:[%s5183_s17 + $0x24] sm:$0x1] }
 0x667   : > { %v2916_v21 = vpop.xlane.xlu1 %2915 }
 0x668   : > { %v2997_v62 = vrot.slane %v2916_v21, %v5311_v12  ;;  %v2671_v21 = vrot.slane %v2654_v41, 5  ;;  %v3728_v41 = vld [vmem:[%s5181_s9 + $0xf] sm:$0x1] }
 0x66a   : > { %v3022_v51 = vsel %vm979_vm2, %v2997_v62, %v2993_v58  ;;  %v2670_v62 = vsel %vm982_vm3, %v2669_v43, %v2668_v20  ;;  %v3730_v43 = vld [vmem:[%s5181_s9 + $0x1f] sm:$0x1]  ;;  %v3732_v20 = vld [vmem:[%s5181_s9 + $0x2f] sm:$0x1] }
 0x66b   : > { %v2919_v33 = vpop.xlane.xlu1 %2918 }
 0x66c   : > { %v3001_v3 = vrot.slane %v2919_v33, %v5311_v12 }
 0x66e   : > { %v3023_v38 = vsel %vm982_vm3, %v3001_v3, %v3022_v51  ;;  %v2656_v51 = vld [vmem:[%s5183_s17 + $0x2c] sm:$0x1]  ;;  %v2673_v3 = vrot.slane %v2655_v17, 4 }
 0x66f   : > { %v2922_v57 = vpop.xlane.xlu1 %2921 }
 0x670   : > { %v3005_v39 = vrot.slane %v2922_v57, %v5311_v12  ;;  %v2672_v57 = vsel %vm985_vm4, %v2671_v21, %v2670_v62 }
 0x671   : > { %v4667_v50 = vpop.eup %4666 }
 0x672   : > { %v3024_v11 = vsel %vm985_vm4, %v3005_v39, %v3023_v38  ;;  %v6104_v1 = vsel %vm2585_vm12, %v4667_v50, 0.0 }
 0x673   : > { %v2925_v29 = vpop.xlane.xlu1 %2924  ;;  %v2642_v32 = vsel %vm1049_vm9, %v6104_v1, 0.0 }
 0x674   : > { %v3009_v26 = vrot.slane %v2925_v29, %v5311_v12  ;;  %2643 = vadd.xlane.f32.xlu0 %v2642_v32  ;;  %v2675_v29 = vrot.slane %v2656_v51, 3  ;;  %v2674_v32 = vsel %vm988_vm5, %v2673_v3, %v2672_v57 }
 0x676   : > { %v3025_v8 = vsel %vm988_vm5, %v3009_v26, %v3024_v11  ;;  %v2676_v16 = vsel %vm991_vm6, %v2675_v29, %v2674_v32 }
 0x677   : > { %v2931_v55 = vpop.xlane.xlu1 %2930 }
 0x678   : > { %2927 = vadd.xlane.f32.xlu0 %v2926_v4  ;;  %v3017_v49 = vrot.slane %v2931_v55, %v5311_v12  ;;  %v2938_v55 = vld [vmem:[%s5181_s9 + $0x1d] sm:$0x1] }
 0x67b   : > { %v6133_v47 = vpop.xlane.xlu1 %2933 }
 0x67c   : > { %3311 = vadd.xlane.f32.xlu0 %v3310_v15 }
 0x67f   : > { %v3309_v42 = vpop.xlane.xlu1 %3308 }
 0x680   : > { %3314 = vadd.xlane.f32.xlu0 %v3313_v2  ;;  %v3389_v38 = vrot.slane %v3309_v42, %v5311_v12 }
 0x683   : > { %v3318_v36 = vpop.xlane.xlu1 %3317 }
 0x684   : > { %3320 = vadd.xlane.f32.xlu0 %v3319_v53  ;;  %v3401_v26 = vrot.slane %v3318_v36, %v5311_v12 }
 0x687   : > { %v3324_v5 = vpop.xlane.xlu1 %3323 }
 0x688   : > { %3707 = vadd.xlane.f32.xlu0 %v3706_v18  ;;  %v3409_v35 = vrot.slane %v3324_v5, %v5311_v12  ;;  %v2678_v18 = vsel %vm994_vm7, %v2677_v28, %v2676_v16 }
 0x68b   : > { %v6178_v42 = vpop.xlane.xlu1 %3326 }
 0x68c   : > { %3713 = vadd.xlane.f32.xlu0 %v3712_v6 }
 0x690   : > { %3719 = vadd.xlane.f32.xlu0 %v3718_v48 }
 0x694   : > { %3722 = vadd.xlane.f32.xlu0 %v3721_v13 }
 0x6fd   : > { %v2644_v46 = vpop.xlane.xlu0 %2643 }
 0x6fe   : > { %vm2645_vm13 = vcmp.gt.f32.partialorder %v2644_v46, 0.0 }
 0x6ff   : > { %v2646_v59 = vsel %vm2645_vm13, %v2644_v46, 1.0  ;;  %v3337_v46 = vld [vmem:[%s5181_s9 + $0x36] sm:$0x1] }
 0x700   : > { %4668 = vrcp.f32 %v2646_v59 }
 0x701   : > { %v2928_v58 = vpop.xlane.xlu0 %2927 }
 0x702   : > { %v3013_v33 = vrot.slane %v2928_v58, %v5311_v12 }
 0x704   : > { %v3026_v60 = vsel %vm991_vm6, %v3013_v33, %v3025_v8  ;;  %v2658_v8 = vld [vmem:[%s5183_s17 + $0x3c] sm:$0x1] }
 0x705   : > { %v3312_v39 = vpop.xlane.xlu0 %3311  ;;  %v6148_v50 = vsel %vm994_vm7, %v3017_v49, %v3026_v60  ;;  %v2679_v53 = vrot.slane %v2658_v8, 1  ;;  %v6180_v49 = vpop.xlane.xlu1 %3329 }
 0x706   : > { %v3393_v11 = vrot.slane %v3312_v39, %v5311_v12 }
 0x707   : > { %v2680_v30 = vsel %vm997_vm8, %v2679_v53, %v2678_v18 }
 0x708   : > { %v3418_v4 = vsel %vm979_vm2, %v3393_v11, %v3389_v38 }
 0x709   : > { %v3315_v24 = vpop.xlane.xlu0 %3314  ;;  %v6182_v17 = vpop.xlane.xlu1 %3704 }
 0x70a   : > { %v3397_v15 = vrot.slane %v3315_v24, %v5311_v12 }
 0x70c   : > { %v3419_v2 = vsel %vm982_vm3, %v3397_v15, %v3418_v4 }
 0x70d   : > { %v4669_v19 = vpop.eup %4668  ;;  %v3321_v40 = vpop.xlane.xlu0 %3320  ;;  %v3420_v56 = vsel %vm985_vm4, %v3401_v26, %v3419_v2 }
 0x70e   : > { %v2648_v44 = vmul.f32 %v4669_v19, %v2646_v59  ;;  %v3405_v23 = vrot.slane %v3321_v40, %v5311_v12  ;;  %v3734_v59 = vld [vmem:[%s5181_s9 + $0x3f] sm:$0x1]  ;;  %v6184_v21 = vpop.xlane.xlu1 %3710 }
 0x710   : > { %v2649_v6 = vsub.f32 2.0, %v2648_v44  ;;  %v3421_v37 = vsel %vm988_vm5, %v3405_v23, %v3420_v56 }
 0x711   : > { %v6166_v48 = vsel %vm991_vm6, %v3409_v35, %v3421_v37  ;;  %v6190_v38 = vpop.xlane.xlu0 %3707  ;;  %v3021_v37 = vrot.slane %v6133_v47, %v5311_v12 }
 0x712   : > { %v2650_v63 = vmul.f32 %v4669_v19, %v2649_v6  ;;  %v6186_v58 = vpop.xlane.xlu1 %3716 }
 0x714   : > { %v2682_v13 = vmul.f32 %v2680_v30, %v2650_v63 }
 0x715   : > { %v6192_v39 = vpop.xlane.xlu0 %3713 }
 0x716   : > { %2685 = vperm.xlu0 %4648, %v2682_v13   ;;  %v6188_v62 = vpop.xlane.xlu1 %3725 }
 0x719   : > { %v6194_v11 = vpop.xlane.xlu0 %3719 }
 0x71a   : > { %2953 = vperm.xlu0 %4648, %v2938_v55   ;;  %v2948_v33 = vpop.permute.xlu1 %2947 }
 0x71b   : > { %v2967_v26 = vrot.slane %v2948_v33, 7 }
 0x71d   : > { %v6196_v29 = vpop.xlane.xlu0 %3722 }
 0x71e   : > { %2965 = vperm.xlu0 %4648, %v2942_v31   ;;  %v2951_v51 = vpop.permute.xlu1 %2950 }
 0x71f   : > { %v2969_v16 = vrot.slane %v2951_v51, 6  ;;  %v3028_v51 = vsel %vm997_vm8, %v3021_v37, %v6148_v50  ;;  %v3413_v50 = vrot.slane %v6178_v42, %v5311_v12 }
 0x722   : > { %3343 = vperm.xlu0 %4648, %v3332_v34   ;;  %v2945_v3 = vpop.permute.xlu1 %2944 }
 0x723   : > { %v2968_v8 = vsel %vm979_vm2, %v2967_v26, %v2945_v3 }
 0x726   : > { %3349 = vperm.xlu0 %4648, %v3334_v61   ;;  %v2957_v60 = vpop.permute.xlu1 %2956 }
 0x727   : > { %v2973_v40 = vrot.slane %v2957_v60, 4 }
 0x72a   : > { %3355 = vperm.xlu0 %4648, %v3336_v45   ;;  %v2960_v57 = vpop.permute.xlu1 %2959 }
 0x72b   : > { %v2975_v30 = vrot.slane %v2960_v57, 3 }
 0x72e   : > { %3358 = vperm.xlu0 %4648, %v3337_v46   ;;  %v2963_v36 = vpop.permute.xlu1 %2962 }
 0x72f   : > { %v2977_v63 = vrot.slane %v2963_v36, 2 }
 0x732   : > { %3739 = vperm.xlu0 %4648, %v3728_v41   ;;  %v3347_v7 = vpop.permute.xlu1 %3346 }
 0x736   : > { %3745 = vperm.xlu0 %4648, %v3730_v43   ;;  %v3341_v4 = vpop.permute.xlu1 %3340 }
 0x73a   : > { %3751 = vperm.xlu0 %4648, %v3732_v20   ;;  %v3353_v56 = vpop.permute.xlu1 %3352 }
 0x73e   : > { %3757 = vperm.xlu0 %4648, %v3734_v59   ;;  %v3362_v33 = vpop.permute.xlu1 %3361 }
 0x791   : > { %v2686_v32 = vpop.permute.xlu0 %2685 }
 0x792   : > { %v6199_v24 = vmul.f32 %v2686_v32, %v6104_v1  ;;  %v2970_v1 = vsel %vm982_vm3, %v2969_v16, %v2968_v8  ;;  %v3365_v8 = vrot.slane %v3347_v7, 6  ;;  %v3417_v7 = vrot.slane %v6180_v49, %v5311_v12 }
 0x793   : > { %v3797_v49 = vrot.slane %v6192_v39, %v5311_v12 }
 0x794   : > { %v2690_v28 = vcombine.high %v6199_v24, %v6199_v24  ;;  %v2697_v15 = vrot.slane %v6199_v24, %v5193_v25 }
 0x795   : > { %v2954_v5 = vpop.permute.xlu0 %2953 }
 0x796   : > { %v2704_v2 = vrot.slane %v2690_v28, %v5193_v25  ;;  %v2705_v19 = vcombine.high %v2697_v15, %v2697_v15  ;;  %v2713_v35 = vrot.slane %v2697_v15, %v5193_v25  ;;  %v2971_v53 = vrot.slane %v2954_v5, 5  ;;  %v3743_v28 = vpop.permute.xlu1 %3742 }
 0x797   : > { %v3785_v5 = vrot.slane %v6182_v17, %v5311_v12 }
 0x798   : > { %v2706_v18 = vcombine.high %v2704_v2, %v2704_v2  ;;  %v2720_v44 = vrot.slane %v2704_v2, %v5193_v25  ;;  %v2727_v23 = vrot.slane %v2705_v19, %v5193_v25  ;;  %v2735_v6 = vcombine.high %v2713_v35, %v2713_v35  ;;  %2747 = vst.msk [vmem:[%s5186_s8 + $0x4] sm:$0x1] %vm1162_vm10, %v2713_v35 }
 0x799   : > { %v2972_v13 = vsel %vm985_vm4, %v2971_v53, %v2970_v1  ;;  %v2966_v55 = vpop.permute.xlu0 %2965  ;;  %v3789_v2 = vrot.slane %v6190_v38, %v5311_v12  ;;  %v3369_v53 = vrot.slane %v3353_v56, 4  ;;  %v3793_v1 = vrot.slane %v6184_v21, %v5311_v12 }
 0x79a   : > { %v2734_v31 = vrot.slane %v2706_v18, %v5193_v25  ;;  %v2736_v34 = vcombine.high %v2720_v44, %v2720_v44  ;;  %v2737_v61 = vcombine.high %v2727_v23, %v2727_v23  ;;  %2748 = vst.msk [vmem:[%s5186_s8 + $0xc] sm:$0x1] %vm1162_vm10, %v2727_v23  ;;  %2749 = vst.msk [vmem:[%s5186_s8 + $0x14] sm:$0x1] %vm1162_vm10, %v2735_v6  ;;  %v2979_v45 = vrot.slane %v2966_v55, 1  ;;  %v3737_v42 = vpop.permute.xlu1 %3736 }
 0x79b   : > { %2751 = vst.msk [vmem:[%s5186_s8 + $0x24] sm:$0x1] %vm1162_vm10, %v2720_v44  ;;  %v2974_v47 = vsel %vm988_vm5, %v2973_v40, %v2972_v13  ;;  %v3375_v44 = vrot.slane %v3362_v33, 1  ;;  %v3814_v17 = vsel %vm979_vm2, %v3789_v2, %v3785_v5  ;;  %v3423_v23 = vsel %vm994_vm7, %v3413_v50, %v6166_v48 }
 0x79c   : > { %v2976_v46 = vsel %vm991_vm6, %v2975_v30, %v2974_v47  ;;  %v2738_v41 = vcombine.high %v2734_v31, %v2734_v31  ;;  %2750 = vst.msk [vmem:[%s5186_s8 + $0x1c] sm:$0x1] %vm1162_vm10, %v2737_v61  ;;  %2752 = vst.msk [vmem:[%s5186_s8 + $0x2c] sm:$0x1] %vm1162_vm10, %v2734_v31  ;;  %v3815_v37 = vsel %vm982_vm3, %v3793_v1, %v3814_v17 }
 0x79d   : > { %2753 = vst.msk [vmem:[%s5186_s8 + $0x34] sm:$0x1] %vm1162_vm10, %v2736_v34  ;;  %v2978_v43 = vsel %vm994_vm7, %v2977_v63, %v2976_v46  ;;  %v3344_v20 = vpop.permute.xlu0 %3343  ;;  %v3424_v63 = vsel %vm997_vm8, %v3417_v7, %v3423_v23  ;;  %v3801_v48 = vrot.slane %v6186_v58, %v5311_v12  ;;  %v3761_v34 = vrot.slane %v3743_v28, 6 }
 0x79e   : > { %v6233_v59 = vsel %vm997_vm8, %v2979_v45, %v2978_v43  ;;  %2754 = vst.msk [vmem:[%s5186_s8 + $0x3c] sm:$0x1] %vm1162_vm10, %v2738_v41  ;;  %v3363_v3 = vrot.slane %v3344_v20, 7  ;;  %v3749_v55 = vpop.permute.xlu1 %3748  ;;  %v3816_v61 = vsel %vm985_vm4, %v3797_v49, %v3815_v37  ;;  %v3805_v46 = vrot.slane %v6194_v11, %v5311_v12 }
 0x79f   : > { %vm2981_vm14 = vcmp.lt.s32.totalorder %v5305_v9, %v6233_v59  ;;  %v3817_v43 = vsel %vm988_vm5, %v3801_v48, %v3816_v61  ;;  %v3765_v20 = vrot.slane %v3749_v55, 4  ;;  %v3813_v11 = vrot.slane %v6188_v62, %v5311_v12  ;;  %v3052_v61 = vld [vmem:[%s5183_s17 + $0x2d] sm:$0x1] }
 0x7a0   : > { %v6244_v60 = vsel %vm2981_vm14, %v3028_v51, -3.4028235e+38  ;;  %v3364_v32 = vsel %vm979_vm2, %v3363_v3, %v3341_v4  ;;  %v3809_v3 = vrot.slane %v6196_v29, %v5311_v12 }
 0x7a1   : > { %v3031_v57 = vsel %vm1049_vm9, %v6244_v60, -inf  ;;  %v3350_v36 = vpop.permute.xlu0 %3349  ;;  %v3366_v16 = vsel %vm982_vm3, %v3365_v8, %v3364_v32 }
 0x7a2   : > { %3032 = vmax.xlane.f32.xlu1 %v3031_v57  ;;  %v3367_v26 = vrot.slane %v3350_v36, 5  ;;  %v3755_v51 = vpop.permute.xlu1 %3754  ;;  %v3818_v36 = vsel %vm991_vm6, %v3805_v46, %v3817_v43  ;;  %v3053_v46 = vld [vmem:[%s5183_s17 + $0x35] sm:$0x1] }
 0x7a3   : > { %v3769_v8 = vrot.slane %v3755_v51, 2 }
 0x7a4   : > { %v3368_v19 = vsel %vm985_vm4, %v3367_v26, %v3366_v16 }
 0x7a5   : > { %v3356_v15 = vpop.permute.xlu0 %3355  ;;  %v3370_v40 = vsel %vm988_vm5, %v3369_v53, %v3368_v19 }
 0x7a6   : > { %v3371_v35 = vrot.slane %v3356_v15, 3  ;;  %v3819_v15 = vsel %vm994_vm7, %v3809_v3, %v3818_v36  ;;  %v3445_v3 = vld [vmem:[%s5183_s17 + $0x16] sm:$0x1]  ;;  %v3443_v36 = vld [vmem:[%s5183_s17 + $0x6] sm:$0x1] }
 0x7a7   : > { %v3820_v29 = vsel %vm997_vm8, %v3813_v11, %v3819_v15  ;;  %v3446_v15 = vld [vmem:[%s5183_s17 + $0x1e] sm:$0x1] }
 0x7a8   : > { %v3372_v38 = vsel %vm991_vm6, %v3371_v35, %v3370_v40 }
 0x7a9   : > { %v3359_v4 = vpop.permute.xlu0 %3358 }
 0x7aa   : > { %v3373_v18 = vrot.slane %v3359_v4, 2 }
 0x7ac   : > { %v3374_v56 = vsel %vm994_vm7, %v3373_v18, %v3372_v38 }
 0x7ad   : > { %v3740_v6 = vpop.permute.xlu0 %3739  ;;  %v3376_v21 = vsel %vm997_vm8, %v3375_v44, %v3374_v56 }
 0x7ae   : > { %v3759_v30 = vrot.slane %v3740_v6, 7  ;;  %vm3377_vm15 = vcmp.lt.s32.totalorder %v5305_v9, %v3376_v21  ;;  %v3048_v6 = vld [vmem:[%s5183_s17 + $0xd] sm:$0x1]  ;;  %v3049_v21 = vld [vmem:[%s5183_s17 + $0x15] sm:$0x1] }
 0x7af   : > { %v3426_v13 = vsel %vm3377_vm15, %v3424_v63, -3.4028235e+38  ;;  %v3063_v37 = vrot.slane %v3048_v6, 7  ;;  %v3065_v48 = vrot.slane %v3049_v21, 6 }
 0x7b0   : > { %v3760_v31 = vsel %vm979_vm2, %v3759_v30, %v3737_v42  ;;  %v3427_v39 = vsel %vm1049_vm9, %v3426_v13, -inf  ;;  %v3047_v30 = vld [vmem:[%s5183_s17 + $0x5] sm:$0x1] }
 0x7b1   : > { %v3746_v47 = vpop.permute.xlu0 %3745  ;;  %3428 = vmax.xlane.f32.xlu0 %v3427_v39  ;;  %v3762_v41 = vsel %vm982_vm3, %v3761_v34, %v3760_v31  ;;  %v3051_v31 = vld [vmem:[%s5183_s17 + $0x25] sm:$0x1] }
 0x7b2   : > { %v3763_v45 = vrot.slane %v3746_v47, 5  ;;  %v3069_v47 = vrot.slane %v3051_v31, 4 }
 0x7b4   : > { %v3764_v58 = vsel %vm985_vm4, %v3763_v45, %v3762_v41  ;;  %v3071_v41 = vrot.slane %v3052_v61, 3 }
 0x7b5   : > { %v3752_v33 = vpop.permute.xlu0 %3751  ;;  %v3766_v32 = vsel %vm988_vm5, %v3765_v20, %v3764_v58  ;;  %v3444_v58 = vld [vmem:[%s5183_s17 + $0xe] sm:$0x1]  ;;  %v3054_v20 = vld [vmem:[%s5183_s17 + $0x3d] sm:$0x1] }
 0x7b6   : > { %v3767_v57 = vrot.slane %v3752_v33, 3  ;;  %v3073_v33 = vrot.slane %v3053_v46, 2 }
 0x7b8   : > { %v3768_v26 = vsel %vm991_vm6, %v3767_v57, %v3766_v32  ;;  %v3459_v57 = vrot.slane %v3444_v58, 7 }
 0x7b9   : > { %v3758_v28 = vpop.permute.xlu0 %3757  ;;  %v3770_v16 = vsel %vm994_vm7, %v3769_v8, %v3768_v26  ;;  %v3075_v26 = vrot.slane %v3054_v20, 1 }
 0x7ba   : > { %v3771_v50 = vrot.slane %v3758_v28, 1 }
 0x7bc   : > { %v3772_v5 = vsel %vm997_vm8, %v3771_v50, %v3770_v16  ;;  %v3461_v50 = vrot.slane %v3445_v3, 6  ;;  %v3460_v16 = vsel %vm979_vm2, %v3459_v57, %v3443_v36  ;;  %v2801_v36 = vrot.slane %v6199_v24, %v5738_v14 }
 0x7bd   : > { %vm3773_vm0 = vcmp.lt.s32.totalorder %v5305_v9, %v3772_v5  ;;  %v3064_v9 = vsel %vm979_vm2, %v3063_v37, %v3047_v30  ;;  %v3839_v37 = vld [vmem:[%s5183_s17 + $0x7] sm:$0x1] }
 0x7be   : > { %v3822_v2 = vsel %vm3773_vm0, %v3820_v29, -3.4028235e+38  ;;  %v3066_v34 = vsel %vm982_vm3, %v3065_v48, %v3064_v9  ;;  %v3842_v9 = vld [vmem:[%s5183_s17 + $0x1f] sm:$0x1] }
 0x7bf   : > { %v3823_v19 = vsel %vm1049_vm9, %v3822_v2, -inf  ;;  %v3859_v46 = vrot.slane %v3842_v9, 5 }
 0x7c0   : > { %3824 = vmax.xlane.f32.xlu0 %v3823_v19  ;;  %v3447_v19 = vld [vmem:[%s5183_s17 + $0x26] sm:$0x1] }
 0x82b   : > { %v3033_v12 = vpop.xlane.xlu1 %3032 }
 0x82c   : > { %v3034_v62 = vsub.f32 %v6244_v60, %v3033_v12  ;;  %v3463_v12 = vrot.slane %v3446_v15, 5 }
 0x82e   : > { %v3035_v35 = vmul.f32 1.442695, %v3034_v62 }
 0x830   : > { %4670 = vpow2.f32 %v3035_v35  ;;  %v3462_v35 = vsel %vm982_vm3, %v3461_v50, %v3460_v16 }
 0x83a   : > { %v3429_v53 = vpop.xlane.xlu0 %3428 }
 0x83b   : > { %v3430_v4 = vsub.f32 %v3426_v13, %v3429_v53  ;;  %v3050_v13 = vld [vmem:[%s5183_s17 + $0x1d] sm:$0x1] }
 0x83c   : > { %v3067_v39 = vrot.slane %v3050_v13, 5 }
 0x83d   : > { %v4671_v7 = vpop.eup %4670  ;;  %v3431_v1 = vmul.f32 1.442695, %v3430_v4  ;;  %v3448_v4 = vld [vmem:[%s5183_s17 + $0x2e] sm:$0x1] }
 0x83e   : > { %v6304_v42 = vsel %vm2981_vm14, %v4671_v7, 0.0  ;;  %v3068_v45 = vsel %vm985_vm4, %v3067_v39, %v3066_v34  ;;  %v3465_v7 = vrot.slane %v3447_v19, 4 }
 0x83f   : > { %v3038_v40 = vsel %vm1049_vm9, %v6304_v42, 0.0  ;;  %4672 = vpow2.f32 %v3431_v1  ;;  %v3070_v43 = vsel %vm988_vm5, %v3069_v47, %v3068_v45  ;;  %v3464_v1 = vsel %vm985_vm4, %v3463_v12, %v3462_v35  ;;  %v3843_v45 = vld [vmem:[%s5183_s17 + $0x27] sm:$0x1] }
 0x840   : > { %3039 = vadd.xlane.f32.xlu1 %v3038_v40  ;;  %v3072_v51 = vsel %vm991_vm6, %v3071_v41, %v3070_v43  ;;  %v3449_v40 = vld [vmem:[%s5183_s17 + $0x36] sm:$0x1]  ;;  %v2787_v41 = vrot.slane %v6199_v24, %v5733_v10  ;;  %v2766_v35 = vrot.slane %v6199_v24, %v5706_v52 }
 0x841   : > { %v3074_v8 = vsel %vm994_vm7, %v3073_v33, %v3072_v51  ;;  %v3844_v33 = vld [vmem:[%s5183_s17 + $0x2f] sm:$0x1]  ;;  %v3861_v51 = vrot.slane %v3843_v45, 4 }
 0x849   : > { %v3825_v60 = vpop.xlane.xlu0 %3824 }
 0x84a   : > { %v3826_v18 = vsub.f32 %v3822_v2, %v3825_v60  ;;  %v3076_v2 = vsel %vm997_vm8, %v3075_v26, %v3074_v8  ;;  %v3467_v60 = vrot.slane %v3448_v4, 3  ;;  %v3863_v26 = vrot.slane %v3844_v33, 3  ;;  %v3846_v8 = vld [vmem:[%s5183_s17 + $0x3f] sm:$0x1] }
 0x84b   : > { %v3867_v16 = vrot.slane %v3846_v8, 1  ;;  %v2794_v4 = vrot.slane %v6199_v24, %v5716_v54 }
 0x84c   : > { %v4673_v44 = vpop.eup %4672  ;;  %v3827_v17 = vmul.f32 1.442695, %v3826_v18  ;;  %v3840_v18 = vld [vmem:[%s5183_s17 + $0xf] sm:$0x1] }
 0x84d   : > { %v6310_v38 = vsel %vm3377_vm15, %v4673_v44, 0.0  ;;  %v3466_v44 = vsel %vm988_vm5, %v3465_v7, %v3464_v1  ;;  %v3855_v6 = vrot.slane %v3840_v18, 7  ;;  %v6714_v7 = vld [vmem:[#allocation16_spill] sm:$0xff] }
 0x84e   : > { %4674 = vpow2.f32 %v3827_v17  ;;  %v3434_v59 = vsel %vm1049_vm9, %v6310_v38, 0.0  ;;  %v2759_v17 = vrot.slane %v6199_v24, %v5197_v27  ;;  %v3468_v21 = vsel %vm991_vm6, %v3467_v60, %v3466_v44 }
 0x84f   : > { %3435 = vadd.xlane.f32.xlu0 %v3434_v59  ;;  %v3450_v59 = vld [vmem:[%s5183_s17 + $0x3e] sm:$0x1]  ;;  %v3856_v34 = vsel %vm979_vm2, %v3855_v6, %v3839_v37  ;;  %v2808_v1 = vrot.slane %v6199_v24, %v6714_v7 }
 0x850   : > { %v3471_v48 = vrot.slane %v3450_v59, 1 }
 0x85b   : > { %v4675_v23 = vpop.eup %4674 }
 0x85c   : > { %v6316_v56 = vsel %vm3773_vm0, %v4675_v23, 0.0  ;;  %v3469_v23 = vrot.slane %v3449_v40, 2 }
 0x85d   : > { %v3830_v49 = vsel %vm1049_vm9, %v6316_v56, 0.0 }
 0x85e   : > { %3831 = vadd.xlane.f32.xlu1 %v3830_v49  ;;  %v3841_v49 = vld [vmem:[%s5183_s17 + $0x17] sm:$0x1]  ;;  %v3470_v31 = vsel %vm994_vm7, %v3469_v23, %v3468_v21 }
 0x85f   : > { %v3472_v43 = vsel %vm997_vm8, %v3471_v48, %v3470_v31 }
 0x8c9   : > { %v3040_v63 = vpop.xlane.xlu1 %3039 }
 0x8ca   : > { %vm3041_vm11 = vcmp.gt.f32.partialorder %v3040_v63, 0.0 }
 0x8cb   : > { %v3042_v55 = vsel %vm3041_vm11, %v3040_v63, 1.0  ;;  %v2773_v63 = vrot.slane %v6199_v24, %v5728_v0 }
 0x8cc   : > { %4676 = vrcp.f32 %v3042_v55 }
 0x8d8   : > { %v3436_v11 = vpop.xlane.xlu0 %3435 }
 0x8d9   : > { %v4677_v32 = vpop.eup %4676  ;;  %vm3437_vm9 = vcmp.gt.f32.partialorder %v3436_v11, 0.0 }
 0x8da   : > { %v3044_v28 = vmul.f32 %v4677_v32, %v3042_v55  ;;  %v3438_v5 = vsel %vm3437_vm9, %v3436_v11, 1.0  ;;  %v3857_v55 = vrot.slane %v3841_v49, 6 }
 0x8db   : > { %4678 = vrcp.f32 %v3438_v5 }
 0x8dc   : > { %v3045_v29 = vsub.f32 2.0, %v3044_v28  ;;  %v3858_v58 = vsel %vm982_vm3, %v3857_v55, %v3856_v34 }
 0x8dd   : > { %v3860_v57 = vsel %vm985_vm4, %v3859_v46, %v3858_v58 }
 0x8de   : > { %v3046_v62 = vmul.f32 %v4677_v32, %v3045_v29  ;;  %v3845_v32 = vld [vmem:[%s5183_s17 + $0x37] sm:$0x1]  ;;  %v3862_v11 = vsel %vm988_vm5, %v3861_v51, %v3860_v57 }
 0x8df   : > { %v3865_v28 = vrot.slane %v3845_v32, 2  ;;  %v3864_v15 = vsel %vm991_vm6, %v3863_v26, %v3862_v11 }
 0x8e0   : > { %v3078_v53 = vmul.f32 %v3076_v2, %v3046_v62 }
 0x8e2   : > { %3081 = vperm.xlu0 %4648, %v3078_v53   ;;  %v2780_v53 = vrot.slane %v6199_v24, %v5711_v22 }
 0x8e6   : > { %2761 = vbcast.lane.b32.xlu0 %v2759_v17, 256 }
 0x8e7   : > { %v3832_v30 = vpop.xlane.xlu1 %3831 }
 0x8e8   : > { %v4679_v13 = vpop.eup %4678  ;;  %vm3833_vm12 = vcmp.gt.f32.partialorder %v3832_v30, 0.0 }
 0x8e9   : > { %v3440_v39 = vmul.f32 %v4679_v13, %v3438_v5  ;;  %v3834_v61 = vsel %vm3833_vm12, %v3832_v30, 1.0  ;;  %v3866_v5 = vsel %vm994_vm7, %v3865_v28, %v3864_v15 }
 0x8ea   : > { %2775 = vbcast.lane.b32.xlu0 %v2773_v63, 256  ;;  %4680 = vrcp.f32 %v3834_v61  ;;  %v3868_v19 = vsel %vm997_vm8, %v3867_v16, %v3866_v5 }
 0x8eb   : > { %v3441_v47 = vsub.f32 2.0, %v3440_v39 }
 0x8ed   : > { %v3442_v20 = vmul.f32 %v4679_v13, %v3441_v47 }
 0x8ee   : > { %2789 = vbcast.lane.b32.xlu0 %v2787_v41, 256 }
 0x8ef   : > { %v3474_v3 = vmul.f32 %v3472_v43, %v3442_v20 }
 0x8f1   : > { %3477 = vperm.xlu1 %4647, %v3474_v3   ;;  %v4714_v3 = vld [vmem:[%s5179_s27 + $0x20] sm:$0xff] }
 0x8f2   : > { %2803 = vbcast.lane.b32.xlu0 %v2801_v36, 256 }
 0x8f7   : > { %v4681_v50 = vpop.eup %4680 }
 0x8f8   : > { %v3836_v29 = vmul.f32 %v4681_v50, %v3834_v61 }
 0x8fa   : > { %v3837_v2 = vsub.f32 2.0, %v3836_v29 }
 0x8fc   : > { %v3838_v12 = vmul.f32 %v4681_v50, %v3837_v2  ;;  %v4715_v2 = vld [vmem:[%s5179_s27 + $0xa0] sm:$0xff] }
 0x8fe   : > { %v3870_v62 = vmul.f32 %v3868_v19, %v3838_v12 }
 0x900   : > { %3873 = vperm.xlu1 %4647, %v3870_v62  }
 0x904   : > { %2768 = vbcast.lane.b32.xlu1 %v2766_v35, 256  ;;  %v4716_v35 = vld [vmem:[%s5179_s27 + $0x120] sm:$0xff] }
 0x908   : > { %2782 = vbcast.lane.b32.xlu1 %v2780_v53, 256 }
 0x90c   : > { %2796 = vbcast.lane.b32.xlu1 %v2794_v4, 256 }
 0x910   : > { %2810 = vbcast.lane.b32.xlu1 %v2808_v1, 256 }
 0x95d   : > { %v3082_v40 = vpop.permute.xlu0 %3081 }
 0x95e   : > { %v3084_v60 = vmul.f32 %v3082_v40, %v6304_v42 }
 0x960   : > { %v3086_v18 = vcombine.high %v3084_v60, %v3084_v60  ;;  %v3093_v44 = vrot.slane %v3084_v60, %v5193_v25  ;;  %v3155_v17 = vrot.slane %v3084_v60, %v5197_v27  ;;  %v3162_v59 = vrot.slane %v3084_v60, %v5706_v52 }
 0x961   : > { %v3169_v6 = vrot.slane %v3084_v60, %v5728_v0  ;;  %v3176_v63 = vrot.slane %v3084_v60, %v5711_v22  ;;  %v2762_v55 = vpop.permute.xlu0 %2761  ;;  %v3183_v39 = vrot.slane %v3084_v60, %v5733_v10  ;;  %v3190_v34 = vrot.slane %v3084_v60, %v5716_v54 }
 0x962   : > { %v3100_v23 = vrot.slane %v3086_v18, %v5193_v25  ;;  %v3101_v49 = vcombine.high %v3093_v44, %v3093_v44  ;;  %v3109_v24 = vrot.slane %v3093_v44, %v5193_v25  ;;  %3157 = vbcast.lane.b32.xlu0 %v3155_v17, 256  ;;  %3164 = vbcast.lane.b32.xlu1 %v3162_v59, 256  ;;  %v4717_v44 = vld [vmem:[%s5179_s27 + $0x1a0] sm:$0xff] }
 0x963   : > { %v3197_v61 = vrot.slane %v3084_v60, %v5738_v14  ;;  %v3204_v45 = vrot.slane %v3084_v60, %v6714_v7  ;;  %v2812_v57 = vmul.f32 %v4714_v3, %v2762_v55 }
 0x964   : > { %v3102_v42 = vcombine.high %v3100_v23, %v3100_v23  ;;  %v3116_v21 = vrot.slane %v3100_v23, %v5193_v25  ;;  %v3123_v37 = vrot.slane %v3101_v49, %v5193_v25  ;;  %v3131_v30 = vcombine.high %v3109_v24, %v3109_v24  ;;  %3143 = vst.msk [vmem:[%s5186_s8 + $0x5] sm:$0x1] %vm1162_vm10, %v3109_v24 }
 0x965   : > { %v2776_v47 = vpop.permute.xlu0 %2775  ;;  %v2820_v29 = vsel %vm921_vm1, %v2812_v57, 0.0 }
 0x966   : > { %v3130_v13 = vrot.slane %v3102_v42, %v5193_v25  ;;  %v3132_v48 = vcombine.high %v3116_v21, %v3116_v21  ;;  %v3133_v9 = vcombine.high %v3123_v37, %v3123_v37  ;;  %3144 = vst.msk [vmem:[%s5186_s8 + $0xd] sm:$0x1] %vm1162_vm10, %v3123_v37  ;;  %3145 = vst.msk [vmem:[%s5186_s8 + $0x15] sm:$0x1] %vm1162_vm10, %v3131_v30  ;;  %3171 = vbcast.lane.b32.xlu0 %v3169_v6, 256 }
 0x967   : > { %3147 = vst.msk [vmem:[%s5186_s8 + $0x25] sm:$0x1] %vm1162_vm10, %v3116_v21  ;;  %3178 = vbcast.lane.b32.xlu1 %v3176_v63, 256  ;;  %v2814_v19 = vmul.f32 %v4715_v2, %v2776_v47  ;;  %v2821_v40 = vrot.slane %v2820_v29, 4  ;;  %v4720_v2 = vld [vmem:[%s5179_s27 + $0x160] sm:$0xff] }
 0x968   : > { %v3134_v31 = vcombine.high %v3130_v13, %v3130_v13  ;;  %3146 = vst.msk [vmem:[%s5186_s8 + $0x1d] sm:$0x1] %vm1162_vm10, %v3133_v9  ;;  %3148 = vst.msk [vmem:[%s5186_s8 + $0x2d] sm:$0x1] %vm1162_vm10, %v3130_v13 }
 0x969   : > { %3149 = vst.msk [vmem:[%s5186_s8 + $0x35] sm:$0x1] %vm1162_vm10, %v3132_v48  ;;  %v2790_v36 = vpop.permute.xlu0 %2789  ;;  %v2834_v18 = vsel %vm921_vm1, %v2814_v19, 0.0  ;;  %v2822_v6 = vadd.f32 %v2821_v40, %v2820_v29 }
 0x96a   : > { %3150 = vst.msk [vmem:[%s5186_s8 + $0x3d] sm:$0x1] %vm1162_vm10, %v3134_v31  ;;  %3185 = vbcast.lane.b32.xlu0 %v3183_v39, 256  ;;  %v2816_v53 = vmul.f32 %v4716_v35, %v2790_v36  ;;  %v2835_v42 = vrot.slane %v2834_v18, 4 }
 0x96b   : > { %3192 = vbcast.lane.b32.xlu1 %v3190_v34, 256  ;;  %v4718_v34 = vld [vmem:[%s5179_s27 + $0x60] sm:$0xff]  ;;  %v2823_v47 = vrot.slane %v2822_v6, 2 }
 0x96c   : > { %v3478_v46 = vpop.permute.xlu1 %3477  ;;  %v2848_v23 = vsel %vm921_vm1, %v2816_v53, 0.0 }
 0x96d   : > { %v3480_v41 = vmul.f32 %v3478_v46, %v6310_v38  ;;  %v2804_v4 = vpop.permute.xlu0 %2803  ;;  %v2849_v13 = vrot.slane %v2848_v23, 4 }
 0x96e   : > { %3199 = vbcast.lane.b32.xlu0 %v3197_v61, 256  ;;  %v2818_v17 = vmul.f32 %v4717_v44, %v2804_v4 }
 0x96f   : > { %3206 = vbcast.lane.b32.xlu1 %v3204_v45, 256  ;;  %v3482_v43 = vcombine.high %v3480_v41, %v3480_v41  ;;  %v3489_v58 = vrot.slane %v3480_v41, %v5193_v25  ;;  %v3558_v20 = vrot.slane %v3480_v41, %v5706_v52  ;;  %v3551_v51 = vrot.slane %v3480_v41, %v5197_v27 }
 0x970   : > { %v3572_v15 = vrot.slane %v3480_v41, %v5711_v22  ;;  %v3565_v5 = vrot.slane %v3480_v41, %v5728_v0  ;;  %v3586_v1 = vrot.slane %v3480_v41, %v5716_v54  ;;  %v3579_v60 = vrot.slane %v3480_v41, %v5733_v10 }
 0x971   : > { %v3496_v33 = vrot.slane %v3482_v43, %v5193_v25  ;;  %v3497_v32 = vcombine.high %v3489_v58, %v3489_v58  ;;  %v3505_v26 = vrot.slane %v3489_v58, %v5193_v25  ;;  %v3600_v24 = vrot.slane %v3480_v41, %v6714_v7 }
 0x972   : > { %3553 = vbcast.lane.b32.xlu0 %v3551_v51, 256  ;;  %v3593_v21 = vrot.slane %v3480_v41, %v5738_v14  ;;  %v2836_v45 = vadd.f32 %v2835_v42, %v2834_v18 }
 0x973   : > { %3560 = vbcast.lane.b32.xlu1 %v3558_v20, 256  ;;  %v3498_v38 = vcombine.high %v3496_v33, %v3496_v33  ;;  %v3512_v11 = vrot.slane %v3496_v33, %v5193_v25  ;;  %v3519_v8 = vrot.slane %v3497_v32, %v5193_v25  ;;  %v3527_v28 = vcombine.high %v3505_v26, %v3505_v26 }
 0x974   : > { %3539 = vst.msk [vmem:[%s5186_s8 + $0x6] sm:$0x1] %vm1162_vm10, %v3505_v26  ;;  %v2837_v26 = vrot.slane %v2836_v45, 2 }
 0x975   : > { %v3526_v50 = vrot.slane %v3498_v38, %v5193_v25  ;;  %v3528_v16 = vcombine.high %v3512_v11, %v3512_v11  ;;  %3543 = vst.msk [vmem:[%s5186_s8 + $0x26] sm:$0x1] %vm1162_vm10, %v3512_v11  ;;  %v3529_v12 = vcombine.high %v3519_v8, %v3519_v8  ;;  %3540 = vst.msk [vmem:[%s5186_s8 + $0xe] sm:$0x1] %vm1162_vm10, %v3519_v8  ;;  %v4719_v38 = vld [vmem:[%s5179_s27 + $0xe0] sm:$0xff] }
 0x976   : > { %3541 = vst.msk [vmem:[%s5186_s8 + $0x16] sm:$0x1] %vm1162_vm10, %v3527_v28  ;;  %3567 = vbcast.lane.b32.xlu0 %v3565_v5, 256 }
 0x977   : > { %3574 = vbcast.lane.b32.xlu1 %v3572_v15, 256  ;;  %v3530_v62 = vcombine.high %v3526_v50, %v3526_v50  ;;  %3544 = vst.msk [vmem:[%s5186_s8 + $0x2e] sm:$0x1] %vm1162_vm10, %v3526_v50  ;;  %3545 = vst.msk [vmem:[%s5186_s8 + $0x36] sm:$0x1] %vm1162_vm10, %v3528_v16 }
 0x978   : > { %3542 = vst.msk [vmem:[%s5186_s8 + $0x1e] sm:$0x1] %vm1162_vm10, %v3529_v12 }
 0x979   : > { %3546 = vst.msk [vmem:[%s5186_s8 + $0x3e] sm:$0x1] %vm1162_vm10, %v3530_v62  ;;  %v2838_v62 = vadd.f32 %v2837_v26, %v2836_v45 }
 0x97a   : > { %3581 = vbcast.lane.b32.xlu0 %v3579_v60, 256 }
 0x97b   : > { %3588 = vbcast.lane.b32.xlu1 %v3586_v1, 256  ;;  %v3874_v59 = vpop.permute.xlu1 %3873  ;;  %v2839_v42 = vrot.slane %v2838_v62, 1 }
 0x97c   : > { %v6449_v49 = vmul.f32 %v3874_v59, %v6316_v56  ;;  %v2862_v56 = vsel %vm921_vm1, %v2818_v17, 0.0 }
 0x97d   : > { %v2863_v58 = vrot.slane %v2862_v56, 4 }
 0x97e   : > { %v3878_v37 = vcombine.high %v6449_v49, %v6449_v49  ;;  %v3885_v30 = vrot.slane %v6449_v49, %v5193_v25  ;;  %v3954_v63 = vrot.slane %v6449_v49, %v5706_v52  ;;  %3595 = vbcast.lane.b32.xlu0 %v3593_v21, 256  ;;  %v3947_v9 = vrot.slane %v6449_v49, %v5197_v27 }
 0x97f   : > { %3602 = vbcast.lane.b32.xlu1 %v3600_v24, 256  ;;  %v2769_v48 = vpop.permute.xlu1 %2768  ;;  %v2850_v27 = vadd.f32 %v2849_v13, %v2848_v23  ;;  %v3968_v51 = vrot.slane %v6449_v49, %v5711_v22  ;;  %v3961_v8 = vrot.slane %v6449_v49, %v5728_v0  ;;  %v2824_v22 = vadd.f32 %v2823_v47, %v2822_v6  ;;  %v4721_v24 = vld [vmem:[%s5179_s27 + $0x1e0] sm:$0xff] }
 0x980   : > { %v3892_v55 = vrot.slane %v3878_v37, %v5193_v25  ;;  %v3893_v31 = vcombine.high %v3885_v30, %v3885_v30  ;;  %v3901_v39 = vrot.slane %v3885_v30, %v5193_v25  ;;  %v2813_v61 = vmul.f32 %v4718_v34, %v2769_v48 }
 0x981   : > { %v2851_v15 = vrot.slane %v2850_v27, 2  ;;  %v2864_v50 = vadd.f32 %v2863_v58, %v2862_v56  ;;  %v3982_v12 = vrot.slane %v6449_v49, %v5716_v54  ;;  %v3975_v35 = vrot.slane %v6449_v49, %v5733_v10 }
 0x982   : > { %v3894_v52 = vcombine.high %v3892_v55, %v3892_v55  ;;  %v3908_v46 = vrot.slane %v3892_v55, %v5193_v25  ;;  %v3915_v41 = vrot.slane %v3893_v31, %v5193_v25  ;;  %v3923_v43 = vcombine.high %v3901_v39, %v3901_v39  ;;  %3935 = vst.msk [vmem:[%s5186_s8 + $0x7] sm:$0x1] %vm1162_vm10, %v3901_v39 }
 0x983   : > { %3956 = vbcast.lane.b32.xlu1 %v3954_v63, 256  ;;  %v2827_v20 = vsel %vm921_vm1, %v2813_v61, 0.0  ;;  %3949 = vbcast.lane.b32.xlu0 %v3947_v9, 256  ;;  %v2783_v33 = vpop.permute.xlu1 %2782  ;;  %v2825_v53 = vrot.slane %v2824_v22, 1  ;;  %v2852_v60 = vadd.f32 %v2851_v15, %v2850_v27  ;;  %v2865_v18 = vrot.slane %v2864_v50, 2 }
 0x984   : > { %v3922_v3 = vrot.slane %v3894_v52, %v5193_v25  ;;  %v3924_v57 = vcombine.high %v3908_v46, %v3908_v46  ;;  %v3925_v36 = vcombine.high %v3915_v41, %v3915_v41  ;;  %3936 = vst.msk [vmem:[%s5186_s8 + $0xf] sm:$0x1] %vm1162_vm10, %v3915_v41  ;;  %3937 = vst.msk [vmem:[%s5186_s8 + $0x17] sm:$0x1] %vm1162_vm10, %v3923_v43  ;;  %v2828_v32 = vrot.slane %v2827_v20, 4 }
 0x985   : > { %3939 = vst.msk [vmem:[%s5186_s8 + $0x27] sm:$0x1] %vm1162_vm10, %v3908_v46  ;;  %v2815_v11 = vmul.f32 %v4719_v38, %v2783_v33  ;;  %v3996_v54 = vrot.slane %v6449_v49, %v6714_v7  ;;  %v3989_v21 = vrot.slane %v6449_v49, %v5738_v14  ;;  %v2826_v37 = vadd.f32 %v2825_v53, %v2824_v22 }
 0x986   : > { %v3926_v28 = vcombine.high %v3922_v3, %v3922_v3  ;;  %3938 = vst.msk [vmem:[%s5186_s8 + $0x1f] sm:$0x1] %vm1162_vm10, %v3925_v36  ;;  %3940 = vst.msk [vmem:[%s5186_s8 + $0x2f] sm:$0x1] %vm1162_vm10, %v3922_v3  ;;  %v2829_v25 = vadd.f32 %v2828_v32, %v2827_v20  ;;  %v2853_v9 = vrot.slane %v2852_v60, 1  ;;  %v2866_v55 = vadd.f32 %v2865_v18, %v2864_v50  ;;  %v2755_v36 = vld [vmem:[#allocation2] sm:$0xff] }
 0x987   : > { %3941 = vst.msk [vmem:[%s5186_s8 + $0x37] sm:$0x1] %vm1162_vm10, %v3924_v57  ;;  %3970 = vbcast.lane.b32.xlu1 %v3968_v51, 256  ;;  %v2841_v16 = vsel %vm921_vm1, %v2815_v11, 0.0  ;;  %3963 = vbcast.lane.b32.xlu0 %v3961_v8, 256  ;;  %v2797_v5 = vpop.permute.xlu1 %2796  ;;  %v2840_v7 = vadd.f32 %v2839_v42, %v2838_v62  ;;  %v4722_v11 = vld [vmem:[%s5179_s27 + $0x28] sm:$0xff] }
 0x988   : > { %3942 = vst.msk [vmem:[%s5186_s8 + $0x3f] sm:$0x1] %vm1162_vm10, %v3926_v28  ;;  %v2830_v0 = vrot.slane %v2829_v25, 2  ;;  %v2842_v29 = vrot.slane %v2841_v16, 4  ;;  %v2817_v19 = vmul.f32 %v4720_v2, %v2797_v5  ;;  %v2854_v52 = vadd.f32 %v2853_v9, %v2852_v60  ;;  %v4723_v28 = vld [vmem:[%s5179_s27 + $0x68] sm:$0xff] }
 0x989   : > { %v2867_v46 = vrot.slane %v2866_v55, 1  ;;  %v4725_v62 = vld [vmem:[%s5179_s27 + $0xe8] sm:$0xff] }
 0x98a   : > { %v2831_v4 = vadd.f32 %v2830_v0, %v2829_v25  ;;  %v2843_v1 = vadd.f32 %v2842_v29, %v2841_v16  ;;  %v2855_v40 = vsel %vm921_vm1, %v2817_v19, 0.0  ;;  %v4724_v29 = vld [vmem:[%s5179_s27 + $0xa8] sm:$0xff] }
 0x98b   : > { %3984 = vbcast.lane.b32.xlu1 %v3982_v12, 256  ;;  %v2856_v44 = vrot.slane %v2855_v40, 4  ;;  %3977 = vbcast.lane.b32.xlu0 %v3975_v35, 256  ;;  %v2811_v17 = vpop.permute.xlu1 %2810  ;;  %v2868_v51 = vadd.f32 %v2867_v46, %v2866_v55  ;;  %v4727_v42 = vld [vmem:[%s5179_s27 + $0x168] sm:$0xff] }
 0x98c   : > { %v2832_v59 = vrot.slane %v2831_v4, 1  ;;  %v2844_v23 = vrot.slane %v2843_v1, 2  ;;  %v2819_v6 = vmul.f32 %v4721_v24, %v2811_v17 }
 0x98d   : > { %v2857_v10 = vadd.f32 %v2856_v44, %v2855_v40 }
 0x98e   : > { %v2833_v30 = vadd.f32 %v2832_v59, %v2831_v4  ;;  %v2845_v63 = vadd.f32 %v2844_v23, %v2843_v1  ;;  %v2869_v13 = vsel %vm921_vm1, %v2819_v6, 0.0  ;;  %v4726_v59 = vld [vmem:[%s5179_s27 + $0x128] sm:$0xff] }
 0x98f   : > { %3998 = vbcast.lane.b32.xlu1 %v3996_v54, 256  ;;  %v2858_v56 = vrot.slane %v2857_v10, 2  ;;  %v2870_v48 = vrot.slane %v2869_v13, 4  ;;  %3991 = vbcast.lane.b32.xlu0 %v3989_v21, 256 }
 0x990   : > { %v2884_v31 = vsel %vm979_vm2, %v2833_v30, %v2826_v37  ;;  %v2846_v39 = vrot.slane %v2845_v63, 1 }
 0x991   : > { %v2859_v34 = vadd.f32 %v2858_v56, %v2857_v10  ;;  %v2871_v61 = vadd.f32 %v2870_v48, %v2869_v13  ;;  %v2885_v14 = vsel %vm982_vm3, %v2840_v7, %v2884_v31  ;;  %v4728_v7 = vld [vmem:[%s5179_s27 + $0x1a8] sm:$0xff] }
 0x992   : > { %v2847_v47 = vadd.f32 %v2846_v39, %v2845_v63 }
 0x993   : > { %v2860_v49 = vrot.slane %v2859_v34, 1  ;;  %v2872_v45 = vrot.slane %v2871_v61, 2 }
 0x994   : > { %v2886_v41 = vsel %vm985_vm4, %v2847_v47, %v2885_v14 }
 0x995   : > { %v2861_v43 = vadd.f32 %v2860_v49, %v2859_v34  ;;  %v2873_v27 = vadd.f32 %v2872_v45, %v2871_v61  ;;  %v2887_v58 = vsel %vm988_vm5, %v2854_v52, %v2886_v41  ;;  %v4729_v45 = vld [vmem:[%s5179_s27 + $0x1e8] sm:$0xff] }
 0x997   : > { %v2888_v20 = vsel %vm991_vm6, %v2861_v43, %v2887_v58  ;;  %v2874_v33 = vrot.slane %v2873_v27, 1 }
 0x998   : > { %v2889_v57 = vsel %vm994_vm7, %v2868_v51, %v2888_v20 }
 0x999   : > { %v2875_v3 = vadd.f32 %v2874_v33, %v2873_v27 }
 0x99b   : > { %v2890_v32 = vsel %vm997_vm8, %v2875_v3, %v2889_v57 }
 0x99c   : > { %v2892_v26 = vadd.f32 %v2890_v32, %v2755_v36 }
 0x99e   : > { %2893 = vst.msk [vmem:[#allocation2] sm:$0xff] %vm921_vm1, %v2892_v26 }
 0x9d4   : > { %v3158_v38 = vpop.permute.xlu0 %3157  ;;  %v3165_v22 = vpop.permute.xlu1 %3164 }
 0x9d5   : > { %v3208_v8 = vmul.f32 %v4722_v11, %v3158_v38  ;;  %v3209_v25 = vmul.f32 %v4723_v28, %v3165_v22  ;;  %v4730_v28 = vld [vmem:[%s5179_s27 + $0x70] sm:$0xff] }
 0x9d7   : > { %v3216_v15 = vsel %vm921_vm1, %v3208_v8, 0.0  ;;  %v3223_v16 = vsel %vm921_vm1, %v3209_v25, 0.0 }
 0x9d8   : > { %v3217_v50 = vrot.slane %v3216_v15, 4  ;;  %v3172_v5 = vpop.permute.xlu0 %3171  ;;  %v3224_v0 = vrot.slane %v3223_v16, 4 }
 0x9d9   : > { %v3210_v2 = vmul.f32 %v4724_v29, %v3172_v5  ;;  %v3179_v19 = vpop.permute.xlu1 %3178  ;;  %v4731_v5 = vld [vmem:[%s5179_s27 + $0x30] sm:$0xff] }
 0x9da   : > { %v3218_v12 = vadd.f32 %v3217_v50, %v3216_v15  ;;  %v3211_v35 = vmul.f32 %v4725_v62, %v3179_v19  ;;  %v3225_v53 = vadd.f32 %v3224_v0, %v3223_v16 }
 0x9db   : > { %v3230_v4 = vsel %vm921_vm1, %v3210_v2, 0.0 }
 0x9dc   : > { %v3219_v1 = vrot.slane %v3218_v12, 2  ;;  %v3231_v40 = vrot.slane %v3230_v4, 4  ;;  %v3237_v60 = vsel %vm921_vm1, %v3211_v35, 0.0  ;;  %v3186_v18 = vpop.permute.xlu0 %3185  ;;  %v3226_v44 = vrot.slane %v3225_v53, 2 }
 0x9dd   : > { %v3238_v17 = vrot.slane %v3237_v60, 4  ;;  %v3212_v23 = vmul.f32 %v4726_v59, %v3186_v18  ;;  %v3193_v24 = vpop.permute.xlu1 %3192 }
 0x9de   : > { %v3220_v6 = vadd.f32 %v3219_v1, %v3218_v12  ;;  %v3232_v54 = vadd.f32 %v3231_v40, %v3230_v4  ;;  %v3213_v10 = vmul.f32 %v4727_v42, %v3193_v24  ;;  %v3227_v21 = vadd.f32 %v3226_v44, %v3225_v53  ;;  %v4732_v24 = vld [vmem:[%s5179_s27 + $0xb0] sm:$0xff] }
 0x9df   : > { %v3239_v37 = vadd.f32 %v3238_v17, %v3237_v60  ;;  %v3244_v30 = vsel %vm921_vm1, %v3212_v23, 0.0 }
 0x9e0   : > { %v3221_v63 = vrot.slane %v3220_v6, 1  ;;  %v3233_v13 = vrot.slane %v3232_v54, 2  ;;  %v3245_v56 = vrot.slane %v3244_v30, 4  ;;  %v3251_v48 = vsel %vm921_vm1, %v3213_v10, 0.0  ;;  %v3200_v9 = vpop.permute.xlu0 %3199 }
 0x9e1   : > { %v3228_v55 = vrot.slane %v3227_v21, 1  ;;  %v3240_v31 = vrot.slane %v3239_v37, 2  ;;  %v3252_v39 = vrot.slane %v3251_v48, 4  ;;  %v3214_v34 = vmul.f32 %v4728_v7, %v3200_v9  ;;  %v3207_v61 = vpop.permute.xlu1 %3206 }
 0x9e2   : > { %v3222_v47 = vadd.f32 %v3221_v63, %v3220_v6  ;;  %v3234_v14 = vadd.f32 %v3233_v13, %v3232_v54  ;;  %v3246_v49 = vadd.f32 %v3245_v56, %v3244_v30  ;;  %v3215_v52 = vmul.f32 %v4729_v45, %v3207_v61  ;;  %v4733_v54 = vld [vmem:[%s5179_s27 + $0xf0] sm:$0xff] }
 0x9e3   : > { %v3229_v46 = vadd.f32 %v3228_v55, %v3227_v21  ;;  %v3241_v41 = vadd.f32 %v3240_v31, %v3239_v37  ;;  %v3253_v43 = vadd.f32 %v3252_v39, %v3251_v48  ;;  %v3258_v27 = vsel %vm921_vm1, %v3214_v34, 0.0  ;;  %v4735_v45 = vld [vmem:[%s5179_s27 + $0x170] sm:$0xff] }
 0x9e4   : > { %v3235_v58 = vrot.slane %v3234_v14, 1  ;;  %v3247_v20 = vrot.slane %v3246_v49, 2  ;;  %v3259_v33 = vrot.slane %v3258_v27, 4  ;;  %v3265_v51 = vsel %vm921_vm1, %v3215_v52, 0.0  ;;  %v3554_v22 = vpop.permute.xlu0 %3553 }
 0x9e5   : > { %v3280_v3 = vsel %vm979_vm2, %v3229_v46, %v3222_v47  ;;  %v3242_v57 = vrot.slane %v3241_v41, 1  ;;  %v3254_v36 = vrot.slane %v3253_v43, 2  ;;  %v3266_v32 = vrot.slane %v3265_v51, 4  ;;  %v3561_v26 = vpop.permute.xlu1 %3560 }
 0x9e6   : > { %v3236_v38 = vadd.f32 %v3235_v58, %v3234_v14  ;;  %v3248_v11 = vadd.f32 %v3247_v20, %v3246_v49  ;;  %v3260_v8 = vadd.f32 %v3259_v33, %v3258_v27  ;;  %v3605_v25 = vmul.f32 %v4730_v28, %v3561_v26  ;;  %v4734_v14 = vld [vmem:[%s5179_s27 + $0x130] sm:$0xff]  ;;  %v3151_v58 = vld [vmem:[#allocation2] sm:$0xff] }
 0x9e7   : > { %v3243_v15 = vadd.f32 %v3242_v57, %v3241_v41  ;;  %v3255_v50 = vadd.f32 %v3254_v36, %v3253_v43  ;;  %v3267_v16 = vadd.f32 %v3266_v32, %v3265_v51  ;;  %v3604_v0 = vmul.f32 %v4731_v5, %v3554_v22 }
 0x9e8   : > { %v3281_v29 = vsel %vm982_vm3, %v3236_v38, %v3280_v3  ;;  %v3249_v2 = vrot.slane %v3248_v11, 1  ;;  %v3261_v19 = vrot.slane %v3260_v8, 2  ;;  %v3619_v12 = vsel %vm921_vm1, %v3605_v25, 0.0  ;;  %v3568_v17 = vpop.permute.xlu0 %3567  ;;  %v4736_v25 = vld [vmem:[%s5179_s27 + $0x1b0] sm:$0xff] }
 0x9e9   : > { %v3282_v62 = vsel %vm985_vm4, %v3243_v15, %v3281_v29  ;;  %v3256_v35 = vrot.slane %v3255_v50, 1  ;;  %v3268_v53 = vrot.slane %v3267_v16, 2  ;;  %v3612_v4 = vsel %vm921_vm1, %v3604_v0, 0.0  ;;  %v3575_v1 = vpop.permute.xlu1 %3574  ;;  %v4737_v0 = vld [vmem:[%s5179_s27 + $0x1f0] sm:$0xff] }
 0x9ea   : > { %v3250_v40 = vadd.f32 %v3249_v2, %v3248_v11  ;;  %v3262_v60 = vadd.f32 %v3261_v19, %v3260_v8  ;;  %v3613_v18 = vrot.slane %v3612_v4, 4  ;;  %v3620_v44 = vrot.slane %v3619_v12, 4 }
 0x9eb   : > { %v3257_v59 = vadd.f32 %v3256_v35, %v3255_v50  ;;  %v3269_v23 = vadd.f32 %v3268_v53, %v3267_v16  ;;  %v3606_v6 = vmul.f32 %v4732_v24, %v3568_v17  ;;  %v3607_v42 = vmul.f32 %v4733_v54, %v3575_v1 }
 0x9ec   : > { %v3283_v10 = vsel %vm988_vm5, %v3250_v40, %v3282_v62  ;;  %v3263_v21 = vrot.slane %v3262_v60, 1  ;;  %v3614_v37 = vadd.f32 %v3613_v18, %v3612_v4  ;;  %v3621_v30 = vadd.f32 %v3620_v44, %v3619_v12  ;;  %v3582_v34 = vpop.permute.xlu0 %3581 }
 0x9ed   : > { %v3284_v63 = vsel %vm991_vm6, %v3257_v59, %v3283_v10  ;;  %v3270_v13 = vrot.slane %v3269_v23, 1  ;;  %v3626_v56 = vsel %vm921_vm1, %v3606_v6, 0.0  ;;  %v3633_v48 = vsel %vm921_vm1, %v3607_v42, 0.0  ;;  %v3589_v9 = vpop.permute.xlu1 %3588  ;;  %v4738_v6 = vld [vmem:[%s5179_s27 + $0x38] sm:$0xff] }
 0x9ee   : > { %v3264_v55 = vadd.f32 %v3263_v21, %v3262_v60  ;;  %v3615_v31 = vrot.slane %v3614_v37, 2  ;;  %v3622_v39 = vrot.slane %v3621_v30, 2  ;;  %v3627_v7 = vrot.slane %v3626_v56, 4  ;;  %v4739_v42 = vld [vmem:[%s5179_s27 + $0x78] sm:$0xff] }
 0x9ef   : > { %v3271_v61 = vadd.f32 %v3270_v13, %v3269_v23  ;;  %v3634_v47 = vrot.slane %v3633_v48, 4  ;;  %v3608_v49 = vmul.f32 %v4734_v14, %v3582_v34  ;;  %v3609_v52 = vmul.f32 %v4735_v45, %v3589_v9  ;;  %v4740_v45 = vld [vmem:[%s5179_s27 + $0xb8] sm:$0xff] }
 0x9f0   : > { %v3285_v46 = vsel %vm994_vm7, %v3264_v55, %v3284_v63  ;;  %v3616_v41 = vadd.f32 %v3615_v31, %v3614_v37  ;;  %v3623_v43 = vadd.f32 %v3622_v39, %v3621_v30  ;;  %v3628_v27 = vadd.f32 %v3627_v7, %v3626_v56  ;;  %v3596_v11 = vpop.permute.xlu0 %3595 }
 0x9f1   : > { %v3286_v20 = vsel %vm997_vm8, %v3271_v61, %v3285_v46  ;;  %v3635_v33 = vadd.f32 %v3634_v47, %v3633_v48  ;;  %v3640_v51 = vsel %vm921_vm1, %v3608_v49, 0.0  ;;  %v3647_v3 = vsel %vm921_vm1, %v3609_v52, 0.0  ;;  %v3603_v57 = vpop.permute.xlu1 %3602 }
 0x9f2   : > { %v3288_v36 = vadd.f32 %v3286_v20, %v3151_v58  ;;  %v3617_v32 = vrot.slane %v3616_v41, 1  ;;  %v3624_v26 = vrot.slane %v3623_v43, 1  ;;  %v3629_v38 = vrot.slane %v3628_v27, 2 }
 0x9f3   : > { %v3636_v8 = vrot.slane %v3635_v33, 2  ;;  %v3641_v22 = vrot.slane %v3640_v51, 4  ;;  %v3648_v28 = vrot.slane %v3647_v3, 4  ;;  %v3610_v15 = vmul.f32 %v4736_v25, %v3596_v11 }
 0x9f4   : > { %3289 = vst.msk [vmem:[#allocation2] sm:$0xff] %vm921_vm1, %v3288_v36  ;;  %v3618_v50 = vadd.f32 %v3617_v32, %v3616_v41  ;;  %v3625_v16 = vadd.f32 %v3624_v26, %v3623_v43  ;;  %v3630_v5 = vadd.f32 %v3629_v38, %v3628_v27  ;;  %v3611_v29 = vmul.f32 %v4737_v0, %v3603_v57  ;;  %v4741_v27 = vld [vmem:[%s5179_s27 + $0xf8] sm:$0xff] }
 0x9f5   : > { %v3637_v2 = vadd.f32 %v3636_v8, %v3635_v33  ;;  %v3642_v19 = vadd.f32 %v3641_v22, %v3640_v51  ;;  %v3649_v12 = vadd.f32 %v3648_v28, %v3647_v3  ;;  %v3654_v62 = vsel %vm921_vm1, %v3610_v15, 0.0  ;;  %v3957_v35 = vpop.permute.xlu1 %3956  ;;  %v3950_v60 = vpop.permute.xlu0 %3949 }
 0x9f6   : > { %v3676_v53 = vsel %vm979_vm2, %v3625_v16, %v3618_v50  ;;  %v3631_v4 = vrot.slane %v3630_v5, 1  ;;  %v3655_v1 = vrot.slane %v3654_v62, 4  ;;  %v3661_v40 = vsel %vm921_vm1, %v3611_v29, 0.0 }
 0x9f7   : > { %v3638_v18 = vrot.slane %v3637_v2, 1  ;;  %v3643_v44 = vrot.slane %v3642_v19, 2  ;;  %v3650_v17 = vrot.slane %v3649_v12, 2  ;;  %v3662_v59 = vrot.slane %v3661_v40, 4 }
 0x9f8   : > { %v3632_v23 = vadd.f32 %v3631_v4, %v3630_v5  ;;  %v3656_v24 = vadd.f32 %v3655_v1, %v3654_v62  ;;  %v4000_v54 = vmul.f32 %v4738_v6, %v3950_v60  ;;  %v4001_v10 = vmul.f32 %v4739_v42, %v3957_v35  ;;  %v4742_v5 = vld [vmem:[%s5179_s27 + $0x138] sm:$0xff] }
 0x9f9   : > { %v3639_v21 = vadd.f32 %v3638_v18, %v3637_v2  ;;  %v3644_v37 = vadd.f32 %v3643_v44, %v3642_v19  ;;  %v3651_v30 = vadd.f32 %v3650_v17, %v3649_v12  ;;  %v3663_v63 = vadd.f32 %v3662_v59, %v3661_v40  ;;  %v3971_v13 = vpop.permute.xlu1 %3970  ;;  %v3964_v31 = vpop.permute.xlu0 %3963  ;;  %v4743_v12 = vld [vmem:[%s5179_s27 + $0x178] sm:$0xff] }
 0x9fa   : > { %v3677_v56 = vsel %vm982_vm3, %v3632_v23, %v3676_v53  ;;  %v3657_v48 = vrot.slane %v3656_v24, 2  ;;  %v4008_v9 = vsel %vm921_vm1, %v4000_v54, 0.0  ;;  %v4015_v55 = vsel %vm921_vm1, %v4001_v10, 0.0  ;;  %v4744_v42 = vld [vmem:[%s5179_s27 + $0x1b8] sm:$0xff] }
 0x9fb   : > { %v3678_v39 = vsel %vm985_vm4, %v3639_v21, %v3677_v56  ;;  %v3645_v7 = vrot.slane %v3644_v37, 1  ;;  %v3652_v34 = vrot.slane %v3651_v30, 1  ;;  %v3664_v61 = vrot.slane %v3663_v63, 2  ;;  %v3547_v53 = vld [vmem:[#allocation2] sm:$0xff] }
 0x9fc   : > { %v3658_v47 = vadd.f32 %v3657_v48, %v3656_v24  ;;  %v4009_v14 = vrot.slane %v4008_v9, 4  ;;  %v4016_v49 = vrot.slane %v4015_v55, 4  ;;  %v4002_v52 = vmul.f32 %v4740_v45, %v3964_v31 }
 0x9fd   : > { %v3646_v46 = vadd.f32 %v3645_v7, %v3644_v37  ;;  %v3653_v41 = vadd.f32 %v3652_v34, %v3651_v30  ;;  %v3665_v43 = vadd.f32 %v3664_v61, %v3663_v63  ;;  %v4003_v58 = vmul.f32 %v4741_v27, %v3971_v13  ;;  %v3978_v57 = vpop.permute.xlu0 %3977  ;;  %v3985_v36 = vpop.permute.xlu1 %3984 }
 0x9fe   : > { %v3659_v20 = vrot.slane %v3658_v47, 1  ;;  %v4010_v33 = vadd.f32 %v4009_v14, %v4008_v9  ;;  %v4017_v51 = vadd.f32 %v4016_v49, %v4015_v55  ;;  %v4022_v3 = vsel %vm921_vm1, %v4002_v52, 0.0  ;;  %v4745_v9 = vld [vmem:[%s5179_s27 + $0x1f8] sm:$0xff] }
 0x9ff   : > { %v3679_v32 = vsel %vm988_vm5, %v3646_v46, %v3678_v39  ;;  %v3666_v26 = vrot.slane %v3665_v43, 1  ;;  %v4023_v38 = vrot.slane %v4022_v3, 4  ;;  %v4029_v11 = vsel %vm921_vm1, %v4003_v58, 0.0 }
 0xa00   : > { %v3680_v8 = vsel %vm991_vm6, %v3653_v41, %v3679_v32  ;;  %v3660_v22 = vadd.f32 %v3659_v20, %v3658_v47  ;;  %v4011_v28 = vrot.slane %v4010_v33, 2  ;;  %v4018_v25 = vrot.slane %v4017_v51, 2 }
 0xa01   : > { %v3667_v15 = vadd.f32 %v3666_v26, %v3665_v43  ;;  %v4024_v50 = vadd.f32 %v4023_v38, %v4022_v3  ;;  %v4030_v16 = vrot.slane %v4029_v11, 4  ;;  %v4004_v0 = vmul.f32 %v4742_v5, %v3978_v57  ;;  %v3992_v35 = vpop.permute.xlu0 %3991  ;;  %v3999_v23 = vpop.permute.xlu1 %3998 }
 0xa02   : > { %v3681_v29 = vsel %vm994_vm7, %v3660_v22, %v3680_v8  ;;  %v4012_v2 = vadd.f32 %v4011_v28, %v4010_v33  ;;  %v4019_v19 = vadd.f32 %v4018_v25, %v4017_v51  ;;  %v4005_v62 = vmul.f32 %v4743_v12, %v3985_v36 }
 0xa03   : > { %v3682_v4 = vsel %vm997_vm8, %v3667_v15, %v3681_v29  ;;  %v4025_v1 = vrot.slane %v4024_v50, 2  ;;  %v4031_v40 = vadd.f32 %v4030_v16, %v4029_v11  ;;  %v4036_v60 = vsel %vm921_vm1, %v4004_v0, 0.0 }
 0xa04   : > { %v3684_v18 = vadd.f32 %v3682_v4, %v3547_v53  ;;  %v4013_v44 = vrot.slane %v4012_v2, 1  ;;  %v4020_v17 = vrot.slane %v4019_v19, 1  ;;  %v4037_v59 = vrot.slane %v4036_v60, 4 }
 0xa05   : > { %v4026_v24 = vadd.f32 %v4025_v1, %v4024_v50  ;;  %v4032_v6 = vrot.slane %v4031_v40, 2  ;;  %v4043_v54 = vsel %vm921_vm1, %v4005_v62, 0.0  ;;  %v4006_v10 = vmul.f32 %v4744_v42, %v3992_v35 }
 0xa06   : > { %3685 = vst.msk [vmem:[#allocation2] sm:$0xff] %vm921_vm1, %v3684_v18  ;;  %v4014_v21 = vadd.f32 %v4013_v44, %v4012_v2  ;;  %v4021_v37 = vadd.f32 %v4020_v17, %v4019_v19  ;;  %v4038_v30 = vadd.f32 %v4037_v59, %v4036_v60  ;;  %v4044_v63 = vrot.slane %v4043_v54, 4 }
 0xa07   : > { %v4027_v13 = vrot.slane %v4026_v24, 1  ;;  %v4033_v56 = vadd.f32 %v4032_v6, %v4031_v40  ;;  %v4050_v48 = vsel %vm921_vm1, %v4006_v10, 0.0  ;;  %v4007_v55 = vmul.f32 %v4745_v9, %v3999_v23 }
 0xa08   : > { %v4039_v31 = vrot.slane %v4038_v30, 2  ;;  %v4045_v39 = vadd.f32 %v4044_v63, %v4043_v54  ;;  %v4051_v7 = vrot.slane %v4050_v48, 4  ;;  %v4072_v34 = vsel %vm979_vm2, %v4021_v37, %v4014_v21 }
 0xa09   : > { %v4028_v61 = vadd.f32 %v4027_v13, %v4026_v24  ;;  %v4034_v47 = vrot.slane %v4033_v56, 1  ;;  %v4057_v14 = vsel %vm921_vm1, %v4007_v55, 0.0 }
 0xa0a   : > { %v4040_v49 = vadd.f32 %v4039_v31, %v4038_v30  ;;  %v4046_v45 = vrot.slane %v4045_v39, 2  ;;  %v4052_v52 = vadd.f32 %v4051_v7, %v4050_v48  ;;  %v4058_v46 = vrot.slane %v4057_v14, 4 }
 0xa0b   : > { %v4073_v41 = vsel %vm982_vm3, %v4028_v61, %v4072_v34  ;;  %v4035_v43 = vadd.f32 %v4034_v47, %v4033_v56 }
 0xa0c   : > { %v4041_v27 = vrot.slane %v4040_v49, 1  ;;  %v4047_v58 = vadd.f32 %v4046_v45, %v4045_v39  ;;  %v4053_v20 = vrot.slane %v4052_v52, 2  ;;  %v4059_v33 = vadd.f32 %v4058_v46, %v4057_v14 }
 0xa0d   : > { %v4074_v32 = vsel %vm985_vm4, %v4035_v43, %v4073_v41  ;;  %v3943_v16 = vld [vmem:[#allocation2] sm:$0xff] }
 0xa0e   : > { %v4042_v51 = vadd.f32 %v4041_v27, %v4040_v49  ;;  %v4048_v3 = vrot.slane %v4047_v58, 1  ;;  %v4054_v57 = vadd.f32 %v4053_v20, %v4052_v52  ;;  %v4060_v36 = vrot.slane %v4059_v33, 2 }
 0xa10   : > { %v4075_v26 = vsel %vm988_vm5, %v4042_v51, %v4074_v32  ;;  %v4049_v38 = vadd.f32 %v4048_v3, %v4047_v58  ;;  %v4055_v11 = vrot.slane %v4054_v57, 1  ;;  %v4061_v8 = vadd.f32 %v4060_v36, %v4059_v33 }
 0xa12   : > { %v4056_v22 = vadd.f32 %v4055_v11, %v4054_v57  ;;  %v4062_v28 = vrot.slane %v4061_v8, 1  ;;  %v4076_v25 = vsel %vm991_vm6, %v4049_v38, %v4075_v26 }
 0xa14   : > { %v4077_v15 = vsel %vm994_vm7, %v4056_v22, %v4076_v25  ;;  %v4063_v50 = vadd.f32 %v4062_v28, %v4061_v8 }
 0xa15   : > { %4085 = sbr.rel (%p4513_p6) target bundleno = 2813 (0xafd), region = 166 }
 0xa16   : > { %v4078_v5 = vsel %vm997_vm8, %v4063_v50, %v4077_v15 }
 0xa17   : > { %v4080_v0 = vadd.f32 %v4078_v5, %v3943_v16 }
 0xa19   : > { %4081 = vst.msk [vmem:[#allocation2] sm:$0xff] %vm921_vm1, %v4080_v0 }
 0xa1a   : > { %v4094_v29 = vld [vmem:[%s6687_s5 + $0x38] sm:$0xff]  ;;  %v4861_v2 = vmov 0.0   ;;  %v4093_v19 = vld [vmem:[%s6687_s5 + $0x30] sm:$0xff]  ;;  %vm4862_vm2 = vmmov 0   ;;  %v4092_v12 = vld [vmem:[%s6687_s5 + $0x28] sm:$0xff] }
 0xa1b   : > { %4532 = vmatprep.subr.mxu0 %v4861_v2  ;;  %4548 = vmatprep.mubr.msk.f32.mxu0 %vm4862_vm2, %v4861_v2  ;;  %v4091_v62 = vld [vmem:[%s6687_s5 + $0x20] sm:$0xff]  ;;  %v4090_v35 = vld [vmem:[%s6687_s5 + $0x18] sm:$0xff]  ;;  %v4089_v53 = vld [vmem:[%s6687_s5 + $0x10] sm:$0xff] }
 0xa1c   : > { %4533 = vmatpush3.msra.mxu0 %v4094_v29  ;;  %v4088_v4 = vld [vmem:[%s6687_s5 + $0x8] sm:$0xff]  ;;  %v4087_v1 = vld [vmem:[%s6687_s5] sm:$0xff] }
 0xa1d   : > { %4534 = vmatprep.subr.mxu0 %v4861_v2  ;;  %v4095_v60 = vld [vmem:[%s5177_s4] sm:$0xff] }
 0xa1e   : > { %4535 = vmatpush3.msra.mxu0 %v4093_v19 }
 0xa1f   : > { %4536 = vmatprep.subr.mxu0 %v4861_v2 }
 0xa20   : > { %4537 = vmatpush3.msra.mxu0 %v4092_v12  ;;  %v4086_v40 = vld [vmem:[#allocation2] sm:$0xff] }
 0xa21   : > { %4538 = vmatprep.subr.mxu0 %v4861_v2 }
 0xa22   : > { %4539 = vmatpush3.msra.mxu0 %v4091_v62 }
 0xa23   : > { %4540 = vmatprep.subr.mxu0 %v4861_v2 }
 0xa24   : > { %4541 = vmatpush3.msra.mxu0 %v4090_v35 }
 0xa25   : > { %4542 = vmatprep.subr.mxu0 %v4861_v2 }
 0xa26   : > { %4543 = vmatpush3.msra.mxu0 %v4089_v53 }
 0xa27   : > { %4544 = vmatprep.subr.mxu0 %v4861_v2 }
 0xa28   : > { %4545 = vmatpush3.msra.mxu0 %v4088_v4 }
 0xa29   : > { %4546 = vmatprep.subr.mxu0 %v4861_v2 }
 0xa2a   : > { %4547 = vmatpush3.msra.mxu0 %v4087_v1 }
 0xa2b   : > { %4549 = vmatmul.mubr.msk.f32.vlgmr.msra.gmra.mxu0 %vm921_vm1, %v4086_v40 }
 0xaeb   : > { %v4165_v18 = vpop.f32.mrf.mxu0 }
 0xaec   : > { %v4166_v44 = vadd.f32 %v4165_v18, %v4095_v60 }
 0xaed   : > { %v4550_v17 = vpop.f32.mrf.mxu0 }
 0xaee   : > { %4746 = vtanh.f32 %v4166_v44 }
 0xafb   : > { %v4747_v59 = vpop.eup %4746 }
 0xafc   : > { %4170 = vst.msk [vmem:[%s786_s23] sm:$0xff] %vm921_vm1, %v4747_v59 }
 0xafd PF: > { %s4517_s16 = sshll.u32 %s4844_s30, 7  ;;  %s4189_s4 = sshll.u32 %s786_s23, 4  ;;  %s4190_s4 = int_to_ptr.vmem [resolvable:$true] %s4189_s4 }
 0xafe   : > { %s4187_s15 = scalar_lea.hbm %s6688_s6, %s4517_s16  ;;  %s6715_s21 = sand.u32 1, %s4824_s25  }
 0xaff   : > { %s4172_s2 = scalar_lea.sflag [#allocation7], %s6715_s21  ;;  %s4748_s27 = scalar_lea.vmem %s4190_s4, 128 }
 0xb00   : > { %p4749_p8 = scmp.ne.s32.totalorder %s4190_s4, %s4748_s27  ;;  %s4863_s17 = smov [#allocation6]  }
 0xb01   : > { %s4752_s3 = sshll.u32 %s4863_s17, 4  ;;  %s4753_s3 = int_to_ptr.vmem [resolvable:$false] %s4752_s3 }
 0xb02   : > { %p4750_p9 = pnand %p4749_p8, %p4979_p7  ;;  %s4754_s9 = scalar_lea.vmem %s4753_s3, 256 }
 0xb03   : > { %p4755_p11 = scmp.lt.s32.totalorder %s4190_s4, %s4753_s3  ;;  %p4756_p0 = scmp.lt.s32.totalorder %s4754_s9, %s4748_s27 }
 0xb04   : > { %p4751_p10 = pneg %p4750_p9 }
 0xb05   : > { %p4757_p1 = por %p4756_p0, %p4755_p11 }
 0xb07   : > { %p4758_p2 = pnand %p4757_p1, %p4751_p10 }
 0xb09   : > { %4761 = shalt.err (!%p4758_p2)
}
 0xb0a   : > { %s4762_s12 = scalar_lea.hbm %s4187_s15, 128  ;;  %s4766_s14 = scalar_lea.hbm %s6688_s6, 256 }
 0xb0b   : > { %p4763_p3 = scmp.ne.s32.totalorder %s4187_s15, %s4762_s12  ;;  %p4767_p6 = scmp.lt.s32.totalorder %s4187_s15, %s6688_s6 }
 0xb0c   : > { %p4768_p8 = scmp.lt.s32.totalorder %s4766_s14, %s4762_s12 }
 0xb0d   : > { %p4764_p4 = pnand %p4763_p3, %p4979_p7 }
 0xb0e   : > { %p4769_p9 = por %p4768_p8, %p4767_p6 }
 0xb0f   : > { %p4765_p5 = pneg %p4764_p4 }
 0xb11   : > { %p4770_p12 = pnand %p4769_p9, %p4765_p5 }
 0xb13   : > { %4773 = shalt.err (!%p4770_p12)
}
 0xb14   : > { %4555 = dma.vmem_to_hbm [thread:$0]  (%p4979_p7), %s4190_s4, 128, %s4187_s15, %s4172_s2   ;;  %v4243_v23 = vld [vmem:[%s5186_s8] sm:$0xff] (%p5000_p13)  ;;  %v4245_v24 = vld [vmem:[%s5186_s8 + $0x8] sm:$0xff] (%p5000_p13)  ;;  %v4247_v6 = vld [vmem:[%s5186_s8 + $0x10] sm:$0xff] (%p5000_p13) }
 0xb15   : > { %4195 = sbr.rel (!%p5000_p13) target bundleno = 2847 (0xb1f), region = 174  ;;  %v4249_v54 = vld [vmem:[%s5186_s8 + $0x18] sm:$0xff] (%p5000_p13)  ;;  %v4251_v42 = vld [vmem:[%s5186_s8 + $0x20] sm:$0xff] (%p5000_p13)  ;;  %v4253_v10 = vld [vmem:[%s5186_s8 + $0x28] sm:$0xff] (%p5000_p13) }
 0xb16   : > { %s4554_s20 = smul.u32 (%p5000_p13), 24, %s4844_s30  ;;  %v4255_v21 = vld [vmem:[%s5186_s8 + $0x30] sm:$0xff] (%p5000_p13)  ;;  %v4257_v37 = vld [vmem:[%s5186_s8 + $0x38] sm:$0xff] (%p5000_p13) }
 0xb18   : > { %s4198_s19 = sadd.s32 (%p5000_p13), %s4840_s29, %s4554_s20 }
 0xb19   : > { %s4520_s13 = sshll.u32 (%p5000_p13), %s4198_s19, 3 }
 0xb1a   : > { %s4200_s21 = scalar_lea.vmem %s6689_s7, %s4520_s13 }
 0xb1b   : > { %4244 = vst [vmem:[%s4200_s21] sm:$0xff] %v4243_v23  ;;  %4246 = vst [vmem:[%s4200_s21 + $0x18] sm:$0xff] %v4245_v24 }
 0xb1c   : > { %4248 = vst [vmem:[%s4200_s21 + $0x30] sm:$0xff] %v4247_v6  ;;  %4250 = vst [vmem:[%s4200_s21 + $0x48] sm:$0xff] %v4249_v54 }
 0xb1d   : > { %4252 = vst [vmem:[%s4200_s21 + $0x60] sm:$0xff] %v4251_v42  ;;  %4254 = vst [vmem:[%s4200_s21 + $0x78] sm:$0xff] %v4253_v10 }
 0xb1e   : > { %4256 = vst [vmem:[%s4200_s21 + $0x90] sm:$0xff] %v4255_v21  ;;  %4258 = vst [vmem:[%s4200_s21 + $0xa8] sm:$0xff] %v4257_v37 }
 0xb1f PF: > { %p4561_p7 = scmp.ge.s32.totalorder %s4856_s10, 2  ;;  %s4270_s29 = sand.u32 1, %s4820_s24  }
 0xb20   : > { %p6716_p12 = scmp.ne.s32.totalorder %s6706_s22, 0  ;;  %s4271_s30 = scalar_lea.sflag [#allocation7], %s4270_s29 }
 0xb22   : > { %p4558_p13 = pnand %p4561_p7, %p6716_p12 }
 0xb24   : > { %p4559_p10 = pneg %p4558_p13 }
 0xb26   : > { %4815 = dma.done.wait (%p4559_p10), %s4271_s30, 128  }
 0xb27   : > { %4817 = vsyncadd (%p4559_p10), %s4271_s30, 4294967168  ;;  %s21_s10 = sadd.s32 1, %s4856_s10   ;;  %s6717_s8 = sld [smem:[#allocation14_spill]] }
 0xb28   : > { %p18_p11 = scmp.ge.s32.totalorder %s21_s10, 8   ;;  %s6718_s2 = sld [smem:[#allocation15_spill]] }
 0xb29   : > { %s6719_s29 = sld [smem:[#allocation10_spill]]  ;;  %s6723_s24 = smov %s4824_s25 }
 0xb2a   : > { %s6720_s30 = sld [smem:[#allocation11_spill]]  ;;  %s6724_s25 = smov %s4828_s26 }
 0xb2b   : > { %s6721_s17 = sld [smem:[#allocation12_spill]]  ;;  %s6726_s27 = smov %s4836_s28 }
 0xb2c   : > { %s6722_s9 = sld [smem:[#allocation13_spill]] }
 0xb2d   : > { %s6725_s26 = smov %s6717_s8  ;;  %20 = sbr.rel (!%p18_p11) target bundleno = 10 (0xa), region = 285 }
 0xb2e   : > { %s6727_s28 = smov %s6718_s2 }
 0xb31   : > { %s6728_s8 = smov %s6721_s17 }
 0xb32   :  { %4283 = vsyncpa [#allocation7], 1 }
 0xb33   :  { %4285 = vsyncpa [#allocation7 + $0x1], 1 }

</bundles_post_ra>
